<compile_context>
chip_gen: v6e
topology: v6e:2x2x1
jax: 0.10.0
libtpu: 0.0.40
codegen_flags: <defaults>
</compile_context>

<pallas_src>
import functools

import jax
import jax.numpy as jnp
from jax import lax
from jax.experimental import pallas as pl
from jax.experimental.pallas import tpu as pltpu


# ----------------------------------------------------------------------------
# Model hyper-parameters (small, consistent with the module's config dict).
# ----------------------------------------------------------------------------
INPUT_DIM = 8          # feat_dim
VOCAB = 16             # vocab_size (blank_id = 0)
VPAD = 128             # vocab padded to a full lane register inside the joiner
ATTN_DIM = 32          # encoder['attention_dim']
NUM_HEADS = 4          # encoder['attention_heads']
HEAD_DIM = ATTN_DIM // NUM_HEADS
FFN_DIM = 64           # encoder['feedforward_size']
NUM_LAYERS = 2         # encoder['num_layers']
OUT_DIM = 32           # encoder['output_dim'] == embedding_dim == joiner input_dim
CONTEXT = 2            # predictor context_size
NEG_INF = -1e30        # finite "-inf": keeps the DP logaddexp NaN-free
LN_EPS = 1e-5


def _r8(n):
    return ((n + 7) // 8) * 8


# ---- vector-slab row layout (each row: one small (1,d) parameter, lane-dense) ----
VEC_CMVN_MEAN, VEC_CMVN_ISTD, VEC_IN_B = 0, 1, 2
VEC_AFTER_G, VEC_AFTER_B, VEC_OUT_B = 3, 4, 5
VEC_PRED_W0, VEC_PRED_W1, VEC_PRED_B = 6, 7, 8
VEC_JOIN_B = 9
VEC_LAYER_BASE = 10
VEC_LAYER_STRIDE = 8        # per layer: ln1_g, ln1_b, bqkv, bo, ln2_g, ln2_b, b1, b2
NVEC = _r8(VEC_LAYER_BASE + NUM_LAYERS * VEC_LAYER_STRIDE)          # 26 -> 32

# ---- matrix-slab row offsets (every matrix at an 8-aligned row, lanes from 0) ----
MAT_IN_W = 0
MAT_OUT_W = MAT_IN_W + _r8(INPUT_DIM)                               # 8
MAT_JW = MAT_OUT_W + _r8(ATTN_DIM)                                  # 40
MAT_LAYER_BASE = MAT_JW + _r8(OUT_DIM)                              # 72
L_WQKV = 0
L_WO = L_WQKV + _r8(ATTN_DIM)                                       # 32
L_W1 = L_WO + _r8(ATTN_DIM)                                         # 64
L_W2 = L_W1 + _r8(ATTN_DIM)                                         # 96
MAT_LAYER_STRIDE = L_W2 + _r8(FFN_DIM)                              # 160
NMAT = MAT_LAYER_BASE + NUM_LAYERS * MAT_LAYER_STRIDE                # 392


# ----------------------------------------------------------------------------
# The single fused kernel (one grid step == one batch row)
# ----------------------------------------------------------------------------
def _fused_transducer_kernel(tl_ref, ul_ref,
                             x_ref, pe_ref, ep_ref, ohy_ref, vecs_ref, mat_ref,
                             o_ref, be_s, *, T, U1, U1P):
    b = pl.program_id(0)
    D, H, DH = ATTN_DIM, NUM_HEADS, HEAD_DIM
    scale = 1.0 / float(HEAD_DIM) ** 0.5

    vecs = vecs_ref[...]                               # (NVEC, 128): 4 vregs, loaded once

    def vrow(i, d):
        return vecs[i:i + 1, :d]                       # (1, d) static slice of the slab

    def layer_norm(z, g, beta):
        mu = jnp.mean(z, axis=-1, keepdims=True)
        var = jnp.mean((z - mu) ** 2, axis=-1, keepdims=True)
        return (z - mu) * lax.rsqrt(var + LN_EPS) * g + beta

    # ---------------- front-end: GlobalCMVN + input projection + PE --------------
    x = x_ref[0]                                       # (T, F)
    xn = (x - vrow(VEC_CMVN_MEAN, INPUT_DIM)) * vrow(VEC_CMVN_ISTD, INPUT_DIM)
    h = (jnp.dot(xn, mat_ref[MAT_IN_W:MAT_IN_W + INPUT_DIM, :D],
                 preferred_element_type=jnp.float32)
         + vrow(VEC_IN_B, D) + pe_ref[...])            # (T, D)

    # key-padding attention bias built from the prefetched length (no extra input)
    tl = jnp.clip(tl_ref[b], 1, T)                     # clamp: len==0 can't go OOB
    key_pos = lax.broadcasted_iota(jnp.int32, (1, T), 1)
    bias = jnp.where(key_pos < tl, 0.0, NEG_INF)       # (1, T)

    # ---------------- pre-norm transformer encoder layers (static unroll) --------
    for l in range(NUM_LAYERS):
        vb = VEC_LAYER_BASE + l * VEC_LAYER_STRIDE
        mb = MAT_LAYER_BASE + l * MAT_LAYER_STRIDE
        wqkv = mat_ref[mb + L_WQKV:mb + L_WQKV + D, :3 * D]
        wo = mat_ref[mb + L_WO:mb + L_WO + D, :D]
        w1 = mat_ref[mb + L_W1:mb + L_W1 + D, :FFN_DIM]
        w2 = mat_ref[mb + L_W2:mb + L_W2 + FFN_DIM, :D]

        # pre-norm + fused QKV projection (one (T,D)@(D,3D) matmul)
        xn1 = layer_norm(h, vrow(vb + 0, D), vrow(vb + 1, D))
        qkv = jnp.dot(xn1, wqkv, preferred_element_type=jnp.float32) + vrow(vb + 2, 3 * D)

        # multi-head self-attention; no explicit k.T, one fat output projection
        outs = []
        for hd in range(H):                            # static unroll, 4 heads
            q = qkv[:, hd * DH:(hd + 1) * DH]
            k = qkv[:, D + hd * DH:D + (hd + 1) * DH]
            v = qkv[:, 2 * D + hd * DH:2 * D + (hd + 1) * DH]
            s = lax.dot_general(q, k, (((1,), (1,)), ((), ())),
                                preferred_element_type=jnp.float32) * scale + bias
            m = jnp.max(s, axis=-1, keepdims=True)
            p = jnp.exp(s - m)
            p = p * pl.reciprocal(jnp.sum(p, axis=-1, keepdims=True), approx=True)
            outs.append(jnp.dot(p, v, preferred_element_type=jnp.float32))   # (T, DH)
        o_cat = jnp.concatenate(outs, axis=-1)         # (T, D)
        h = h + jnp.dot(o_cat, wo, preferred_element_type=jnp.float32) + vrow(vb + 3, D)

        # pre-norm + feed-forward + residual
        xn2 = layer_norm(h, vrow(vb + 4, D), vrow(vb + 5, D))
        ff = jnp.maximum(
            jnp.dot(xn2, w1, preferred_element_type=jnp.float32) + vrow(vb + 6, FFN_DIM),
            0.0)
        h = h + jnp.dot(ff, w2, preferred_element_type=jnp.float32) + vrow(vb + 7, D)

    # ---------------- encoder after-norm + output projection ---------------------
    hn = layer_norm(h, vrow(VEC_AFTER_G, D), vrow(VEC_AFTER_B, D))
    enc = (jnp.dot(hn, mat_ref[MAT_OUT_W:MAT_OUT_W + D, :OUT_DIM],
                   preferred_element_type=jnp.float32)
           + vrow(VEC_OUT_B, OUT_DIM))                 # (T, OUT)

    # ---------------- stateless predictor (context=2 causal conv + ReLU) ---------
    ep = ep_ref[0]                                     # (U1P, 2*OUT): [prev | emb]
    pred = jnp.maximum(
        ep[:, :OUT_DIM] * vrow(VEC_PRED_W0, OUT_DIM)
        + ep[:, OUT_DIM:] * vrow(VEC_PRED_W1, OUT_DIM)
        + vrow(VEC_PRED_B, OUT_DIM), 0.0)              # (U1P, OUT)

    # ---------------- joiner via broadcast + reshape (no selection matmuls) ------
    hj = jnp.tanh(enc[:, None, :] + pred[None, :, :]).reshape(T * U1P, OUT_DIM)
    logits = (jnp.dot(hj, mat_ref[MAT_JW:MAT_JW + OUT_DIM, :VPAD],
                      preferred_element_type=jnp.float32)
              + vrow(VEC_JOIN_B, VPAD))                # padded vocab lanes biased to -inf
    m = jnp.max(logits, axis=-1, keepdims=True)
    z = logits - m
    lp = z - jnp.log(jnp.sum(jnp.exp(z), axis=-1, keepdims=True))    # (T*U1P, VPAD)

    ohy_b = jnp.broadcast_to(ohy_ref[0][None, :, :],
                             (T, U1P, VPAD)).reshape(T * U1P, VPAD)
    blank = lp[:, 0:1]                                                # (T*U1P, 1)
    emit = jnp.sum(lp * ohy_b, axis=-1, keepdims=True)                # (T*U1P, 1)
    be_s[...] = jnp.concatenate([blank, emit], axis=-1)               # single store

    # ---------------- RNN-T forward-variable (alpha) DP --------------------------
    sub_u = lax.broadcasted_iota(jnp.int32, (U1P, 1), 0)

    def be_block(t):
        start = t * U1P
        if not isinstance(start, int):
            start = pl.multiple_of(start, U1P)         # aligned 8-sublane slice
        blk = be_s[pl.ds(start, U1P), :]               # (U1P, 2)
        return blk[:, 0:1], blk[:, 1:2]

    def row_update(fb, em):
        # new[0] = fb[0]; new[j] = logaddexp(fb[j], new[j-1] + em[j-1])
        carry = fb[0:1, :]
        new = fb
        for j in range(1, U1):                         # static unroll over real labels
            stay = carry + em[j - 1:j, :]
            cand = fb[j:j + 1, :]
            mx = jnp.maximum(cand, stay)
            carry = mx + jnp.log(jnp.exp(cand - mx) + jnp.exp(stay - mx))
            new = jnp.where(sub_u == j, carry, new)
        return new

    _, em0 = be_block(0)
    fb0 = jnp.where(sub_u == 0, 0.0, NEG_INF)          # alpha[0, 0] = 0
    row0 = row_update(fb0, em0)

    def t_body(t, row):
        bl_prev, _ = be_block(t - 1)
        _, em_t = be_block(t)
        return row_update(row + bl_prev, em_t)

    row_last = lax.fori_loop(1, tl, t_body, row0)      # alpha[tl-1, :]
    bl_last, _ = be_block(tl - 1)
    final_vec = row_last + bl_last                     # (U1P, 1)
    ul = jnp.clip(ul_ref[b], 0, U1 - 1)
    ll = jnp.sum(jnp.where(sub_u == ul, final_vec, 0.0), axis=0, keepdims=True)  # (1,1)
    o_ref[0] = jnp.zeros((1, VPAD), jnp.float32) - ll  # lane-dense per-batch -log p


# ----------------------------------------------------------------------------
# Parameter slabs (built once, outside the kernel; includes the QKV concat)
# ----------------------------------------------------------------------------
def _prepare_slabs(params):
    vecs = jnp.zeros((NVEC, 128), jnp.float32)

    def setv(vs, i, v):
        v = jnp.asarray(v, jnp.float32).reshape(-1)
        return vs.at[i, :v.shape[0]].set(v)

    vecs = setv(vecs, VEC_CMVN_MEAN, params["cmvn_mean"])
    vecs = setv(vecs, VEC_CMVN_ISTD, params["cmvn_istd"])
    vecs = setv(vecs, VEC_IN_B, params["in_b"])
    vecs = setv(vecs, VEC_AFTER_G, params["after_ln_g"])
    vecs = setv(vecs, VEC_AFTER_B, params["after_ln_b"])
    vecs = setv(vecs, VEC_OUT_B, params["out_b"])
    vecs = setv(vecs, VEC_PRED_W0, params["pred_w0"])
    vecs = setv(vecs, VEC_PRED_W1, params["pred_w1"])
    vecs = setv(vecs, VEC_PRED_B, params["pred_b"])
    vecs = vecs.at[VEC_JOIN_B, :].set(NEG_INF)          # padded vocab lanes -> -inf
    vecs = vecs.at[VEC_JOIN_B, :VOCAB].set(params["join_b"].reshape(-1))
    for l, lp in enumerate(params["layers"]):
        vb = VEC_LAYER_BASE + l * VEC_LAYER_STRIDE
        vecs = setv(vecs, vb + 0, lp["ln1_g"])
        vecs = setv(vecs, vb + 1, lp["ln1_b"])
        vecs = setv(vecs, vb + 2, jnp.concatenate([lp["bq"], lp["bk"], lp["bv"]], axis=1))
        vecs = setv(vecs, vb + 3, lp["bo"])
        vecs = setv(vecs, vb + 4, lp["ln2_g"])
        vecs = setv(vecs, vb + 5, lp["ln2_b"])
        vecs = setv(vecs, vb + 6, lp["b1"])
        vecs = setv(vecs, vb + 7, lp["b2"])

    mats = jnp.zeros((NMAT, 128), jnp.float32)

    def setm(ms, r, a):
        a = jnp.asarray(a, jnp.float32)
        return ms.at[r:r + a.shape[0], :a.shape[1]].set(a)

    mats = setm(mats, MAT_IN_W, params["in_w"])
    mats = setm(mats, MAT_OUT_W, params["out_w"])
    mats = setm(mats, MAT_JW, params["join_w"])          # zero-padded to 128 lanes
    for l, lp in enumerate(params["layers"]):
        mb = MAT_LAYER_BASE + l * MAT_LAYER_STRIDE
        mats = setm(mats, mb + L_WQKV,
                    jnp.concatenate([lp["wq"], lp["wk"], lp["wv"]], axis=1))
        mats = setm(mats, mb + L_WO, lp["wo"])
        mats = setm(mats, mb + L_W1, lp["w1"])
        mats = setm(mats, mb + L_W2, lp["w2"])
    return vecs, mats


def sinusoidal_pe(T, D):
    pos = jnp.arange(T, dtype=jnp.float32)[:, None]
    div = jnp.exp(jnp.arange(0, D, 2, dtype=jnp.float32) * (-jnp.log(10000.0) / D))
    pe = jnp.zeros((T, D), jnp.float32)
    pe = pe.at[:, 0::2].set(jnp.sin(pos * div))
    pe = pe.at[:, 1::2].set(jnp.cos(pos * div))
    return pe


# ----------------------------------------------------------------------------
# Forward pass: tiny XLA glue (embedding gather, one-hot, mean) + 1 pallas_call
# ----------------------------------------------------------------------------
def transducer_forward(params, x, x_lens, y, y_lens):
    # TODO(synk): the reference EncoderTransformer's conv-subsampling config is not
    # provided; a length-preserving linear front-end + sinusoidal PE is used instead.
    B, T, F = x.shape
    U = y.shape[1]
    U1 = U + 1
    U1P = _r8(U1)

    vecs, mats = _prepare_slabs(params)
    pe = sinusoidal_pe(T, ATTN_DIM)

    # TODO(synk): embedding lookup kept as a tiny XLA gather; everything downstream
    # runs inside the single fused Pallas kernel.
    sos_y = jnp.concatenate([jnp.zeros((B, 1), jnp.int32), y.astype(jnp.int32)], axis=1)
    emb = jnp.take(params["embed"], sos_y, axis=0)                        # (B, U1, OUT)
    prev = jnp.concatenate([jnp.zeros((B, 1, OUT_DIM), jnp.float32), emb[:, :-1]], axis=1)
    pad_u = U1P - U1
    ep = jnp.concatenate([
        jnp.pad(prev, ((0, 0), (0, pad_u), (0, 0))),
        jnp.pad(emb, ((0, 0), (0, pad_u), (0, 0))),
    ], axis=-1)                                                           # (B, U1P, 2*OUT)
    ohy = jnp.pad(jax.nn.one_hot(y, VPAD, dtype=jnp.float32),
                  ((0, 0), (0, U1P - U), (0, 0)))                         # (B, U1P, VPAD)

    kern = functools.partial(_fused_transducer_kernel, T=T, U1=U1, U1P=U1P)
    gs = pltpu.PrefetchScalarGridSpec(
        num_scalar_prefetch=2,
        grid=(B,),
        in_specs=[pl.BlockSpec((1, T, INPUT_DIM), lambda b, *_: (b, 0, 0)),
                  pl.BlockSpec((T, ATTN_DIM), lambda b, *_: (0, 0)),
                  pl.BlockSpec((1, U1P, 2 * OUT_DIM), lambda b, *_: (b, 0, 0)),
                  pl.BlockSpec((1, U1P, VPAD), lambda b, *_: (b, 0, 0)),
                  pl.BlockSpec((NVEC, 128), lambda b, *_: (0, 0)),
                  pl.BlockSpec((NMAT, 128), lambda b, *_: (0, 0))],
        out_specs=pl.BlockSpec((1, 1, VPAD), lambda b, *_: (b, 0, 0)),
        scratch_shapes=[pltpu.VMEM((T * U1P, 2), jnp.float32)],
    )
    out = pl.pallas_call(
        kern,
        out_shape=jax.ShapeDtypeStruct((B, 1, VPAD), jnp.float32),
        grid_spec=gs,
        compiler_params=pltpu.CompilerParams(dimension_semantics=("parallel",)),
    )(x_lens.astype(jnp.int32), y_lens.astype(jnp.int32),
      x, pe, ep, ohy, vecs, mats)
    return jnp.mean(out[:, 0, 0])


# ----------------------------------------------------------------------------
# Deterministic parameter init (synthetic weights, shapes from __init__)
# ----------------------------------------------------------------------------
def init_params(seed=0):
    key = jax.random.PRNGKey(seed)

    def nxt():
        nonlocal key
        key, sub = jax.random.split(key)
        return sub

    def dense(shape, scale=0.05):
        return scale * jax.random.normal(nxt(), shape, dtype=jnp.float32)

    params = {
        "cmvn_mean": dense((1, INPUT_DIM), 0.5),
        "cmvn_istd": 1.0 / (1.0 + jnp.abs(dense((1, INPUT_DIM), 0.5))),
        "in_w": dense((INPUT_DIM, ATTN_DIM)),
        "in_b": jnp.zeros((1, ATTN_DIM), jnp.float32),
        "after_ln_g": jnp.ones((1, ATTN_DIM), jnp.float32),
        "after_ln_b": jnp.zeros((1, ATTN_DIM), jnp.float32),
        "out_w": dense((ATTN_DIM, OUT_DIM)),
        "out_b": jnp.zeros((1, OUT_DIM), jnp.float32),
        "embed": dense((VOCAB, OUT_DIM)),
        "pred_w0": dense((1, OUT_DIM), 0.2),
        "pred_w1": dense((1, OUT_DIM), 0.2),
        "pred_b": jnp.zeros((1, OUT_DIM), jnp.float32),
        "join_w": dense((OUT_DIM, VOCAB)),
        "join_b": jnp.zeros((1, VOCAB), jnp.float32),
        "layers": [],
    }
    for _ in range(NUM_LAYERS):
        params["layers"].append({
            "ln1_g": jnp.ones((1, ATTN_DIM), jnp.float32),
            "ln1_b": jnp.zeros((1, ATTN_DIM), jnp.float32),
            "wq": dense((ATTN_DIM, ATTN_DIM)),
            "bq": jnp.zeros((1, ATTN_DIM), jnp.float32),
            "wk": dense((ATTN_DIM, ATTN_DIM)),
            "bk": jnp.zeros((1, ATTN_DIM), jnp.float32),
            "wv": dense((ATTN_DIM, ATTN_DIM)),
            "bv": jnp.zeros((1, ATTN_DIM), jnp.float32),
            "wo": dense((ATTN_DIM, ATTN_DIM)),
            "bo": jnp.zeros((1, ATTN_DIM), jnp.float32),
            "ln2_g": jnp.ones((1, ATTN_DIM), jnp.float32),
            "ln2_b": jnp.zeros((1, ATTN_DIM), jnp.float32),
            "w1": dense((ATTN_DIM, FFN_DIM)),
            "b1": jnp.zeros((1, FFN_DIM), jnp.float32),
            "w2": dense((FFN_DIM, ATTN_DIM)),
            "b2": jnp.zeros((1, ATTN_DIM), jnp.float32),
        })
    return params


# ----------------------------------------------------------------------------
if __name__ == "__main__":
    B, T, U = 2, 16, 4
    key = jax.random.PRNGKey(0)
    kx, ky = jax.random.split(key)

    x = jax.random.normal(kx, (B, T, INPUT_DIM), dtype=jnp.float32)
    x_lens = jnp.array([16, 12], dtype=jnp.int32)
    y = jax.random.randint(ky, (B, U), 1, VOCAB, dtype=jnp.int32)
    y_lens = jnp.array([4, 3], dtype=jnp.int32)

    params = init_params(0)
    loss_fn = jax.jit(transducer_forward)
    loss = loss_fn(params, x, x_lens, y, y_lens)
    loss = jax.block_until_ready(loss)

    assert loss.shape == () and bool(jnp.isfinite(loss)), f"bad loss: {loss}"
    print("KERNEL_OK")
</pallas_src>

<mosaic_0001>
module attributes {stable_mosaic.version = 11 : i64} {
  func.func @_fused_transducer_kernel(%arg0: i32, %arg1: memref<2xi32, #tpu.memory_space<smem>>, %arg2: memref<2xi32, #tpu.memory_space<smem>>, %arg3: memref<1x16x8xf32, #tpu.memory_space<vmem>>, %arg4: memref<16x32xf32, #tpu.memory_space<vmem>>, %arg5: memref<1x8x64xf32, #tpu.memory_space<vmem>>, %arg6: memref<1x8x128xf32, #tpu.memory_space<vmem>>, %arg7: memref<32x128xf32, #tpu.memory_space<vmem>>, %arg8: memref<392x128xf32, #tpu.memory_space<vmem>>, %arg9: memref<1x1x128xf32, #tpu.memory_space<vmem>>, %arg10: memref<128x2xf32, #tpu.memory_space<vmem>>) attributes {dimension_semantics = [#tpu.dimension_semantics<parallel>], iteration_bounds = array<i64: 2>, scalar_prefetch = 2 : i64, scratch_operands = 1 : i64, tpu.core_type = #tpu.core_type<tc>, window_params = [{transform_indices = @transform_0, window_bounds = array<i64: 1, 16, 8>}, {pipeline_mode = #tpu.pipeline_mode<synchronous>, transform_indices = @transform_1, window_bounds = array<i64: 16, 32>}, {transform_indices = @transform_2, window_bounds = array<i64: 1, 8, 64>}, {transform_indices = @transform_3, window_bounds = array<i64: 1, 8, 128>}, {pipeline_mode = #tpu.pipeline_mode<synchronous>, transform_indices = @transform_4, window_bounds = array<i64: 32, 128>}, {pipeline_mode = #tpu.pipeline_mode<synchronous>, transform_indices = @transform_5, window_bounds = array<i64: 392, 128>}, {transform_indices = @transform_6, window_bounds = array<i64: 1, 1, 128>}]} {
    %c0 = arith.constant 0 : index
    %c0_0 = arith.constant 0 : index
    %0 = vector.load %arg7[%c0, %c0_0] : memref<32x128xf32, #tpu.memory_space<vmem>>, vector<32x128xf32>
    %c0_1 = arith.constant 0 : index
    %c0_2 = arith.constant 0 : index
    %c0_3 = arith.constant 0 : index
    %1 = vector.load %arg3[%c0_1, %c0_2, %c0_3] : memref<1x16x8xf32, #tpu.memory_space<vmem>>, vector<1x16x8xf32>
    %2 = vector.shape_cast %1 : vector<1x16x8xf32> to vector<16x8xf32>
    %3 = vector.extract_strided_slice %0 {offsets = [0, 0], sizes = [1, 8], strides = [1, 1]} : vector<32x128xf32> to vector<1x8xf32>
    %4 = vector.broadcast %3 : vector<1x8xf32> to vector<16x8xf32>
    %5 = arith.subf %2, %4 : vector<16x8xf32>
    %6 = vector.extract_strided_slice %0 {offsets = [1, 0], sizes = [1, 8], strides = [1, 1]} : vector<32x128xf32> to vector<1x8xf32>
    %7 = vector.broadcast %6 : vector<1x8xf32> to vector<16x8xf32>
    %8 = arith.mulf %5, %7 : vector<16x8xf32>
    %c0_4 = arith.constant 0 : index
    %c0_5 = arith.constant 0 : index
    %9 = vector.load %arg8[%c0_4, %c0_5] : memref<392x128xf32, #tpu.memory_space<vmem>>, vector<8x32xf32>
    %cst = arith.constant dense<0.000000e+00> : vector<16x32xf32>
    %10 = tpu.matmul %8, %9, %cst {dimension_numbers = #tpu.dot_dimension_numbers<[1], [0], [0], [1], [0, 0, 1, 1], [], []>} : vector<16x8xf32>, vector<8x32xf32>, vector<16x32xf32> -> vector<16x32xf32>
    %11 = vector.extract_strided_slice %0 {offsets = [2, 0], sizes = [1, 32], strides = [1, 1]} : vector<32x128xf32> to vector<1x32xf32>
    %12 = vector.broadcast %11 : vector<1x32xf32> to vector<16x32xf32>
    %13 = arith.addf %10, %12 : vector<16x32xf32>
    %c0_6 = arith.constant 0 : index
    %c0_7 = arith.constant 0 : index
    %14 = vector.load %arg4[%c0_6, %c0_7] : memref<16x32xf32, #tpu.memory_space<vmem>>, vector<16x32xf32>
    %15 = arith.addf %13, %14 : vector<16x32xf32>
    %16 = arith.index_cast %arg0 : i32 to index
    %17 = memref.load %arg1[%16] : memref<2xi32, #tpu.memory_space<smem>>
    %c1_i32 = arith.constant 1 : i32
    %c16_i32 = arith.constant 16 : i32
    %18 = arith.maxsi %c1_i32, %17 : i32
    %19 = arith.minsi %c16_i32, %18 : i32
    %20 = tpu.iota {dimensions = array<i32: 1>} : vector<1x16xi32>
    %21 = vector.broadcast %19 : i32 to vector<1x16xi32>
    %22 = arith.cmpi slt, %20, %21 : vector<1x16xi32>
    %cst_8 = arith.constant 0.000000e+00 : f32
    %cst_9 = arith.constant -1.000000e+30 : f32
    %23 = vector.broadcast %cst_8 : f32 to vector<1x16xf32>
    %24 = vector.broadcast %cst_9 : f32 to vector<1x16xf32>
    %25 = arith.select %22, %23, %24 : vector<1x16xi1>, vector<1x16xf32>
    %c72 = arith.constant 72 : index
    %c0_10 = arith.constant 0 : index
    %26 = vector.load %arg8[%c72, %c0_10] : memref<392x128xf32, #tpu.memory_space<vmem>>, vector<32x96xf32>
    %c104 = arith.constant 104 : index
    %c0_11 = arith.constant 0 : index
    %27 = vector.load %arg8[%c104, %c0_11] : memref<392x128xf32, #tpu.memory_space<vmem>>, vector<32x32xf32>
    %c136 = arith.constant 136 : index
    %c0_12 = arith.constant 0 : index
    %28 = vector.load %arg8[%c136, %c0_12] : memref<392x128xf32, #tpu.memory_space<vmem>>, vector<32x64xf32>
    %c168 = arith.constant 168 : index
    %c0_13 = arith.constant 0 : index
    %29 = vector.load %arg8[%c168, %c0_13] : memref<392x128xf32, #tpu.memory_space<vmem>>, vector<64x32xf32>
    %30 = vector.extract_strided_slice %0 {offsets = [10, 0], sizes = [1, 32], strides = [1, 1]} : vector<32x128xf32> to vector<1x32xf32>
    %31 = vector.extract_strided_slice %0 {offsets = [11, 0], sizes = [1, 32], strides = [1, 1]} : vector<32x128xf32> to vector<1x32xf32>
    %cst_14 = arith.constant dense<0.000000e+00> : vector<16xf32>
    %32 = vector.multi_reduction <add>, %15, %cst_14 [1] : vector<16x32xf32> to vector<16xf32>
    %33 = vector.shape_cast %32 : vector<16xf32> to vector<16x1xf32>
    %cst_15 = arith.constant 3.200000e+01 : f32
    %34 = vector.broadcast %cst_15 : f32 to vector<16x1xf32>
    %35 = arith.divf %33, %34 : vector<16x1xf32>
    %36 = vector.broadcast %35 : vector<16x1xf32> to vector<16x32xf32>
    %37 = arith.subf %15, %36 : vector<16x32xf32>
    %38 = arith.mulf %37, %37 : vector<16x32xf32>
    %cst_16 = arith.constant dense<0.000000e+00> : vector<16xf32>
    %39 = vector.multi_reduction <add>, %38, %cst_16 [1] : vector<16x32xf32> to vector<16xf32>
    %40 = vector.shape_cast %39 : vector<16xf32> to vector<16x1xf32>
    %cst_17 = arith.constant 3.200000e+01 : f32
    %41 = vector.broadcast %cst_17 : f32 to vector<16x1xf32>
    %42 = arith.divf %40, %41 : vector<16x1xf32>
    %43 = vector.broadcast %35 : vector<16x1xf32> to vector<16x32xf32>
    %44 = arith.subf %15, %43 : vector<16x32xf32>
    %cst_18 = arith.constant 9.99999974E-6 : f32
    %45 = vector.broadcast %cst_18 : f32 to vector<16x1xf32>
    %46 = arith.addf %42, %45 : vector<16x1xf32>
    %47 = math.rsqrt %46 : vector<16x1xf32>
    %48 = vector.broadcast %47 : vector<16x1xf32> to vector<16x32xf32>
    %49 = arith.mulf %44, %48 : vector<16x32xf32>
    %50 = vector.broadcast %30 : vector<1x32xf32> to vector<16x32xf32>
    %51 = arith.mulf %49, %50 : vector<16x32xf32>
    %52 = vector.broadcast %31 : vector<1x32xf32> to vector<16x32xf32>
    %53 = arith.addf %51, %52 : vector<16x32xf32>
    %cst_19 = arith.constant dense<0.000000e+00> : vector<16x96xf32>
    %54 = tpu.matmul %53, %26, %cst_19 {dimension_numbers = #tpu.dot_dimension_numbers<[1], [0], [0], [1], [0, 0, 1, 1], [], []>} : vector<16x32xf32>, vector<32x96xf32>, vector<16x96xf32> -> vector<16x96xf32>
    %55 = vector.extract_strided_slice %0 {offsets = [12, 0], sizes = [1, 96], strides = [1, 1]} : vector<32x128xf32> to vector<1x96xf32>
    %56 = vector.broadcast %55 : vector<1x96xf32> to vector<16x96xf32>
    %57 = arith.addf %54, %56 : vector<16x96xf32>
    %58 = vector.extract_strided_slice %57 {offsets = [0, 0], sizes = [16, 8], strides = [1, 1]} : vector<16x96xf32> to vector<16x8xf32>
    %59 = vector.extract_strided_slice %57 {offsets = [0, 32], sizes = [16, 8], strides = [1, 1]} : vector<16x96xf32> to vector<16x8xf32>
    %60 = vector.extract_strided_slice %57 {offsets = [0, 64], sizes = [16, 8], strides = [1, 1]} : vector<16x96xf32> to vector<16x8xf32>
    %cst_20 = arith.constant dense<0.000000e+00> : vector<16x16xf32>
    %61 = tpu.matmul %58, %59, %cst_20 {dimension_numbers = #tpu.dot_dimension_numbers<[1], [1], [0], [0], [0, 0, 1, 0], [], []>} : vector<16x8xf32>, vector<16x8xf32>, vector<16x16xf32> -> vector<16x16xf32>
    %cst_21 = arith.constant 0.353553385 : f32
    %62 = vector.broadcast %cst_21 : f32 to vector<16x16xf32>
    %63 = arith.mulf %61, %62 : vector<16x16xf32>
    %64 = vector.broadcast %25 : vector<1x16xf32> to vector<16x16xf32>
    %65 = arith.addf %63, %64 : vector<16x16xf32>
    %cst_22 = arith.constant dense<0xFF800000> : vector<16xf32>
    %66 = vector.multi_reduction <maximumf>, %65, %cst_22 [1] : vector<16x16xf32> to vector<16xf32>
    %67 = vector.shape_cast %66 : vector<16xf32> to vector<16x1xf32>
    %68 = vector.broadcast %67 : vector<16x1xf32> to vector<16x16xf32>
    %69 = arith.subf %65, %68 : vector<16x16xf32>
    %70 = math.exp %69 : vector<16x16xf32>
    %cst_23 = arith.constant dense<0.000000e+00> : vector<16xf32>
    %71 = vector.multi_reduction <add>, %70, %cst_23 [1] : vector<16x16xf32> to vector<16xf32>
    %72 = vector.shape_cast %71 : vector<16xf32> to vector<16x1xf32>
    %73 = tpu.reciprocal %72 {approx = true} : vector<16x1xf32> -> vector<16x1xf32>
    %74 = vector.broadcast %73 : vector<16x1xf32> to vector<16x16xf32>
    %75 = arith.mulf %70, %74 : vector<16x16xf32>
    %cst_24 = arith.constant dense<0.000000e+00> : vector<16x8xf32>
    %76 = tpu.matmul %75, %60, %cst_24 {dimension_numbers = #tpu.dot_dimension_numbers<[1], [0], [0], [1], [0, 0, 1, 1], [], []>} : vector<16x16xf32>, vector<16x8xf32>, vector<16x8xf32> -> vector<16x8xf32>
    %77 = vector.extract_strided_slice %57 {offsets = [0, 8], sizes = [16, 8], strides = [1, 1]} : vector<16x96xf32> to vector<16x8xf32>
    %78 = vector.extract_strided_slice %57 {offsets = [0, 40], sizes = [16, 8], strides = [1, 1]} : vector<16x96xf32> to vector<16x8xf32>
    %79 = vector.extract_strided_slice %57 {offsets = [0, 72], sizes = [16, 8], strides = [1, 1]} : vector<16x96xf32> to vector<16x8xf32>
    %cst_25 = arith.constant dense<0.000000e+00> : vector<16x16xf32>
    %80 = tpu.matmul %77, %78, %cst_25 {dimension_numbers = #tpu.dot_dimension_numbers<[1], [1], [0], [0], [0, 0, 1, 0], [], []>} : vector<16x8xf32>, vector<16x8xf32>, vector<16x16xf32> -> vector<16x16xf32>
    %cst_26 = arith.constant 0.353553385 : f32
    %81 = vector.broadcast %cst_26 : f32 to vector<16x16xf32>
    %82 = arith.mulf %80, %81 : vector<16x16xf32>
    %83 = vector.broadcast %25 : vector<1x16xf32> to vector<16x16xf32>
    %84 = arith.addf %82, %83 : vector<16x16xf32>
    %cst_27 = arith.constant dense<0xFF800000> : vector<16xf32>
    %85 = vector.multi_reduction <maximumf>, %84, %cst_27 [1] : vector<16x16xf32> to vector<16xf32>
    %86 = vector.shape_cast %85 : vector<16xf32> to vector<16x1xf32>
    %87 = vector.broadcast %86 : vector<16x1xf32> to vector<16x16xf32>
    %88 = arith.subf %84, %87 : vector<16x16xf32>
    %89 = math.exp %88 : vector<16x16xf32>
    %cst_28 = arith.constant dense<0.000000e+00> : vector<16xf32>
    %90 = vector.multi_reduction <add>, %89, %cst_28 [1] : vector<16x16xf32> to vector<16xf32>
    %91 = vector.shape_cast %90 : vector<16xf32> to vector<16x1xf32>
    %92 = tpu.reciprocal %91 {approx = true} : vector<16x1xf32> -> vector<16x1xf32>
    %93 = vector.broadcast %92 : vector<16x1xf32> to vector<16x16xf32>
    %94 = arith.mulf %89, %93 : vector<16x16xf32>
    %cst_29 = arith.constant dense<0.000000e+00> : vector<16x8xf32>
    %95 = tpu.matmul %94, %79, %cst_29 {dimension_numbers = #tpu.dot_dimension_numbers<[1], [0], [0], [1], [0, 0, 1, 1], [], []>} : vector<16x16xf32>, vector<16x8xf32>, vector<16x8xf32> -> vector<16x8xf32>
    %96 = vector.extract_strided_slice %57 {offsets = [0, 16], sizes = [16, 8], strides = [1, 1]} : vector<16x96xf32> to vector<16x8xf32>
    %97 = vector.extract_strided_slice %57 {offsets = [0, 48], sizes = [16, 8], strides = [1, 1]} : vector<16x96xf32> to vector<16x8xf32>
    %98 = vector.extract_strided_slice %57 {offsets = [0, 80], sizes = [16, 8], strides = [1, 1]} : vector<16x96xf32> to vector<16x8xf32>
    %cst_30 = arith.constant dense<0.000000e+00> : vector<16x16xf32>
    %99 = tpu.matmul %96, %97, %cst_30 {dimension_numbers = #tpu.dot_dimension_numbers<[1], [1], [0], [0], [0, 0, 1, 0], [], []>} : vector<16x8xf32>, vector<16x8xf32>, vector<16x16xf32> -> vector<16x16xf32>
    %cst_31 = arith.constant 0.353553385 : f32
    %100 = vector.broadcast %cst_31 : f32 to vector<16x16xf32>
    %101 = arith.mulf %99, %100 : vector<16x16xf32>
    %102 = vector.broadcast %25 : vector<1x16xf32> to vector<16x16xf32>
    %103 = arith.addf %101, %102 : vector<16x16xf32>
    %cst_32 = arith.constant dense<0xFF800000> : vector<16xf32>
    %104 = vector.multi_reduction <maximumf>, %103, %cst_32 [1] : vector<16x16xf32> to vector<16xf32>
    %105 = vector.shape_cast %104 : vector<16xf32> to vector<16x1xf32>
    %106 = vector.broadcast %105 : vector<16x1xf32> to vector<16x16xf32>
    %107 = arith.subf %103, %106 : vector<16x16xf32>
    %108 = math.exp %107 : vector<16x16xf32>
    %cst_33 = arith.constant dense<0.000000e+00> : vector<16xf32>
    %109 = vector.multi_reduction <add>, %108, %cst_33 [1] : vector<16x16xf32> to vector<16xf32>
    %110 = vector.shape_cast %109 : vector<16xf32> to vector<16x1xf32>
    %111 = tpu.reciprocal %110 {approx = true} : vector<16x1xf32> -> vector<16x1xf32>
    %112 = vector.broadcast %111 : vector<16x1xf32> to vector<16x16xf32>
    %113 = arith.mulf %108, %112 : vector<16x16xf32>
    %cst_34 = arith.constant dense<0.000000e+00> : vector<16x8xf32>
    %114 = tpu.matmul %113, %98, %cst_34 {dimension_numbers = #tpu.dot_dimension_numbers<[1], [0], [0], [1], [0, 0, 1, 1], [], []>} : vector<16x16xf32>, vector<16x8xf32>, vector<16x8xf32> -> vector<16x8xf32>
    %115 = vector.extract_strided_slice %57 {offsets = [0, 24], sizes = [16, 8], strides = [1, 1]} : vector<16x96xf32> to vector<16x8xf32>
    %116 = vector.extract_strided_slice %57 {offsets = [0, 56], sizes = [16, 8], strides = [1, 1]} : vector<16x96xf32> to vector<16x8xf32>
    %117 = vector.extract_strided_slice %57 {offsets = [0, 88], sizes = [16, 8], strides = [1, 1]} : vector<16x96xf32> to vector<16x8xf32>
    %cst_35 = arith.constant dense<0.000000e+00> : vector<16x16xf32>
    %118 = tpu.matmul %115, %116, %cst_35 {dimension_numbers = #tpu.dot_dimension_numbers<[1], [1], [0], [0], [0, 0, 1, 0], [], []>} : vector<16x8xf32>, vector<16x8xf32>, vector<16x16xf32> -> vector<16x16xf32>
    %cst_36 = arith.constant 0.353553385 : f32
    %119 = vector.broadcast %cst_36 : f32 to vector<16x16xf32>
    %120 = arith.mulf %118, %119 : vector<16x16xf32>
    %121 = vector.broadcast %25 : vector<1x16xf32> to vector<16x16xf32>
    %122 = arith.addf %120, %121 : vector<16x16xf32>
    %cst_37 = arith.constant dense<0xFF800000> : vector<16xf32>
    %123 = vector.multi_reduction <maximumf>, %122, %cst_37 [1] : vector<16x16xf32> to vector<16xf32>
    %124 = vector.shape_cast %123 : vector<16xf32> to vector<16x1xf32>
    %125 = vector.broadcast %124 : vector<16x1xf32> to vector<16x16xf32>
    %126 = arith.subf %122, %125 : vector<16x16xf32>
    %127 = math.exp %126 : vector<16x16xf32>
    %cst_38 = arith.constant dense<0.000000e+00> : vector<16xf32>
    %128 = vector.multi_reduction <add>, %127, %cst_38 [1] : vector<16x16xf32> to vector<16xf32>
    %129 = vector.shape_cast %128 : vector<16xf32> to vector<16x1xf32>
    %130 = tpu.reciprocal %129 {approx = true} : vector<16x1xf32> -> vector<16x1xf32>
    %131 = vector.broadcast %130 : vector<16x1xf32> to vector<16x16xf32>
    %132 = arith.mulf %127, %131 : vector<16x16xf32>
    %cst_39 = arith.constant dense<0.000000e+00> : vector<16x8xf32>
    %133 = tpu.matmul %132, %117, %cst_39 {dimension_numbers = #tpu.dot_dimension_numbers<[1], [0], [0], [1], [0, 0, 1, 1], [], []>} : vector<16x16xf32>, vector<16x8xf32>, vector<16x8xf32> -> vector<16x8xf32>
    %134 = tpu.concatenate %76, %95, %114, %133 in 1 : vector<16x8xf32>, vector<16x8xf32>, vector<16x8xf32>, vector<16x8xf32> -> vector<16x32xf32>
    %cst_40 = arith.constant dense<0.000000e+00> : vector<16x32xf32>
    %135 = tpu.matmul %134, %27, %cst_40 {dimension_numbers = #tpu.dot_dimension_numbers<[1], [0], [0], [1], [0, 0, 1, 1], [], []>} : vector<16x32xf32>, vector<32x32xf32>, vector<16x32xf32> -> vector<16x32xf32>
    %136 = arith.addf %15, %135 : vector<16x32xf32>
    %137 = vector.extract_strided_slice %0 {offsets = [13, 0], sizes = [1, 32], strides = [1, 1]} : vector<32x128xf32> to vector<1x32xf32>
    %138 = vector.broadcast %137 : vector<1x32xf32> to vector<16x32xf32>
    %139 = arith.addf %136, %138 : vector<16x32xf32>
    %140 = vector.extract_strided_slice %0 {offsets = [14, 0], sizes = [1, 32], strides = [1, 1]} : vector<32x128xf32> to vector<1x32xf32>
    %141 = vector.extract_strided_slice %0 {offsets = [15, 0], sizes = [1, 32], strides = [1, 1]} : vector<32x128xf32> to vector<1x32xf32>
    %cst_41 = arith.constant dense<0.000000e+00> : vector<16xf32>
    %142 = vector.multi_reduction <add>, %139, %cst_41 [1] : vector<16x32xf32> to vector<16xf32>
    %143 = vector.shape_cast %142 : vector<16xf32> to vector<16x1xf32>
    %cst_42 = arith.constant 3.200000e+01 : f32
    %144 = vector.broadcast %cst_42 : f32 to vector<16x1xf32>
    %145 = arith.divf %143, %144 : vector<16x1xf32>
    %146 = vector.broadcast %145 : vector<16x1xf32> to vector<16x32xf32>
    %147 = arith.subf %139, %146 : vector<16x32xf32>
    %148 = arith.mulf %147, %147 : vector<16x32xf32>
    %cst_43 = arith.constant dense<0.000000e+00> : vector<16xf32>
    %149 = vector.multi_reduction <add>, %148, %cst_43 [1] : vector<16x32xf32> to vector<16xf32>
    %150 = vector.shape_cast %149 : vector<16xf32> to vector<16x1xf32>
    %cst_44 = arith.constant 3.200000e+01 : f32
    %151 = vector.broadcast %cst_44 : f32 to vector<16x1xf32>
    %152 = arith.divf %150, %151 : vector<16x1xf32>
    %153 = vector.broadcast %145 : vector<16x1xf32> to vector<16x32xf32>
    %154 = arith.subf %139, %153 : vector<16x32xf32>
    %cst_45 = arith.constant 9.99999974E-6 : f32
    %155 = vector.broadcast %cst_45 : f32 to vector<16x1xf32>
    %156 = arith.addf %152, %155 : vector<16x1xf32>
    %157 = math.rsqrt %156 : vector<16x1xf32>
    %158 = vector.broadcast %157 : vector<16x1xf32> to vector<16x32xf32>
    %159 = arith.mulf %154, %158 : vector<16x32xf32>
    %160 = vector.broadcast %140 : vector<1x32xf32> to vector<16x32xf32>
    %161 = arith.mulf %159, %160 : vector<16x32xf32>
    %162 = vector.broadcast %141 : vector<1x32xf32> to vector<16x32xf32>
    %163 = arith.addf %161, %162 : vector<16x32xf32>
    %cst_46 = arith.constant dense<0.000000e+00> : vector<16x64xf32>
    %164 = tpu.matmul %163, %28, %cst_46 {dimension_numbers = #tpu.dot_dimension_numbers<[1], [0], [0], [1], [0, 0, 1, 1], [], []>} : vector<16x32xf32>, vector<32x64xf32>, vector<16x64xf32> -> vector<16x64xf32>
    %165 = vector.extract_strided_slice %0 {offsets = [16, 0], sizes = [1, 64], strides = [1, 1]} : vector<32x128xf32> to vector<1x64xf32>
    %166 = vector.broadcast %165 : vector<1x64xf32> to vector<16x64xf32>
    %167 = arith.addf %164, %166 : vector<16x64xf32>
    %cst_47 = arith.constant 0.000000e+00 : f32
    %168 = vector.broadcast %cst_47 : f32 to vector<16x64xf32>
    %169 = arith.maximumf %167, %168 : vector<16x64xf32>
    %cst_48 = arith.constant dense<0.000000e+00> : vector<16x32xf32>
    %170 = tpu.matmul %169, %29, %cst_48 {dimension_numbers = #tpu.dot_dimension_numbers<[1], [0], [0], [1], [0, 0, 1, 1], [], []>} : vector<16x64xf32>, vector<64x32xf32>, vector<16x32xf32> -> vector<16x32xf32>
    %171 = arith.addf %139, %170 : vector<16x32xf32>
    %172 = vector.extract_strided_slice %0 {offsets = [17, 0], sizes = [1, 32], strides = [1, 1]} : vector<32x128xf32> to vector<1x32xf32>
    %173 = vector.broadcast %172 : vector<1x32xf32> to vector<16x32xf32>
    %174 = arith.addf %171, %173 : vector<16x32xf32>
    %c232 = arith.constant 232 : index
    %c0_49 = arith.constant 0 : index
    %175 = vector.load %arg8[%c232, %c0_49] : memref<392x128xf32, #tpu.memory_space<vmem>>, vector<32x96xf32>
    %c264 = arith.constant 264 : index
    %c0_50 = arith.constant 0 : index
    %176 = vector.load %arg8[%c264, %c0_50] : memref<392x128xf32, #tpu.memory_space<vmem>>, vector<32x32xf32>
    %c296 = arith.constant 296 : index
    %c0_51 = arith.constant 0 : index
    %177 = vector.load %arg8[%c296, %c0_51] : memref<392x128xf32, #tpu.memory_space<vmem>>, vector<32x64xf32>
    %c328 = arith.constant 328 : index
    %c0_52 = arith.constant 0 : index
    %178 = vector.load %arg8[%c328, %c0_52] : memref<392x128xf32, #tpu.memory_space<vmem>>, vector<64x32xf32>
    %179 = vector.extract_strided_slice %0 {offsets = [18, 0], sizes = [1, 32], strides = [1, 1]} : vector<32x128xf32> to vector<1x32xf32>
    %180 = vector.extract_strided_slice %0 {offsets = [19, 0], sizes = [1, 32], strides = [1, 1]} : vector<32x128xf32> to vector<1x32xf32>
    %cst_53 = arith.constant dense<0.000000e+00> : vector<16xf32>
    %181 = vector.multi_reduction <add>, %174, %cst_53 [1] : vector<16x32xf32> to vector<16xf32>
    %182 = vector.shape_cast %181 : vector<16xf32> to vector<16x1xf32>
    %cst_54 = arith.constant 3.200000e+01 : f32
    %183 = vector.broadcast %cst_54 : f32 to vector<16x1xf32>
    %184 = arith.divf %182, %183 : vector<16x1xf32>
    %185 = vector.broadcast %184 : vector<16x1xf32> to vector<16x32xf32>
    %186 = arith.subf %174, %185 : vector<16x32xf32>
    %187 = arith.mulf %186, %186 : vector<16x32xf32>
    %cst_55 = arith.constant dense<0.000000e+00> : vector<16xf32>
    %188 = vector.multi_reduction <add>, %187, %cst_55 [1] : vector<16x32xf32> to vector<16xf32>
    %189 = vector.shape_cast %188 : vector<16xf32> to vector<16x1xf32>
    %cst_56 = arith.constant 3.200000e+01 : f32
    %190 = vector.broadcast %cst_56 : f32 to vector<16x1xf32>
    %191 = arith.divf %189, %190 : vector<16x1xf32>
    %192 = vector.broadcast %184 : vector<16x1xf32> to vector<16x32xf32>
    %193 = arith.subf %174, %192 : vector<16x32xf32>
    %cst_57 = arith.constant 9.99999974E-6 : f32
    %194 = vector.broadcast %cst_57 : f32 to vector<16x1xf32>
    %195 = arith.addf %191, %194 : vector<16x1xf32>
    %196 = math.rsqrt %195 : vector<16x1xf32>
    %197 = vector.broadcast %196 : vector<16x1xf32> to vector<16x32xf32>
    %198 = arith.mulf %193, %197 : vector<16x32xf32>
    %199 = vector.broadcast %179 : vector<1x32xf32> to vector<16x32xf32>
    %200 = arith.mulf %198, %199 : vector<16x32xf32>
    %201 = vector.broadcast %180 : vector<1x32xf32> to vector<16x32xf32>
    %202 = arith.addf %200, %201 : vector<16x32xf32>
    %cst_58 = arith.constant dense<0.000000e+00> : vector<16x96xf32>
    %203 = tpu.matmul %202, %175, %cst_58 {dimension_numbers = #tpu.dot_dimension_numbers<[1], [0], [0], [1], [0, 0, 1, 1], [], []>} : vector<16x32xf32>, vector<32x96xf32>, vector<16x96xf32> -> vector<16x96xf32>
    %204 = vector.extract_strided_slice %0 {offsets = [20, 0], sizes = [1, 96], strides = [1, 1]} : vector<32x128xf32> to vector<1x96xf32>
    %205 = vector.broadcast %204 : vector<1x96xf32> to vector<16x96xf32>
    %206 = arith.addf %203, %205 : vector<16x96xf32>
    %207 = vector.extract_strided_slice %206 {offsets = [0, 0], sizes = [16, 8], strides = [1, 1]} : vector<16x96xf32> to vector<16x8xf32>
    %208 = vector.extract_strided_slice %206 {offsets = [0, 32], sizes = [16, 8], strides = [1, 1]} : vector<16x96xf32> to vector<16x8xf32>
    %209 = vector.extract_strided_slice %206 {offsets = [0, 64], sizes = [16, 8], strides = [1, 1]} : vector<16x96xf32> to vector<16x8xf32>
    %cst_59 = arith.constant dense<0.000000e+00> : vector<16x16xf32>
    %210 = tpu.matmul %207, %208, %cst_59 {dimension_numbers = #tpu.dot_dimension_numbers<[1], [1], [0], [0], [0, 0, 1, 0], [], []>} : vector<16x8xf32>, vector<16x8xf32>, vector<16x16xf32> -> vector<16x16xf32>
    %cst_60 = arith.constant 0.353553385 : f32
    %211 = vector.broadcast %cst_60 : f32 to vector<16x16xf32>
    %212 = arith.mulf %210, %211 : vector<16x16xf32>
    %213 = vector.broadcast %25 : vector<1x16xf32> to vector<16x16xf32>
    %214 = arith.addf %212, %213 : vector<16x16xf32>
    %cst_61 = arith.constant dense<0xFF800000> : vector<16xf32>
    %215 = vector.multi_reduction <maximumf>, %214, %cst_61 [1] : vector<16x16xf32> to vector<16xf32>
    %216 = vector.shape_cast %215 : vector<16xf32> to vector<16x1xf32>
    %217 = vector.broadcast %216 : vector<16x1xf32> to vector<16x16xf32>
    %218 = arith.subf %214, %217 : vector<16x16xf32>
    %219 = math.exp %218 : vector<16x16xf32>
    %cst_62 = arith.constant dense<0.000000e+00> : vector<16xf32>
    %220 = vector.multi_reduction <add>, %219, %cst_62 [1] : vector<16x16xf32> to vector<16xf32>
    %221 = vector.shape_cast %220 : vector<16xf32> to vector<16x1xf32>
    %222 = tpu.reciprocal %221 {approx = true} : vector<16x1xf32> -> vector<16x1xf32>
    %223 = vector.broadcast %222 : vector<16x1xf32> to vector<16x16xf32>
    %224 = arith.mulf %219, %223 : vector<16x16xf32>
    %cst_63 = arith.constant dense<0.000000e+00> : vector<16x8xf32>
    %225 = tpu.matmul %224, %209, %cst_63 {dimension_numbers = #tpu.dot_dimension_numbers<[1], [0], [0], [1], [0, 0, 1, 1], [], []>} : vector<16x16xf32>, vector<16x8xf32>, vector<16x8xf32> -> vector<16x8xf32>
    %226 = vector.extract_strided_slice %206 {offsets = [0, 8], sizes = [16, 8], strides = [1, 1]} : vector<16x96xf32> to vector<16x8xf32>
    %227 = vector.extract_strided_slice %206 {offsets = [0, 40], sizes = [16, 8], strides = [1, 1]} : vector<16x96xf32> to vector<16x8xf32>
    %228 = vector.extract_strided_slice %206 {offsets = [0, 72], sizes = [16, 8], strides = [1, 1]} : vector<16x96xf32> to vector<16x8xf32>
    %cst_64 = arith.constant dense<0.000000e+00> : vector<16x16xf32>
    %229 = tpu.matmul %226, %227, %cst_64 {dimension_numbers = #tpu.dot_dimension_numbers<[1], [1], [0], [0], [0, 0, 1, 0], [], []>} : vector<16x8xf32>, vector<16x8xf32>, vector<16x16xf32> -> vector<16x16xf32>
    %cst_65 = arith.constant 0.353553385 : f32
    %230 = vector.broadcast %cst_65 : f32 to vector<16x16xf32>
    %231 = arith.mulf %229, %230 : vector<16x16xf32>
    %232 = vector.broadcast %25 : vector<1x16xf32> to vector<16x16xf32>
    %233 = arith.addf %231, %232 : vector<16x16xf32>
    %cst_66 = arith.constant dense<0xFF800000> : vector<16xf32>
    %234 = vector.multi_reduction <maximumf>, %233, %cst_66 [1] : vector<16x16xf32> to vector<16xf32>
    %235 = vector.shape_cast %234 : vector<16xf32> to vector<16x1xf32>
    %236 = vector.broadcast %235 : vector<16x1xf32> to vector<16x16xf32>
    %237 = arith.subf %233, %236 : vector<16x16xf32>
    %238 = math.exp %237 : vector<16x16xf32>
    %cst_67 = arith.constant dense<0.000000e+00> : vector<16xf32>
    %239 = vector.multi_reduction <add>, %238, %cst_67 [1] : vector<16x16xf32> to vector<16xf32>
    %240 = vector.shape_cast %239 : vector<16xf32> to vector<16x1xf32>
    %241 = tpu.reciprocal %240 {approx = true} : vector<16x1xf32> -> vector<16x1xf32>
    %242 = vector.broadcast %241 : vector<16x1xf32> to vector<16x16xf32>
    %243 = arith.mulf %238, %242 : vector<16x16xf32>
    %cst_68 = arith.constant dense<0.000000e+00> : vector<16x8xf32>
    %244 = tpu.matmul %243, %228, %cst_68 {dimension_numbers = #tpu.dot_dimension_numbers<[1], [0], [0], [1], [0, 0, 1, 1], [], []>} : vector<16x16xf32>, vector<16x8xf32>, vector<16x8xf32> -> vector<16x8xf32>
    %245 = vector.extract_strided_slice %206 {offsets = [0, 16], sizes = [16, 8], strides = [1, 1]} : vector<16x96xf32> to vector<16x8xf32>
    %246 = vector.extract_strided_slice %206 {offsets = [0, 48], sizes = [16, 8], strides = [1, 1]} : vector<16x96xf32> to vector<16x8xf32>
    %247 = vector.extract_strided_slice %206 {offsets = [0, 80], sizes = [16, 8], strides = [1, 1]} : vector<16x96xf32> to vector<16x8xf32>
    %cst_69 = arith.constant dense<0.000000e+00> : vector<16x16xf32>
    %248 = tpu.matmul %245, %246, %cst_69 {dimension_numbers = #tpu.dot_dimension_numbers<[1], [1], [0], [0], [0, 0, 1, 0], [], []>} : vector<16x8xf32>, vector<16x8xf32>, vector<16x16xf32> -> vector<16x16xf32>
    %cst_70 = arith.constant 0.353553385 : f32
    %249 = vector.broadcast %cst_70 : f32 to vector<16x16xf32>
    %250 = arith.mulf %248, %249 : vector<16x16xf32>
    %251 = vector.broadcast %25 : vector<1x16xf32> to vector<16x16xf32>
    %252 = arith.addf %250, %251 : vector<16x16xf32>
    %cst_71 = arith.constant dense<0xFF800000> : vector<16xf32>
    %253 = vector.multi_reduction <maximumf>, %252, %cst_71 [1] : vector<16x16xf32> to vector<16xf32>
    %254 = vector.shape_cast %253 : vector<16xf32> to vector<16x1xf32>
    %255 = vector.broadcast %254 : vector<16x1xf32> to vector<16x16xf32>
    %256 = arith.subf %252, %255 : vector<16x16xf32>
    %257 = math.exp %256 : vector<16x16xf32>
    %cst_72 = arith.constant dense<0.000000e+00> : vector<16xf32>
    %258 = vector.multi_reduction <add>, %257, %cst_72 [1] : vector<16x16xf32> to vector<16xf32>
    %259 = vector.shape_cast %258 : vector<16xf32> to vector<16x1xf32>
    %260 = tpu.reciprocal %259 {approx = true} : vector<16x1xf32> -> vector<16x1xf32>
    %261 = vector.broadcast %260 : vector<16x1xf32> to vector<16x16xf32>
    %262 = arith.mulf %257, %261 : vector<16x16xf32>
    %cst_73 = arith.constant dense<0.000000e+00> : vector<16x8xf32>
    %263 = tpu.matmul %262, %247, %cst_73 {dimension_numbers = #tpu.dot_dimension_numbers<[1], [0], [0], [1], [0, 0, 1, 1], [], []>} : vector<16x16xf32>, vector<16x8xf32>, vector<16x8xf32> -> vector<16x8xf32>
    %264 = vector.extract_strided_slice %206 {offsets = [0, 24], sizes = [16, 8], strides = [1, 1]} : vector<16x96xf32> to vector<16x8xf32>
    %265 = vector.extract_strided_slice %206 {offsets = [0, 56], sizes = [16, 8], strides = [1, 1]} : vector<16x96xf32> to vector<16x8xf32>
    %266 = vector.extract_strided_slice %206 {offsets = [0, 88], sizes = [16, 8], strides = [1, 1]} : vector<16x96xf32> to vector<16x8xf32>
    %cst_74 = arith.constant dense<0.000000e+00> : vector<16x16xf32>
    %267 = tpu.matmul %264, %265, %cst_74 {dimension_numbers = #tpu.dot_dimension_numbers<[1], [1], [0], [0], [0, 0, 1, 0], [], []>} : vector<16x8xf32>, vector<16x8xf32>, vector<16x16xf32> -> vector<16x16xf32>
    %cst_75 = arith.constant 0.353553385 : f32
    %268 = vector.broadcast %cst_75 : f32 to vector<16x16xf32>
    %269 = arith.mulf %267, %268 : vector<16x16xf32>
    %270 = vector.broadcast %25 : vector<1x16xf32> to vector<16x16xf32>
    %271 = arith.addf %269, %270 : vector<16x16xf32>
    %cst_76 = arith.constant dense<0xFF800000> : vector<16xf32>
    %272 = vector.multi_reduction <maximumf>, %271, %cst_76 [1] : vector<16x16xf32> to vector<16xf32>
    %273 = vector.shape_cast %272 : vector<16xf32> to vector<16x1xf32>
    %274 = vector.broadcast %273 : vector<16x1xf32> to vector<16x16xf32>
    %275 = arith.subf %271, %274 : vector<16x16xf32>
    %276 = math.exp %275 : vector<16x16xf32>
    %cst_77 = arith.constant dense<0.000000e+00> : vector<16xf32>
    %277 = vector.multi_reduction <add>, %276, %cst_77 [1] : vector<16x16xf32> to vector<16xf32>
    %278 = vector.shape_cast %277 : vector<16xf32> to vector<16x1xf32>
    %279 = tpu.reciprocal %278 {approx = true} : vector<16x1xf32> -> vector<16x1xf32>
    %280 = vector.broadcast %279 : vector<16x1xf32> to vector<16x16xf32>
    %281 = arith.mulf %276, %280 : vector<16x16xf32>
    %cst_78 = arith.constant dense<0.000000e+00> : vector<16x8xf32>
    %282 = tpu.matmul %281, %266, %cst_78 {dimension_numbers = #tpu.dot_dimension_numbers<[1], [0], [0], [1], [0, 0, 1, 1], [], []>} : vector<16x16xf32>, vector<16x8xf32>, vector<16x8xf32> -> vector<16x8xf32>
    %283 = tpu.concatenate %225, %244, %263, %282 in 1 : vector<16x8xf32>, vector<16x8xf32>, vector<16x8xf32>, vector<16x8xf32> -> vector<16x32xf32>
    %cst_79 = arith.constant dense<0.000000e+00> : vector<16x32xf32>
    %284 = tpu.matmul %283, %176, %cst_79 {dimension_numbers = #tpu.dot_dimension_numbers<[1], [0], [0], [1], [0, 0, 1, 1], [], []>} : vector<16x32xf32>, vector<32x32xf32>, vector<16x32xf32> -> vector<16x32xf32>
    %285 = arith.addf %174, %284 : vector<16x32xf32>
    %286 = vector.extract_strided_slice %0 {offsets = [21, 0], sizes = [1, 32], strides = [1, 1]} : vector<32x128xf32> to vector<1x32xf32>
    %287 = vector.broadcast %286 : vector<1x32xf32> to vector<16x32xf32>
    %288 = arith.addf %285, %287 : vector<16x32xf32>
    %289 = vector.extract_strided_slice %0 {offsets = [22, 0], sizes = [1, 32], strides = [1, 1]} : vector<32x128xf32> to vector<1x32xf32>
    %290 = vector.extract_strided_slice %0 {offsets = [23, 0], sizes = [1, 32], strides = [1, 1]} : vector<32x128xf32> to vector<1x32xf32>
    %cst_80 = arith.constant dense<0.000000e+00> : vector<16xf32>
    %291 = vector.multi_reduction <add>, %288, %cst_80 [1] : vector<16x32xf32> to vector<16xf32>
    %292 = vector.shape_cast %291 : vector<16xf32> to vector<16x1xf32>
    %cst_81 = arith.constant 3.200000e+01 : f32
    %293 = vector.broadcast %cst_81 : f32 to vector<16x1xf32>
    %294 = arith.divf %292, %293 : vector<16x1xf32>
    %295 = vector.broadcast %294 : vector<16x1xf32> to vector<16x32xf32>
    %296 = arith.subf %288, %295 : vector<16x32xf32>
    %297 = arith.mulf %296, %296 : vector<16x32xf32>
    %cst_82 = arith.constant dense<0.000000e+00> : vector<16xf32>
    %298 = vector.multi_reduction <add>, %297, %cst_82 [1] : vector<16x32xf32> to vector<16xf32>
    %299 = vector.shape_cast %298 : vector<16xf32> to vector<16x1xf32>
    %cst_83 = arith.constant 3.200000e+01 : f32
    %300 = vector.broadcast %cst_83 : f32 to vector<16x1xf32>
    %301 = arith.divf %299, %300 : vector<16x1xf32>
    %302 = vector.broadcast %294 : vector<16x1xf32> to vector<16x32xf32>
    %303 = arith.subf %288, %302 : vector<16x32xf32>
    %cst_84 = arith.constant 9.99999974E-6 : f32
    %304 = vector.broadcast %cst_84 : f32 to vector<16x1xf32>
    %305 = arith.addf %301, %304 : vector<16x1xf32>
    %306 = math.rsqrt %305 : vector<16x1xf32>
    %307 = vector.broadcast %306 : vector<16x1xf32> to vector<16x32xf32>
    %308 = arith.mulf %303, %307 : vector<16x32xf32>
    %309 = vector.broadcast %289 : vector<1x32xf32> to vector<16x32xf32>
    %310 = arith.mulf %308, %309 : vector<16x32xf32>
    %311 = vector.broadcast %290 : vector<1x32xf32> to vector<16x32xf32>
    %312 = arith.addf %310, %311 : vector<16x32xf32>
    %cst_85 = arith.constant dense<0.000000e+00> : vector<16x64xf32>
    %313 = tpu.matmul %312, %177, %cst_85 {dimension_numbers = #tpu.dot_dimension_numbers<[1], [0], [0], [1], [0, 0, 1, 1], [], []>} : vector<16x32xf32>, vector<32x64xf32>, vector<16x64xf32> -> vector<16x64xf32>
    %314 = vector.extract_strided_slice %0 {offsets = [24, 0], sizes = [1, 64], strides = [1, 1]} : vector<32x128xf32> to vector<1x64xf32>
    %315 = vector.broadcast %314 : vector<1x64xf32> to vector<16x64xf32>
    %316 = arith.addf %313, %315 : vector<16x64xf32>
    %cst_86 = arith.constant 0.000000e+00 : f32
    %317 = vector.broadcast %cst_86 : f32 to vector<16x64xf32>
    %318 = arith.maximumf %316, %317 : vector<16x64xf32>
    %cst_87 = arith.constant dense<0.000000e+00> : vector<16x32xf32>
    %319 = tpu.matmul %318, %178, %cst_87 {dimension_numbers = #tpu.dot_dimension_numbers<[1], [0], [0], [1], [0, 0, 1, 1], [], []>} : vector<16x64xf32>, vector<64x32xf32>, vector<16x32xf32> -> vector<16x32xf32>
    %320 = arith.addf %288, %319 : vector<16x32xf32>
    %321 = vector.extract_strided_slice %0 {offsets = [25, 0], sizes = [1, 32], strides = [1, 1]} : vector<32x128xf32> to vector<1x32xf32>
    %322 = vector.broadcast %321 : vector<1x32xf32> to vector<16x32xf32>
    %323 = arith.addf %320, %322 : vector<16x32xf32>
    %324 = vector.extract_strided_slice %0 {offsets = [3, 0], sizes = [1, 32], strides = [1, 1]} : vector<32x128xf32> to vector<1x32xf32>
    %325 = vector.extract_strided_slice %0 {offsets = [4, 0], sizes = [1, 32], strides = [1, 1]} : vector<32x128xf32> to vector<1x32xf32>
    %cst_88 = arith.constant dense<0.000000e+00> : vector<16xf32>
    %326 = vector.multi_reduction <add>, %323, %cst_88 [1] : vector<16x32xf32> to vector<16xf32>
    %327 = vector.shape_cast %326 : vector<16xf32> to vector<16x1xf32>
    %cst_89 = arith.constant 3.200000e+01 : f32
    %328 = vector.broadcast %cst_89 : f32 to vector<16x1xf32>
    %329 = arith.divf %327, %328 : vector<16x1xf32>
    %330 = vector.broadcast %329 : vector<16x1xf32> to vector<16x32xf32>
    %331 = arith.subf %323, %330 : vector<16x32xf32>
    %332 = arith.mulf %331, %331 : vector<16x32xf32>
    %cst_90 = arith.constant dense<0.000000e+00> : vector<16xf32>
    %333 = vector.multi_reduction <add>, %332, %cst_90 [1] : vector<16x32xf32> to vector<16xf32>
    %334 = vector.shape_cast %333 : vector<16xf32> to vector<16x1xf32>
    %cst_91 = arith.constant 3.200000e+01 : f32
    %335 = vector.broadcast %cst_91 : f32 to vector<16x1xf32>
    %336 = arith.divf %334, %335 : vector<16x1xf32>
    %337 = vector.broadcast %329 : vector<16x1xf32> to vector<16x32xf32>
    %338 = arith.subf %323, %337 : vector<16x32xf32>
    %cst_92 = arith.constant 9.99999974E-6 : f32
    %339 = vector.broadcast %cst_92 : f32 to vector<16x1xf32>
    %340 = arith.addf %336, %339 : vector<16x1xf32>
    %341 = math.rsqrt %340 : vector<16x1xf32>
    %342 = vector.broadcast %341 : vector<16x1xf32> to vector<16x32xf32>
    %343 = arith.mulf %338, %342 : vector<16x32xf32>
    %344 = vector.broadcast %324 : vector<1x32xf32> to vector<16x32xf32>
    %345 = arith.mulf %343, %344 : vector<16x32xf32>
    %346 = vector.broadcast %325 : vector<1x32xf32> to vector<16x32xf32>
    %347 = arith.addf %345, %346 : vector<16x32xf32>
    %c8 = arith.constant 8 : index
    %c0_93 = arith.constant 0 : index
    %348 = vector.load %arg8[%c8, %c0_93] : memref<392x128xf32, #tpu.memory_space<vmem>>, vector<32x32xf32>
    %cst_94 = arith.constant dense<0.000000e+00> : vector<16x32xf32>
    %349 = tpu.matmul %347, %348, %cst_94 {dimension_numbers = #tpu.dot_dimension_numbers<[1], [0], [0], [1], [0, 0, 1, 1], [], []>} : vector<16x32xf32>, vector<32x32xf32>, vector<16x32xf32> -> vector<16x32xf32>
    %350 = vector.extract_strided_slice %0 {offsets = [5, 0], sizes = [1, 32], strides = [1, 1]} : vector<32x128xf32> to vector<1x32xf32>
    %351 = vector.broadcast %350 : vector<1x32xf32> to vector<16x32xf32>
    %352 = arith.addf %349, %351 : vector<16x32xf32>
    %c0_95 = arith.constant 0 : index
    %c0_96 = arith.constant 0 : index
    %c0_97 = arith.constant 0 : index
    %353 = vector.load %arg5[%c0_95, %c0_96, %c0_97] : memref<1x8x64xf32, #tpu.memory_space<vmem>>, vector<1x8x64xf32>
    %354 = vector.shape_cast %353 : vector<1x8x64xf32> to vector<8x64xf32>
    %355 = vector.extract_strided_slice %354 {offsets = [0, 0], sizes = [8, 32], strides = [1, 1]} : vector<8x64xf32> to vector<8x32xf32>
    %356 = vector.extract_strided_slice %0 {offsets = [6, 0], sizes = [1, 32], strides = [1, 1]} : vector<32x128xf32> to vector<1x32xf32>
    %357 = vector.broadcast %356 : vector<1x32xf32> to vector<8x32xf32>
    %358 = arith.mulf %355, %357 : vector<8x32xf32>
    %359 = vector.extract_strided_slice %354 {offsets = [0, 32], sizes = [8, 32], strides = [1, 1]} : vector<8x64xf32> to vector<8x32xf32>
    %360 = vector.extract_strided_slice %0 {offsets = [7, 0], sizes = [1, 32], strides = [1, 1]} : vector<32x128xf32> to vector<1x32xf32>
    %361 = vector.broadcast %360 : vector<1x32xf32> to vector<8x32xf32>
    %362 = arith.mulf %359, %361 : vector<8x32xf32>
    %363 = arith.addf %358, %362 : vector<8x32xf32>
    %364 = vector.extract_strided_slice %0 {offsets = [8, 0], sizes = [1, 32], strides = [1, 1]} : vector<32x128xf32> to vector<1x32xf32>
    %365 = vector.broadcast %364 : vector<1x32xf32> to vector<8x32xf32>
    %366 = arith.addf %363, %365 : vector<8x32xf32>
    %cst_98 = arith.constant 0.000000e+00 : f32
    %367 = vector.broadcast %cst_98 : f32 to vector<8x32xf32>
    %368 = arith.maximumf %366, %367 : vector<8x32xf32>
    %369 = vector.shape_cast %352 : vector<16x32xf32> to vector<16x1x32xf32>
    %370 = vector.shape_cast %368 : vector<8x32xf32> to vector<1x8x32xf32>
    %371 = vector.broadcast %369 : vector<16x1x32xf32> to vector<16x8x32xf32>
    %372 = vector.broadcast %370 : vector<1x8x32xf32> to vector<16x8x32xf32>
    %373 = arith.addf %371, %372 : vector<16x8x32xf32>
    %374 = math.tanh %373 : vector<16x8x32xf32>
    %375 = vector.shape_cast %374 : vector<16x8x32xf32> to vector<128x32xf32>
    %c40 = arith.constant 40 : index
    %c0_99 = arith.constant 0 : index
    %376 = vector.load %arg8[%c40, %c0_99] : memref<392x128xf32, #tpu.memory_space<vmem>>, vector<32x128xf32>
    %cst_100 = arith.constant dense<0.000000e+00> : vector<128x128xf32>
    %377 = tpu.matmul %375, %376, %cst_100 {dimension_numbers = #tpu.dot_dimension_numbers<[1], [0], [0], [1], [0, 0, 1, 1], [], []>} : vector<128x32xf32>, vector<32x128xf32>, vector<128x128xf32> -> vector<128x128xf32>
    %378 = vector.extract_strided_slice %0 {offsets = [9, 0], sizes = [1, 128], strides = [1, 1]} : vector<32x128xf32> to vector<1x128xf32>
    %379 = vector.broadcast %378 : vector<1x128xf32> to vector<128x128xf32>
    %380 = arith.addf %377, %379 : vector<128x128xf32>
    %cst_101 = arith.constant dense<0xFF800000> : vector<128xf32>
    %381 = vector.multi_reduction <maximumf>, %380, %cst_101 [1] : vector<128x128xf32> to vector<128xf32>
    %382 = vector.shape_cast %381 : vector<128xf32> to vector<128x1xf32>
    %383 = vector.broadcast %382 : vector<128x1xf32> to vector<128x128xf32>
    %384 = arith.subf %380, %383 : vector<128x128xf32>
    %385 = math.exp %384 : vector<128x128xf32>
    %cst_102 = arith.constant dense<0.000000e+00> : vector<128xf32>
    %386 = vector.multi_reduction <add>, %385, %cst_102 [1] : vector<128x128xf32> to vector<128xf32>
    %387 = vector.shape_cast %386 : vector<128xf32> to vector<128x1xf32>
    %388 = math.log %387 : vector<128x1xf32>
    %389 = vector.broadcast %388 : vector<128x1xf32> to vector<128x128xf32>
    %390 = arith.subf %384, %389 : vector<128x128xf32>
    %c0_103 = arith.constant 0 : index
    %c0_104 = arith.constant 0 : index
    %c0_105 = arith.constant 0 : index
    %391 = vector.load %arg6[%c0_103, %c0_104, %c0_105] : memref<1x8x128xf32, #tpu.memory_space<vmem>>, vector<1x8x128xf32>
    %392 = vector.shape_cast %391 : vector<1x8x128xf32> to vector<8x128xf32>
    %393 = vector.shape_cast %392 : vector<8x128xf32> to vector<1x8x128xf32>
    %394 = vector.shape_cast %393 : vector<1x8x128xf32> to vector<1x8x128xf32>
    %395 = vector.broadcast %394 : vector<1x8x128xf32> to vector<16x8x128xf32>
    %396 = vector.shape_cast %395 : vector<16x8x128xf32> to vector<128x128xf32>
    %397 = vector.extract_strided_slice %390 {offsets = [0, 0], sizes = [128, 1], strides = [1, 1]} : vector<128x128xf32> to vector<128x1xf32>
    %398 = arith.mulf %390, %396 : vector<128x128xf32>
    %cst_106 = arith.constant dense<0.000000e+00> : vector<128xf32>
    %399 = vector.multi_reduction <add>, %398, %cst_106 [1] : vector<128x128xf32> to vector<128xf32>
    %400 = vector.shape_cast %399 : vector<128xf32> to vector<128x1xf32>
    %401 = tpu.concatenate %397, %400 in 1 : vector<128x1xf32>, vector<128x1xf32> -> vector<128x2xf32>
    %c0_107 = arith.constant 0 : index
    %c0_108 = arith.constant 0 : index
    %402 = vector.load %arg10[%c0_107, %c0_108] : memref<128x2xf32, #tpu.memory_space<vmem>>, vector<128x2xf32>
    tpu.vector_store %arg10[%c0_107, %c0_108], %401 {strides = array<i32>} : memref<128x2xf32, #tpu.memory_space<vmem>>, vector<128x2xf32>,
    %403 = tpu.iota {dimensions = array<i32: 0>} : vector<8x1xi32>
    %c0_109 = arith.constant 0 : index
    %c0_110 = arith.constant 0 : index
    %404 = vector.load %arg10[%c0_109, %c0_110] : memref<128x2xf32, #tpu.memory_space<vmem>>, vector<8x2xf32>
    %405 = vector.extract_strided_slice %404 {offsets = [0, 1], sizes = [8, 1], strides = [1, 1]} : vector<8x2xf32> to vector<8x1xf32>
    %c0_i32 = arith.constant 0 : i32
    %406 = vector.broadcast %c0_i32 : i32 to vector<8x1xi32>
    %407 = arith.cmpi eq, %403, %406 : vector<8x1xi32>
    %cst_111 = arith.constant 0.000000e+00 : f32
    %cst_112 = arith.constant -1.000000e+30 : f32
    %408 = vector.broadcast %cst_111 : f32 to vector<8x1xf32>
    %409 = vector.broadcast %cst_112 : f32 to vector<8x1xf32>
    %410 = arith.select %407, %408, %409 : vector<8x1xi1>, vector<8x1xf32>
    %411 = vector.extract_strided_slice %410 {offsets = [0, 0], sizes = [1, 1], strides = [1, 1]} : vector<8x1xf32> to vector<1x1xf32>
    %412 = vector.extract_strided_slice %405 {offsets = [0, 0], sizes = [1, 1], strides = [1, 1]} : vector<8x1xf32> to vector<1x1xf32>
    %413 = arith.addf %411, %412 : vector<1x1xf32>
    %414 = vector.extract_strided_slice %410 {offsets = [1, 0], sizes = [1, 1], strides = [1, 1]} : vector<8x1xf32> to vector<1x1xf32>
    %415 = arith.maximumf %414, %413 : vector<1x1xf32>
    %416 = arith.subf %414, %415 : vector<1x1xf32>
    %417 = math.exp %416 : vector<1x1xf32>
    %418 = arith.subf %413, %415 : vector<1x1xf32>
    %419 = math.exp %418 : vector<1x1xf32>
    %420 = arith.addf %417, %419 : vector<1x1xf32>
    %421 = math.log %420 : vector<1x1xf32>
    %422 = arith.addf %415, %421 : vector<1x1xf32>
    %c1_i32_113 = arith.constant 1 : i32
    %423 = vector.broadcast %c1_i32_113 : i32 to vector<8x1xi32>
    %424 = arith.cmpi eq, %403, %423 : vector<8x1xi32>
    %425 = vector.shape_cast %422 : vector<1x1xf32> to vector<1x1xf32>
    %426 = vector.broadcast %425 : vector<1x1xf32> to vector<8x1xf32>
    %427 = arith.select %424, %426, %410 : vector<8x1xi1>, vector<8x1xf32>
    %428 = vector.extract_strided_slice %405 {offsets = [1, 0], sizes = [1, 1], strides = [1, 1]} : vector<8x1xf32> to vector<1x1xf32>
    %429 = arith.addf %422, %428 : vector<1x1xf32>
    %430 = vector.extract_strided_slice %410 {offsets = [2, 0], sizes = [1, 1], strides = [1, 1]} : vector<8x1xf32> to vector<1x1xf32>
    %431 = arith.maximumf %430, %429 : vector<1x1xf32>
    %432 = arith.subf %430, %431 : vector<1x1xf32>
    %433 = math.exp %432 : vector<1x1xf32>
    %434 = arith.subf %429, %431 : vector<1x1xf32>
    %435 = math.exp %434 : vector<1x1xf32>
    %436 = arith.addf %433, %435 : vector<1x1xf32>
    %437 = math.log %436 : vector<1x1xf32>
    %438 = arith.addf %431, %437 : vector<1x1xf32>
    %c2_i32 = arith.constant 2 : i32
    %439 = vector.broadcast %c2_i32 : i32 to vector<8x1xi32>
    %440 = arith.cmpi eq, %403, %439 : vector<8x1xi32>
    %441 = vector.shape_cast %438 : vector<1x1xf32> to vector<1x1xf32>
    %442 = vector.broadcast %441 : vector<1x1xf32> to vector<8x1xf32>
    %443 = arith.select %440, %442, %427 : vector<8x1xi1>, vector<8x1xf32>
    %444 = vector.extract_strided_slice %405 {offsets = [2, 0], sizes = [1, 1], strides = [1, 1]} : vector<8x1xf32> to vector<1x1xf32>
    %445 = arith.addf %438, %444 : vector<1x1xf32>
    %446 = vector.extract_strided_slice %410 {offsets = [3, 0], sizes = [1, 1], strides = [1, 1]} : vector<8x1xf32> to vector<1x1xf32>
    %447 = arith.maximumf %446, %445 : vector<1x1xf32>
    %448 = arith.subf %446, %447 : vector<1x1xf32>
    %449 = math.exp %448 : vector<1x1xf32>
    %450 = arith.subf %445, %447 : vector<1x1xf32>
    %451 = math.exp %450 : vector<1x1xf32>
    %452 = arith.addf %449, %451 : vector<1x1xf32>
    %453 = math.log %452 : vector<1x1xf32>
    %454 = arith.addf %447, %453 : vector<1x1xf32>
    %c3_i32 = arith.constant 3 : i32
    %455 = vector.broadcast %c3_i32 : i32 to vector<8x1xi32>
    %456 = arith.cmpi eq, %403, %455 : vector<8x1xi32>
    %457 = vector.shape_cast %454 : vector<1x1xf32> to vector<1x1xf32>
    %458 = vector.broadcast %457 : vector<1x1xf32> to vector<8x1xf32>
    %459 = arith.select %456, %458, %443 : vector<8x1xi1>, vector<8x1xf32>
    %460 = vector.extract_strided_slice %405 {offsets = [3, 0], sizes = [1, 1], strides = [1, 1]} : vector<8x1xf32> to vector<1x1xf32>
    %461 = arith.addf %454, %460 : vector<1x1xf32>
    %462 = vector.extract_strided_slice %410 {offsets = [4, 0], sizes = [1, 1], strides = [1, 1]} : vector<8x1xf32> to vector<1x1xf32>
    %463 = arith.maximumf %462, %461 : vector<1x1xf32>
    %464 = arith.subf %462, %463 : vector<1x1xf32>
    %465 = math.exp %464 : vector<1x1xf32>
    %466 = arith.subf %461, %463 : vector<1x1xf32>
    %467 = math.exp %466 : vector<1x1xf32>
    %468 = arith.addf %465, %467 : vector<1x1xf32>
    %469 = math.log %468 : vector<1x1xf32>
    %470 = arith.addf %463, %469 : vector<1x1xf32>
    %c4_i32 = arith.constant 4 : i32
    %471 = vector.broadcast %c4_i32 : i32 to vector<8x1xi32>
    %472 = arith.cmpi eq, %403, %471 : vector<8x1xi32>
    %473 = vector.shape_cast %470 : vector<1x1xf32> to vector<1x1xf32>
    %474 = vector.broadcast %473 : vector<1x1xf32> to vector<8x1xf32>
    %475 = arith.select %472, %474, %459 : vector<8x1xi1>, vector<8x1xf32>
    %c1_i32_114 = arith.constant 1 : i32
    %476 = arith.subi %19, %c1_i32_114 : i32
    %477 = arith.addi %c1_i32_114, %476 : i32
    %c1_i32_115 = arith.constant 1 : i32
    %478 = scf.for %arg11 = %c1_i32_114 to %477 step %c1_i32_115 iter_args(%arg12 = %475) -> (vector<8x1xf32>)  : i32 {
      %c1_i32_126 = arith.constant 1 : i32
      %502 = arith.subi %arg11, %c1_i32_126 : i32
      %c8_i32_127 = arith.constant 8 : i32
      %503 = arith.muli %502, %c8_i32_127 : i32
      %504 = tpu.assume_multiple %503, 8 : i32
      %505 = arith.index_cast %504 : i32 to index
      %c0_128 = arith.constant 0 : index
      %506 = vector.load %arg10[%505, %c0_128] : memref<128x2xf32, #tpu.memory_space<vmem>>, vector<8x2xf32>
      %507 = vector.extract_strided_slice %506 {offsets = [0, 0], sizes = [8, 1], strides = [1, 1]} : vector<8x2xf32> to vector<8x1xf32>
      %508 = vector.extract_strided_slice %506 {offsets = [0, 1], sizes = [8, 1], strides = [1, 1]} : vector<8x2xf32> to vector<8x1xf32>
      %c8_i32_129 = arith.constant 8 : i32
      %509 = arith.muli %arg11, %c8_i32_129 : i32
      %510 = tpu.assume_multiple %509, 8 : i32
      %511 = arith.index_cast %510 : i32 to index
      %c0_130 = arith.constant 0 : index
      %512 = vector.load %arg10[%511, %c0_130] : memref<128x2xf32, #tpu.memory_space<vmem>>, vector<8x2xf32>
      %513 = vector.extract_strided_slice %512 {offsets = [0, 0], sizes = [8, 1], strides = [1, 1]} : vector<8x2xf32> to vector<8x1xf32>
      %514 = vector.extract_strided_slice %512 {offsets = [0, 1], sizes = [8, 1], strides = [1, 1]} : vector<8x2xf32> to vector<8x1xf32>
      %515 = arith.addf %arg12, %507 : vector<8x1xf32>
      %516 = vector.extract_strided_slice %515 {offsets = [0, 0], sizes = [1, 1], strides = [1, 1]} : vector<8x1xf32> to vector<1x1xf32>
      %517 = vector.extract_strided_slice %514 {offsets = [0, 0], sizes = [1, 1], strides = [1, 1]} : vector<8x1xf32> to vector<1x1xf32>
      %518 = arith.addf %516, %517 : vector<1x1xf32>
      %519 = vector.extract_strided_slice %515 {offsets = [1, 0], sizes = [1, 1], strides = [1, 1]} : vector<8x1xf32> to vector<1x1xf32>
      %520 = arith.maximumf %519, %518 : vector<1x1xf32>
      %521 = arith.subf %519, %520 : vector<1x1xf32>
      %522 = math.exp %521 : vector<1x1xf32>
      %523 = arith.subf %518, %520 : vector<1x1xf32>
      %524 = math.exp %523 : vector<1x1xf32>
      %525 = arith.addf %522, %524 : vector<1x1xf32>
      %526 = math.log %525 : vector<1x1xf32>
      %527 = arith.addf %520, %526 : vector<1x1xf32>
      %c1_i32_131 = arith.constant 1 : i32
      %528 = vector.broadcast %c1_i32_131 : i32 to vector<8x1xi32>
      %529 = arith.cmpi eq, %403, %528 : vector<8x1xi32>
      %530 = vector.shape_cast %527 : vector<1x1xf32> to vector<1x1xf32>
      %531 = vector.broadcast %530 : vector<1x1xf32> to vector<8x1xf32>
      %532 = arith.select %529, %531, %515 : vector<8x1xi1>, vector<8x1xf32>
      %533 = vector.extract_strided_slice %514 {offsets = [1, 0], sizes = [1, 1], strides = [1, 1]} : vector<8x1xf32> to vector<1x1xf32>
      %534 = arith.addf %527, %533 : vector<1x1xf32>
      %535 = vector.extract_strided_slice %515 {offsets = [2, 0], sizes = [1, 1], strides = [1, 1]} : vector<8x1xf32> to vector<1x1xf32>
      %536 = arith.maximumf %535, %534 : vector<1x1xf32>
      %537 = arith.subf %535, %536 : vector<1x1xf32>
      %538 = math.exp %537 : vector<1x1xf32>
      %539 = arith.subf %534, %536 : vector<1x1xf32>
      %540 = math.exp %539 : vector<1x1xf32>
      %541 = arith.addf %538, %540 : vector<1x1xf32>
      %542 = math.log %541 : vector<1x1xf32>
      %543 = arith.addf %536, %542 : vector<1x1xf32>
      %c2_i32_132 = arith.constant 2 : i32
      %544 = vector.broadcast %c2_i32_132 : i32 to vector<8x1xi32>
      %545 = arith.cmpi eq, %403, %544 : vector<8x1xi32>
      %546 = vector.shape_cast %543 : vector<1x1xf32> to vector<1x1xf32>
      %547 = vector.broadcast %546 : vector<1x1xf32> to vector<8x1xf32>
      %548 = arith.select %545, %547, %532 : vector<8x1xi1>, vector<8x1xf32>
      %549 = vector.extract_strided_slice %514 {offsets = [2, 0], sizes = [1, 1], strides = [1, 1]} : vector<8x1xf32> to vector<1x1xf32>
      %550 = arith.addf %543, %549 : vector<1x1xf32>
      %551 = vector.extract_strided_slice %515 {offsets = [3, 0], sizes = [1, 1], strides = [1, 1]} : vector<8x1xf32> to vector<1x1xf32>
      %552 = arith.maximumf %551, %550 : vector<1x1xf32>
      %553 = arith.subf %551, %552 : vector<1x1xf32>
      %554 = math.exp %553 : vector<1x1xf32>
      %555 = arith.subf %550, %552 : vector<1x1xf32>
      %556 = math.exp %555 : vector<1x1xf32>
      %557 = arith.addf %554, %556 : vector<1x1xf32>
      %558 = math.log %557 : vector<1x1xf32>
      %559 = arith.addf %552, %558 : vector<1x1xf32>
      %c3_i32_133 = arith.constant 3 : i32
      %560 = vector.broadcast %c3_i32_133 : i32 to vector<8x1xi32>
      %561 = arith.cmpi eq, %403, %560 : vector<8x1xi32>
      %562 = vector.shape_cast %559 : vector<1x1xf32> to vector<1x1xf32>
      %563 = vector.broadcast %562 : vector<1x1xf32> to vector<8x1xf32>
      %564 = arith.select %561, %563, %548 : vector<8x1xi1>, vector<8x1xf32>
      %565 = vector.extract_strided_slice %514 {offsets = [3, 0], sizes = [1, 1], strides = [1, 1]} : vector<8x1xf32> to vector<1x1xf32>
      %566 = arith.addf %559, %565 : vector<1x1xf32>
      %567 = vector.extract_strided_slice %515 {offsets = [4, 0], sizes = [1, 1], strides = [1, 1]} : vector<8x1xf32> to vector<1x1xf32>
      %568 = arith.maximumf %567, %566 : vector<1x1xf32>
      %569 = arith.subf %567, %568 : vector<1x1xf32>
      %570 = math.exp %569 : vector<1x1xf32>
      %571 = arith.subf %566, %568 : vector<1x1xf32>
      %572 = math.exp %571 : vector<1x1xf32>
      %573 = arith.addf %570, %572 : vector<1x1xf32>
      %574 = math.log %573 : vector<1x1xf32>
      %575 = arith.addf %568, %574 : vector<1x1xf32>
      %c4_i32_134 = arith.constant 4 : i32
      %576 = vector.broadcast %c4_i32_134 : i32 to vector<8x1xi32>
      %577 = arith.cmpi eq, %403, %576 : vector<8x1xi32>
      %578 = vector.shape_cast %575 : vector<1x1xf32> to vector<1x1xf32>
      %579 = vector.broadcast %578 : vector<1x1xf32> to vector<8x1xf32>
      %580 = arith.select %577, %579, %564 : vector<8x1xi1>, vector<8x1xf32>
      scf.yield %580 : vector<8x1xf32>
    }
    %c1_i32_116 = arith.constant 1 : i32
    %479 = arith.subi %19, %c1_i32_116 : i32
    %c8_i32 = arith.constant 8 : i32
    %480 = arith.muli %479, %c8_i32 : i32
    %481 = tpu.assume_multiple %480, 8 : i32
    %482 = arith.index_cast %481 : i32 to index
    %c0_117 = arith.constant 0 : index
    %483 = vector.load %arg10[%482, %c0_117] : memref<128x2xf32, #tpu.memory_space<vmem>>, vector<8x2xf32>
    %484 = vector.extract_strided_slice %483 {offsets = [0, 0], sizes = [8, 1], strides = [1, 1]} : vector<8x2xf32> to vector<8x1xf32>
    %485 = arith.addf %478, %484 : vector<8x1xf32>
    %486 = arith.index_cast %arg0 : i32 to index
    %487 = memref.load %arg2[%486] : memref<2xi32, #tpu.memory_space<smem>>
    %c0_i32_118 = arith.constant 0 : i32
    %c4_i32_119 = arith.constant 4 : i32
    %488 = arith.maxsi %c0_i32_118, %487 : i32
    %489 = arith.minsi %c4_i32_119, %488 : i32
    %490 = vector.broadcast %489 : i32 to vector<8x1xi32>
    %491 = arith.cmpi eq, %403, %490 : vector<8x1xi32>
    %cst_120 = arith.constant 0.000000e+00 : f32
    %492 = vector.broadcast %cst_120 : f32 to vector<8x1xf32>
    %493 = arith.select %491, %485, %492 : vector<8x1xi1>, vector<8x1xf32>
    %cst_121 = arith.constant dense<0.000000e+00> : vector<1xf32>
    %494 = vector.multi_reduction <add>, %493, %cst_121 [0] : vector<8x1xf32> to vector<1xf32>
    %495 = vector.shape_cast %494 : vector<1xf32> to vector<1x1xf32>
    %cst_122 = arith.constant 0.000000e+00 : f32
    %496 = vector.broadcast %cst_122 : f32 to vector<1x128xf32>
    %497 = vector.broadcast %495 : vector<1x1xf32> to vector<1x128xf32>
    %498 = arith.subf %496, %497 : vector<1x128xf32>
    %c0_123 = arith.constant 0 : index
    %c0_124 = arith.constant 0 : index
    %c0_125 = arith.constant 0 : index
    %499 = vector.load %arg9[%c0_123, %c0_124, %c0_125] : memref<1x1x128xf32, #tpu.memory_space<vmem>>, vector<1x1x128xf32>
    %500 = vector.shape_cast %499 : vector<1x1x128xf32> to vector<1x128xf32>
    %501 = vector.shape_cast %498 : vector<1x128xf32> to vector<1x1x128xf32>
    tpu.vector_store %arg9[%c0_123, %c0_124, %c0_125], %501 {strides = array<i32>} : memref<1x1x128xf32, #tpu.memory_space<vmem>>, vector<1x1x128xf32>,
    return
  }
  func.func @transform_0(%arg0: i32, %arg1: memref<2xi32, #tpu.memory_space<smem>>, %arg2: memref<2xi32, #tpu.memory_space<smem>>) -> (i32, i32, i32) {
    %c0_i32 = arith.constant 0 : i32
    %c0_i32_0 = arith.constant 0 : i32
    %c0_i32_1 = arith.constant 0 : i32
    return %arg0, %c0_i32, %c0_i32_0 : i32, i32, i32
  }
  func.func @transform_1(%arg0: i32, %arg1: memref<2xi32, #tpu.memory_space<smem>>, %arg2: memref<2xi32, #tpu.memory_space<smem>>) -> (i32, i32) {
    %c0_i32 = arith.constant 0 : i32
    %c0_i32_0 = arith.constant 0 : i32
    %c0_i32_1 = arith.constant 0 : i32
    return %c0_i32, %c0_i32_0 : i32, i32
  }
  func.func @transform_2(%arg0: i32, %arg1: memref<2xi32, #tpu.memory_space<smem>>, %arg2: memref<2xi32, #tpu.memory_space<smem>>) -> (i32, i32, i32) {
    %c0_i32 = arith.constant 0 : i32
    %c0_i32_0 = arith.constant 0 : i32
    %c0_i32_1 = arith.constant 0 : i32
    return %arg0, %c0_i32, %c0_i32_0 : i32, i32, i32
  }
  func.func @transform_3(%arg0: i32, %arg1: memref<2xi32, #tpu.memory_space<smem>>, %arg2: memref<2xi32, #tpu.memory_space<smem>>) -> (i32, i32, i32) {
    %c0_i32 = arith.constant 0 : i32
    %c0_i32_0 = arith.constant 0 : i32
    %c0_i32_1 = arith.constant 0 : i32
    return %arg0, %c0_i32, %c0_i32_0 : i32, i32, i32
  }
  func.func @transform_4(%arg0: i32, %arg1: memref<2xi32, #tpu.memory_space<smem>>, %arg2: memref<2xi32, #tpu.memory_space<smem>>) -> (i32, i32) {
    %c0_i32 = arith.constant 0 : i32
    %c0_i32_0 = arith.constant 0 : i32
    %c0_i32_1 = arith.constant 0 : i32
    return %c0_i32, %c0_i32_0 : i32, i32
  }
  func.func @transform_5(%arg0: i32, %arg1: memref<2xi32, #tpu.memory_space<smem>>, %arg2: memref<2xi32, #tpu.memory_space<smem>>) -> (i32, i32) {
    %c0_i32 = arith.constant 0 : i32
    %c0_i32_0 = arith.constant 0 : i32
    %c0_i32_1 = arith.constant 0 : i32
    return %c0_i32, %c0_i32_0 : i32, i32
  }
  func.func @transform_6(%arg0: i32, %arg1: memref<2xi32, #tpu.memory_space<smem>>, %arg2: memref<2xi32, #tpu.memory_space<smem>>) -> (i32, i32, i32) {
    %c0_i32 = arith.constant 0 : i32
    %c0_i32_0 = arith.constant 0 : i32
    %c0_i32_1 = arith.constant 0 : i32
    return %arg0, %c0_i32, %c0_i32_0 : i32, i32, i32
  }
}

</mosaic_0001>

<bundles_post_ra>
// kernel: transducer_forward.1
= control target key start
LH: loop header
LB: loop body
LE: loop exit
PB: predicated region body
PF: predicated region fallthrough
CT: control target
= control target key end

     0   :  { %s6139_s0 = inlined_call_operand.vmem [shape: s32[2], index: 0, kind: input, shape index: {}]   ;;  %s6140_s2 = inlined_call_operand.vmem [shape: f32[2,16,8], index: 2, kind: input, shape index: {}]   ;;  %s6141_s3 = inlined_call_operand.vmem [shape: f32[16,32], index: 3, kind: input, shape index: {}]   ;;  %s6142_s4 = inlined_call_operand.vmem [shape: f32[2,8,64], index: 4, kind: input, shape index: {}]   ;;  %s6143_s5 = inlined_call_operand.vmem [shape: f32[2,8,128], index: 5, kind: input, shape index: {}]   ;;  %s6144_s6 = inlined_call_operand.vmem [shape: f32[32,128], index: 6, kind: input, shape index: {}]   ;;  %s6145_s7 = inlined_call_operand.vmem [shape: f32[392,128], index: 7, kind: input, shape index: {}]   ;;  %s6146_s8 = inlined_call_operand.vmem [shape: f32[2,1,128], index: 8, kind: output, shape index: {}]   ;;  %s6147_s1 = inlined_call_operand.vmem [shape: s32[2], index: 1, kind: input, shape index: {}]  }
   0x1   :  { %s13_s29 = sshll.u32 %s6139_s0, 4  ;;  %s17_s10 = sshll.u32 %s6147_s1, 4  ;;  %s14_s29 = int_to_ptr.vmem [resolvable:$true] %s13_s29  ;;  %s18_s10 = int_to_ptr.vmem [resolvable:$true] %s17_s10 }
   0x2   :  { %s4988_s11 = scalar_lea.vmem %s14_s29, 16  ;;  %p4993_p1 = scmp.lt.s32.totalorder %s14_s29, %s14_s29 }
   0x3   :  { %p4989_p0 = scmp.ne.s32.totalorder %s14_s29, %s4988_s11  ;;  %p4994_p2 = scmp.lt.s32.totalorder %s4988_s11, %s4988_s11 }
   0x5   :  { %p4995_p3 = por %p4994_p2, %p4993_p1 }
   0x7   :  { %p4996_p4 = pnand %p4995_p3, %p4989_p0 }
   0x9   :  { %4999 = shalt.err (!%p4996_p4)  }
   0xa   :  { %s5046_s12 = smov [#allocation4]   ;;  %s5000_s13 = scalar_lea.vmem %s18_s10, 16 }
   0xb   :  { %16 = dma.vmem_to_smem %s14_s29, 16, %s5046_s12, [#allocation3] }
   0xc   :  { %p5001_p5 = scmp.ne.s32.totalorder %s18_s10, %s5000_s13  ;;  %p5005_p6 = scmp.lt.s32.totalorder %s18_s10, %s18_s10 }
   0xd   :  { %p5006_p7 = scmp.lt.s32.totalorder %s5000_s13, %s5000_s13 }
   0xf   :  { %p5007_p8 = por %p5006_p7, %p5005_p6 }
  0x11   :  { %p5008_p9 = pnand %p5007_p8, %p5001_p5 }
  0x13   :  { %5011 = shalt.err (!%p5008_p9)  }
  0x14   :  { %s5047_s0 = smov [#allocation5]  }
  0x15   :  { %20 = dma.vmem_to_smem %s18_s10, 16, %s5047_s0, [#allocation3] }
  0x16   :  { %5028 = dma.done.wait [#allocation3], 32 }
  0x17   :  { %5029 = vsyncadd [#allocation3], 4294967264 }
  0x18   :  { %22 = sfence }
  0x19   :  { %s5120_s1 = smov 0  }
  0x1a LB: > { %s5126_s14 = sadd.s32 4294967295, %s5032_s1   ;;  %p4169_p10 = scmp.ge.s32.totalorder %s5032_s1, 1  ;;  %s5032_s1 = sphi %s5120_s1, %s28_s1  }
  0x1b   : > { %p242_p11 = scmp.lt.s32.totalorder %s5032_s1, 3 }
  0x1d   : > { %p243_p12 = pnand %p4169_p10, %p242_p11 }
  0x1e   : > { %p278_p13 = scmp.lt.s32.totalorder (!%p243_p12), %s5126_s14, 1  ;;  %s5049_s21 = smov (!%p243_p12), 120  }
  0x1f   : > { %246 = sbr.rel (%p243_p12) target bundleno = 9379 (0x24a3), region = 44  ;;  %s5050_s22 = smov (!%p243_p12), 88  }
  0x20   : > { %s403_s24 = sld [smem:[#allocation4 + %s5126_s14]] (!%p243_p12)  ;;  %s5053_s27 = smov (!%p243_p12), 56  }
  0x21   : > { %s5054_s28 = smov (!%p243_p12), 80   ;;  %s5055_s29 = smov (!%p243_p12), 112  }
  0x22   : > { %s5056_s30 = smov (!%p243_p12), 48   ;;  %s5057_s9 = smov (!%p243_p12), 72  }
  0x23   : > { %s5058_s10 = smov (!%p243_p12), 104   ;;  %s5059_s11 = smov (!%p243_p12), 40  }
  0x24   : > { %v312_v0 = vld [vmem:[%s6145_s7] sm:$0xff]  ;;  %v300_v1 = vlaneseq  ;;  %s5135_s17 = scalar_select %p278_p13, %s5126_s14, 1  ;;  %vm317_vm0 = vcmask 64512   ;;  %v400_v21 = vld [vmem:[%s6141_s3 + $0x8] sm:$0xff]  ;;  %vm433_vm1 = vcmask 261120   ;;  %v415_v37 = vld [vmem:[%s6145_s7 + $0x58] sm:$0xff] }
  0x25   : > { %4430 = vmatprep.subr.mxu0 %v312_v0  ;;  %v294_v3 = vld [vmem:[%s6144_s6] sm:$0xff]  ;;  %v414_v38 = vld [vmem:[%s6145_s7 + $0x50] sm:$0xff]  ;;  %v413_v39 = vld [vmem:[%s6145_s7 + $0x48] sm:$0xff]  ;;  %vm651_vm3 = vcmask 130048   ;;  %s5060_s12 = smov 8   ;;  %s6148_s13 = smov 16  }
  0x26   : > { %4431 = vmatpush3.msra.mxu0 %v312_v0  ;;  %v5138_v2 = vshrl.u32 %v300_v1, 7  ;;  %s4276_s20 = sshll.u32 %s5135_s17, 4  ;;  %v399_v18 = vld [vmem:[%s6141_s3] sm:$0xff]  ;;  %v5198_v46 = vld [vmem:[%s6144_s6 + $0x8] sm:$0xff]  ;;  %p404_p0 = scmp.gt.s32.totalorder %s403_s24, 1  ;;  %vm1401_vm4 = vcmask 195584  }
  0x27   : > { %s282_s26 = scalar_lea.vmem %s6140_s2, %s4276_s20  ;;  %v416_v36 = vld [vmem:[%s6145_s7 + $0x60] sm:$0xff]  ;;  %s5048_s20 = smov 96   ;;  %vm1618_vm5 = vcmask 523264   ;;  %vm3773_vm6 = vcmask 7168   ;;  %vm3790_vm7 = vcmask 15360  }
  0x28   : > { %v5149_v4 = vsub.s32 0, %v5138_v2  ;;  %v5152_v5 = vsub.s32 1, %v5138_v2  ;;  %v298_v6 = vld [vmem:[%s282_s26] sm:$0xff]  ;;  %v299_v7 = vld [vmem:[%s282_s26 + $0x8] sm:$0xff]  ;;  %v5162_v14 = vsub.s32 2, %v5138_v2  ;;  %4435 = vmatprep.subr.mxu1 %v416_v36  ;;  %v5201_v47 = vsub.s32 3, %v5138_v2 }
  0x29   : > { %4436 = vmatpush3.msra.mxu1 %v416_v36  ;;  %v5210_v58 = vsub.s32 4, %v5138_v2  ;;  %s405_s25 = scalar_select %p404_p0, %s403_s24, 1  ;;  %vm3810_vm8 = vcmp.eq.s32.totalorder %v5138_v2, 0  ;;  %vm3839_vm9 = vcmp.eq.s32.totalorder %v5138_v2, 1  ;;  %vm3870_vm10 = vcmp.eq.s32.totalorder %v5138_v2, 2 }
  0x2a   : > { %v303_v8 = vrot.slane %v294_v3, %v5149_v4  ;;  %v309_v9 = vrot.slane %v294_v3, %v5152_v5  ;;  %v316_v15 = vrot.slane %v294_v3, %v5162_v14  ;;  %4437 = vmatprep.subr.mxu1 %v415_v37  ;;  %v464_v48 = vrot.slane %v5198_v46, %v5162_v14  ;;  %p4176_p1 = scmp.lt.s32.totalorder %s403_s24, 16  ;;  %s5052_s26 = smov 64  }
  0x2b   : > { %4438 = vmatpush3.msra.mxu1 %v415_v37  ;;  %v470_v51 = vrot.slane %v5198_v46, %v5201_v47  ;;  %v476_v59 = vrot.slane %v5198_v46, %v5210_v58  ;;  %s6150_s0 = smov 24   ;;  %vm3897_vm11 = vcmp.eq.s32.totalorder %v5138_v2, 3  ;;  %vm3924_vm12 = vcmp.eq.s32.totalorder %v5138_v2, 4 }
  0x2c   : > { %v304_v10 = vsub.f32 %v298_v6, %v303_v8  ;;  %v305_v11 = vsub.f32 %v299_v7, %v303_v8  ;;  %4439 = vmatprep.subr.mxu1 %v414_v38  ;;  %s6159_s25 = smov (!%p4176_p1, %s405_s25), 16 }
  0x2d   : > { %4440 = vmatpush3.msra.mxu1 %v414_v38  ;;  %p4263_p2 = scmp.le.s32.totalorder %s6159_s25, 1 }
  0x2e   : > { %v310_v12 = vmul.f32 %v309_v9, %v304_v10  ;;  %v311_v13 = vmul.f32 %v309_v9, %v305_v11  ;;  %4441 = vmatprep.subr.mxu1 %v413_v39  ;;  %v409_v10 = vand.u32 127, %v300_v1  ;;  %v410_v11 = vstv %s6159_s25 }
  0x2f   : > { %4442 = vmatpush3.msra.mxu1 %v413_v39 }
  0x30   : > { %4432 = vmatprep.mubr.msk.f32.mxu0 %vm317_vm0, %v310_v12  ;;  %vm411_vm2 = vcmp.lt.s32.totalorder %v409_v10, %v410_v11 }
  0x31   : > { %4433 = vmatmul.mubr.msk.f32.vlgmr.msra.gmra.mxu0 %vm317_vm0, %v311_v13  ;;  %v5051_v13 = vmov -1e+30  }
  0xf1   : > { %v4434_v16 = vpop.f32.mrf.mxu0 }
  0xf2   : > { %v396_v19 = vadd.f32 %v4434_v16, %v316_v15 }
  0xf3   : > { %v390_v17 = vpop.f32.mrf.mxu0 }
  0xf4   : > { %v391_v20 = vadd.f32 %v390_v17, %v316_v15  ;;  %v5173_v23 = vadd.f32 %v400_v21, %v396_v19  ;;  %v5250_v15 = vsel %vm411_vm2, 0.0, %v5051_v13 }
  0xf6   : > { %v5171_v22 = vadd.f32 %v399_v18, %v391_v20  ;;  %v437_v25 = vsel %vm433_vm1, %v5173_v23, 0.0 }
  0xf8   : > { %v434_v24 = vsel %vm433_vm1, %v5171_v22, 0.0 }
  0xf9   : > { %435 = vadd.xlane.f32.xlu0 %v434_v24 }
  0xfd   : > { %438 = vadd.xlane.f32.xlu0 %v437_v25 }
 0x182   : > { %v436_v26 = vpop.xlane.xlu0 %435 }
 0x183   : > { %v441_v27 = vmul.f32 0.03125, %v436_v26 }
 0x185   : > { %v443_v28 = vsub.f32 %v5171_v22, %v441_v27 }
 0x186   : > { %v439_v29 = vpop.xlane.xlu0 %438 }
 0x187   : > { %v442_v30 = vmul.f32 0.03125, %v439_v29  ;;  %v445_v31 = vmul.f32 %v443_v28, %v443_v28 }
 0x189   : > { %v444_v32 = vsub.f32 %v5173_v23, %v442_v30  ;;  %v447_v33 = vsel %vm433_vm1, %v445_v31, 0.0 }
 0x18a   : > { %448 = vadd.xlane.f32.xlu1 %v447_v33 }
 0x18b   : > { %v446_v34 = vmul.f32 %v444_v32, %v444_v32 }
 0x18d   : > { %v450_v35 = vsel %vm433_vm1, %v446_v34, 0.0 }
 0x18e   : > { %451 = vadd.xlane.f32.xlu1 %v450_v35 }
 0x213   : > { %v449_v40 = vpop.xlane.xlu1 %448 }
 0x214   : > { %v453_v41 = vmul.f32 0.03125, %v449_v40 }
 0x216   : > { %v455_v42 = vadd.f32 1e-05, %v453_v41 }
 0x217   : > { %v452_v43 = vpop.xlane.xlu1 %451 }
 0x218   : > { %4757 = vrsqrt.f32 %v455_v42  ;;  %v454_v44 = vmul.f32 0.03125, %v452_v43 }
 0x21a   : > { %v456_v45 = vadd.f32 1e-05, %v454_v44 }
 0x21c   : > { %4759 = vrsqrt.f32 %v456_v45 }
 0x225   : > { %v4758_v49 = vpop.eup %4757 }
 0x226   : > { %v459_v50 = vmul.f32 %v4758_v49, %v443_v28 }
 0x228   : > { %v465_v52 = vmul.f32 %v464_v48, %v459_v50 }
 0x229   : > { %v4760_v53 = vpop.eup %4759 }
 0x22a   : > { %v460_v54 = vmul.f32 %v4760_v53, %v444_v32  ;;  %v471_v55 = vadd.f32 %v470_v51, %v465_v52 }
 0x22c   : > { %v466_v56 = vmul.f32 %v464_v48, %v460_v54  ;;  %4443 = vmatprep.mubr.msk.f32.mxu1 %vm433_vm1, %v471_v55 }
 0x22e   : > { %v472_v57 = vadd.f32 %v470_v51, %v466_v56 }
 0x230   : > { %4444 = vmatmul.mubr.msk.f32.vlgmr.msra.gmra.mxu1 %vm433_vm1, %v472_v57 }
 0x2f0   : > { %v4445_v60 = vpop.f32.mrf.mxu1 }
 0x2f1   : > { %v5214_v61 = vadd.f32 %v4445_v60, %v476_v59 }
 0x2f2   : > { %v549_v62 = vpop.f32.mrf.mxu1 }
 0x2f3   : > { %v5216_v63 = vadd.f32 %v549_v62, %v476_v59  ;;  %562 = vrot.lane.b32.xlu0 %v5214_v61, %s5048_s20 }
 0x2f5   : > { %560 = vrot.lane.b32.xlu1 %v5216_v63, %s5048_s20  ;;  %4450 = vmatprep.mubr.msk.f32.mxu0 %vm317_vm0, %v5216_v63 }
 0x2f7   : > { %761 = vrot.lane.b32.xlu0 %v5216_v63, %s5049_s21 }
 0x2f9   : > { %767 = vrot.lane.b32.xlu1 %v5214_v61, %s5050_s22 }
 0x2fd   : > { %765 = vrot.lane.b32.xlu1 %v5216_v63, %s5050_s22 }
 0x301   : > { %763 = vrot.lane.b32.xlu1 %v5214_v61, %s5049_s21 }
 0x365   : > { %v563_v0 = vpop.permute.xlu0 %562 }
 0x366   : > { %4446 = vmatprep.subr.msk.mxu0 %vm317_vm0, %v563_v0 }
 0x367   : > { %4447 = vmatpush3.xpose.msk.msra.mxu0 %vm317_vm0, %v563_v0  ;;  %v561_v3 = vpop.permute.xlu1 %560 }
 0x368   : > { %4448 = vmatprep.subr.msk.mxu0 %vm317_vm0, %v561_v3 }
 0x369   : > { %v762_v7 = vpop.permute.xlu0 %761 }
 0x36b   : > { %4449 = vmatpush3.xpose.msk.msra.mxu0 %vm317_vm0, %v561_v3  ;;  %v768_v6 = vpop.permute.xlu1 %767 }
 0x36c   : > { %4460 = vmatprep.subr.msk.mxu0 %vm317_vm0, %v768_v6 }
 0x36e   : > { %4451 = vmatmul.mubr.msk.f32.vlgmr.msra.gmra.mxu0 %vm317_vm0, %v5214_v61 }
 0x36f   : > { %v766_v8 = vpop.permute.xlu1 %765  ;;  %4461 = vmatpush3.xpose.msk.msra.mxu0 %vm317_vm0, %v768_v6  ;;  %4464 = vmatprep.mubr.msk.f32.mxu0 %vm317_vm0, %v762_v7 }
 0x370   : > { %4462 = vmatprep.subr.msk.mxu0 %vm317_vm0, %v766_v8 }
 0x373   : > { %4463 = vmatpush3.xpose.msk.msra.mxu0 %vm317_vm0, %v766_v8  ;;  %v764_v9 = vpop.permute.xlu1 %763 }
 0x376   : > { %4465 = vmatmul.mubr.msk.f32.vlgmr.msra.gmra.mxu0 %vm317_vm0, %v764_v9 }
 0x42e   : > { %v4452_v12 = vpop.f32.mrf.mxu0 }
 0x42f   : > { %v648_v16 = vmul.f32 0.35355338, %v4452_v12 }
 0x430   : > { %v638_v17 = vpop.f32.mrf.mxu0 }
 0x431   : > { %v647_v18 = vmul.f32 0.35355338, %v638_v17  ;;  %v650_v19 = vadd.f32 %v648_v16, %v5250_v15 }
 0x433   : > { %v655_v20 = vsel %vm651_vm3, %v650_v19, -inf  ;;  %v649_v21 = vadd.f32 %v647_v18, %v5250_v15 }
 0x434   : > { %656 = vmax.xlane.f32.xlu1 %v655_v20 }
 0x435   : > { %v652_v1 = vsel %vm651_vm3, %v649_v21, -inf }
 0x436   : > { %v4466_v24 = vpop.f32.mrf.mxu0  ;;  %653 = vmax.xlane.f32.xlu0 %v652_v1 }
 0x437   : > { %v853_v26 = vmul.f32 0.35355338, %v4466_v24 }
 0x438   : > { %v843_v25 = vpop.f32.mrf.mxu0 }
 0x439   : > { %v852_v27 = vmul.f32 0.35355338, %v843_v25  ;;  %v855_v30 = vadd.f32 %v853_v26, %v5250_v15 }
 0x43b   : > { %v854_v28 = vadd.f32 %v852_v27, %v5250_v15  ;;  %v859_v31 = vsel %vm651_vm3, %v855_v30, -inf }
 0x43d   : > { %v856_v29 = vsel %vm651_vm3, %v854_v28, -inf }
 0x43e   : > { %857 = vmax.xlane.f32.xlu0 %v856_v29 }
 0x442   : > { %860 = vmax.xlane.f32.xlu0 %v859_v31 }
 0x445   : > { %674 = vrot.lane.b32.xlu1 %v5216_v63, %s5052_s26 }
 0x449   : > { %880 = vrot.lane.b32.xlu1 %v5214_v61, %s5053_s27 }
 0x44d   : > { %878 = vrot.lane.b32.xlu1 %v5216_v63, %s5053_s27 }
 0x458   : > { %676 = vrot.lane.b32.xlu0 %v5214_v61, %s5052_s26 }
 0x4bd   : > { %v657_v32 = vpop.xlane.xlu1 %656 }
 0x4be   : > { %v659_v33 = vsub.f32 %v650_v19, %v657_v32 }
 0x4bf   : > { %v654_v34 = vpop.xlane.xlu0 %653 }
 0x4c0   : > { %v662_v35 = vmul.f32 1.442695, %v659_v33  ;;  %v658_v36 = vsub.f32 %v649_v21, %v654_v34 }
 0x4c1   : > { %v675_v43 = vpop.permute.xlu1 %674 }
 0x4c2   : > { %4761 = vpow2.f32 %v662_v35  ;;  %v660_v37 = vmul.f32 1.442695, %v658_v36 }
 0x4c4   : > { %4763 = vpow2.f32 %v660_v37 }
 0x4c5   : > { %v881_v52 = vpop.permute.xlu1 %880 }
 0x4c7   : > { %v858_v38 = vpop.xlane.xlu0 %857 }
 0x4c8   : > { %v862_v39 = vsub.f32 %v854_v28, %v858_v38 }
 0x4c9   : > { %v879_v57 = vpop.permute.xlu1 %878 }
 0x4ca   : > { %v864_v40 = vmul.f32 1.442695, %v862_v39 }
 0x4cb   : > { %v861_v41 = vpop.xlane.xlu0 %860 }
 0x4cc   : > { %4765 = vpow2.f32 %v864_v40  ;;  %v863_v42 = vsub.f32 %v855_v30, %v861_v41 }
 0x4ce   : > { %v866_v44 = vmul.f32 1.442695, %v863_v42 }
 0x4cf   : > { %v4762_v45 = vpop.eup %4761  ;;  %v677_v48 = vpop.permute.xlu0 %676 }
 0x4d0   : > { %4767 = vpow2.f32 %v866_v44  ;;  %4453 = vmatprep.subr.mxu1 %v677_v48  ;;  %v667_v49 = vsel %vm651_vm3, %v4762_v45, 0.0 }
 0x4d1   : > { %v4764_v50 = vpop.eup %4763  ;;  %668 = vadd.xlane.f32.xlu1 %v667_v49  ;;  %4454 = vmatpush3.msra.mxu1 %v677_v48 }
 0x4d2   : > { %4455 = vmatprep.subr.mxu1 %v675_v43  ;;  %v664_v51 = vsel %vm651_vm3, %v4764_v50, 0.0 }
 0x4d3   : > { %665 = vadd.xlane.f32.xlu0 %v664_v51  ;;  %4456 = vmatpush3.msra.mxu1 %v675_v43 }
 0x4d4   : > { %4467 = vmatprep.subr.mxu1 %v881_v52 }
 0x4d9   : > { %v4766_v53 = vpop.eup %4765 }
 0x4da   : > { %v868_v54 = vsel %vm651_vm3, %v4766_v53, 0.0 }
 0x4db   : > { %869 = vadd.xlane.f32.xlu0 %v868_v54 }
 0x4dd   : > { %v4768_v55 = vpop.eup %4767 }
 0x4de   : > { %v871_v56 = vsel %vm651_vm3, %v4768_v55, 0.0 }
 0x4df   : > { %872 = vadd.xlane.f32.xlu1 %v871_v56 }
 0x4f0   : > { %969 = vrot.lane.b32.xlu1 %v5216_v63, %s5054_s28 }
 0x4f1   : > { %971 = vrot.lane.b32.xlu0 %v5214_v61, %s5054_s28 }
 0x4f4   : > { %967 = vrot.lane.b32.xlu1 %v5214_v61, %s5055_s29 }
 0x4f5   : > { %965 = vrot.lane.b32.xlu0 %v5216_v63, %s5055_s29 }
 0x55a   : > { %v669_v59 = vpop.xlane.xlu1 %668 }
 0x55b   : > { %4769 = vrcp.f32 %v669_v59 }
 0x55c   : > { %v666_v60 = vpop.xlane.xlu0 %665 }
 0x55d   : > { %4771 = vrcp.f32 %v666_v60 }
 0x564   : > { %v870_v62 = vpop.xlane.xlu0 %869 }
 0x565   : > { %4773 = vrcp.f32 %v870_v62 }
 0x568   : > { %v873_v0 = vpop.xlane.xlu1 %872  ;;  %v4770_v3 = vpop.eup %4769 }
 0x569   : > { %4775 = vrcp.f32 %v873_v0  ;;  %v673_v8 = vmul.f32 %v4770_v3, %v4762_v45  ;;  %v972_v9 = vpop.permute.xlu0 %971 }
 0x56a   : > { %v4772_v6 = vpop.eup %4771 }
 0x56b   : > { %v672_v7 = vmul.f32 %v4772_v6, %v4764_v50 }
 0x56c   : > { %v970_v18 = vpop.permute.xlu1 %969 }
 0x56d   : > { %4457 = vmatprep.mubr.msk.f32.mxu1 %vm651_vm3, %v672_v7  ;;  %v966_v17 = vpop.permute.xlu0 %965 }
 0x56e   : > { %4458 = vmatmul.mubr.msk.f32.vlgmr.msra.gmra.mxu1 %vm651_vm3, %v673_v8 }
 0x56f   : > { %4468 = vmatpush3.msra.mxu1 %v881_v52 }
 0x570   : > { %4469 = vmatprep.subr.mxu1 %v879_v57  ;;  %v968_v19 = vpop.permute.xlu1 %967 }
 0x571   : > { %4470 = vmatpush3.msra.mxu1 %v879_v57 }
 0x572   : > { %v4774_v10 = vpop.eup %4773  ;;  %4474 = vmatprep.subr.msk.mxu1 %vm317_vm0, %v972_v9 }
 0x573   : > { %v876_v11 = vmul.f32 %v4774_v10, %v4766_v53 }
 0x575   : > { %4471 = vmatprep.mubr.msk.f32.mxu1 %vm651_vm3, %v876_v11 }
 0x576   : > { %v4776_v12 = vpop.eup %4775 }
 0x577   : > { %v877_v16 = vmul.f32 %v4776_v12, %v4768_v55 }
 0x579   : > { %4472 = vmatmul.mubr.msk.f32.vlgmr.msra.gmra.mxu1 %vm651_vm3, %v877_v16 }
 0x57a   : > { %4475 = vmatpush3.xpose.msk.msra.mxu1 %vm317_vm0, %v972_v9  ;;  %4478 = vmatprep.mubr.msk.f32.mxu1 %vm317_vm0, %v966_v17 }
 0x57b   : > { %4476 = vmatprep.subr.msk.mxu1 %vm317_vm0, %v970_v18 }
 0x57e   : > { %4477 = vmatpush3.xpose.msk.msra.mxu1 %vm317_vm0, %v970_v18 }
 0x581   : > { %4479 = vmatmul.mubr.msk.f32.vlgmr.msra.gmra.mxu1 %vm317_vm0, %v968_v19 }
 0x62e   : > { %v5290_v20 = vpop.f32.mrf.mxu1 }
 0x630   : > { %v5292_v21 = vpop.f32.mrf.mxu1 }
 0x639   : > { %v5294_v1 = vpop.f32.mrf.mxu1 }
 0x63b   : > { %v5296_v24 = vpop.f32.mrf.mxu1 }
 0x641   : > { %v4480_v25 = vpop.f32.mrf.mxu1 }
 0x642   : > { %v1057_v26 = vmul.f32 0.35355338, %v4480_v25 }
 0x643   : > { %v1047_v27 = vpop.f32.mrf.mxu1 }
 0x644   : > { %v1056_v28 = vmul.f32 0.35355338, %v1047_v27  ;;  %v1059_v29 = vadd.f32 %v1057_v26, %v5250_v15 }
 0x646   : > { %v1063_v30 = vsel %vm651_vm3, %v1059_v29, -inf  ;;  %v1058_v31 = vadd.f32 %v1056_v28, %v5250_v15 }
 0x647   : > { %1064 = vmax.xlane.f32.xlu1 %v1063_v30 }
 0x648   : > { %v1060_v32 = vsel %vm651_vm3, %v1058_v31, -inf }
 0x649   : > { %1061 = vmax.xlane.f32.xlu0 %v1060_v32 }
 0x658   : > { %1082 = vrot.lane.b32.xlu1 %v5216_v63, %s5056_s30 }
 0x65c   : > { %1175 = vrot.lane.b32.xlu1 %v5214_v61, %s5057_s9 }
 0x660   : > { %1173 = vrot.lane.b32.xlu1 %v5216_v63, %s5057_s9 }
 0x664   : > { %1171 = vrot.lane.b32.xlu1 %v5214_v61, %s5058_s10 }
 0x6d0   : > { %v1065_v33 = vpop.xlane.xlu1 %1064 }
 0x6d1   : > { %v1067_v34 = vsub.f32 %v1059_v29, %v1065_v33  ;;  %v419_v33 = vld [vmem:[%s6145_s7 + $0x78] sm:$0xff] }
 0x6d2   : > { %v1062_v35 = vpop.xlane.xlu0 %1061 }
 0x6d3   : > { %v1070_v36 = vmul.f32 1.442695, %v1067_v34  ;;  %v1066_v37 = vsub.f32 %v1058_v31, %v1062_v35  ;;  %v418_v34 = vld [vmem:[%s6145_s7 + $0x70] sm:$0xff]  ;;  %v417_v35 = vld [vmem:[%s6145_s7 + $0x68] sm:$0xff] }
 0x6d4   : > { %v1083_v45 = vpop.permute.xlu1 %1082 }
 0x6d5   : > { %4777 = vpow2.f32 %v1070_v36  ;;  %v1068_v38 = vmul.f32 1.442695, %v1066_v37 }
 0x6d7   : > { %4779 = vpow2.f32 %v1068_v38 }
 0x6d8   : > { %v1176_v49 = vpop.permute.xlu1 %1175 }
 0x6dc   : > { %v1174_v55 = vpop.permute.xlu1 %1173 }
 0x6e0   : > { %v1172_v56 = vpop.permute.xlu1 %1171 }
 0x6e2   : > { %v4778_v39 = vpop.eup %4777 }
 0x6e3   : > { %v1075_v40 = vsel %vm651_vm3, %v4778_v39, 0.0 }
 0x6e4   : > { %v4780_v41 = vpop.eup %4779  ;;  %1076 = vadd.xlane.f32.xlu0 %v1075_v40 }
 0x6e5   : > { %v1072_v42 = vsel %vm651_vm3, %v4780_v41, 0.0 }
 0x6e8   : > { %1073 = vadd.xlane.f32.xlu0 %v1072_v42 }
 0x6fe   : > { %1084 = vrot.lane.b32.xlu0 %v5214_v61, %s5056_s30 }
 0x702   : > { %1169 = vrot.lane.b32.xlu0 %v5216_v63, %s5058_s10 }
 0x76d   : > { %v1077_v43 = vpop.xlane.xlu0 %1076 }
 0x76e   : > { %4781 = vrcp.f32 %v1077_v43 }
 0x771   : > { %v1074_v44 = vpop.xlane.xlu0 %1073 }
 0x772   : > { %4783 = vrcp.f32 %v1074_v44 }
 0x775   : > { %v1085_v48 = vpop.permute.xlu0 %1084 }
 0x776   : > { %4481 = vmatprep.subr.mxu0 %v1085_v48 }
 0x777   : > { %4482 = vmatpush3.msra.mxu0 %v1085_v48 }
 0x778   : > { %4483 = vmatprep.subr.mxu0 %v1083_v45 }
 0x779   : > { %4484 = vmatpush3.msra.mxu0 %v1083_v45  ;;  %v1170_v54 = vpop.permute.xlu0 %1169 }
 0x77a   : > { %4488 = vmatprep.subr.msk.mxu0 %vm317_vm0, %v1176_v49 }
 0x77b   : > { %v4782_v50 = vpop.eup %4781 }
 0x77c   : > { %v1081_v53 = vmul.f32 %v4782_v50, %v4778_v39 }
 0x77f   : > { %v4784_v51 = vpop.eup %4783 }
 0x780   : > { %v1080_v52 = vmul.f32 %v4784_v51, %v4780_v41 }
 0x782   : > { %4485 = vmatprep.mubr.msk.f32.mxu0 %vm651_vm3, %v1080_v52 }
 0x783   : > { %4486 = vmatmul.mubr.msk.f32.vlgmr.msra.gmra.mxu0 %vm651_vm3, %v1081_v53 }
 0x784   : > { %4489 = vmatpush3.xpose.msk.msra.mxu0 %vm317_vm0, %v1176_v49  ;;  %4492 = vmatprep.mubr.msk.f32.mxu0 %vm317_vm0, %v1170_v54 }
 0x785   : > { %4490 = vmatprep.subr.msk.mxu0 %vm317_vm0, %v1174_v55 }
 0x788   : > { %4491 = vmatpush3.xpose.msk.msra.mxu0 %vm317_vm0, %v1174_v55 }
 0x78b   : > { %4493 = vmatmul.mubr.msk.f32.vlgmr.msra.gmra.mxu0 %vm317_vm0, %v1172_v56 }
 0x843   : > { %v4487_v57 = vpop.f32.mrf.mxu0 }
 0x845   : > { %v1160_v59 = vpop.f32.mrf.mxu0 }
 0x84b   : > { %v4494_v60 = vpop.f32.mrf.mxu0 }
 0x84c   : > { %v1261_v62 = vmul.f32 0.35355338, %v4494_v60 }
 0x84d   : > { %v1251_v0 = vpop.f32.mrf.mxu0 }
 0x84e   : > { %v1260_v3 = vmul.f32 0.35355338, %v1251_v0  ;;  %v1263_v6 = vadd.f32 %v1261_v62, %v5250_v15 }
 0x850   : > { %v1267_v7 = vsel %vm651_vm3, %v1263_v6, -inf  ;;  %v1262_v8 = vadd.f32 %v1260_v3, %v5250_v15 }
 0x851   : > { %1268 = vmax.xlane.f32.xlu1 %v1267_v7 }
 0x852   : > { %v1264_v9 = vsel %vm651_vm3, %v1262_v8, -inf }
 0x853   : > { %1265 = vmax.xlane.f32.xlu0 %v1264_v9 }
 0x862   : > { %1286 = vrot.lane.b32.xlu1 %v5216_v63, %s5059_s11 }
 0x866   : > { %1375 = vrot.lane.b32.xlu1 %v5296_v24, %s5060_s12 }
 0x86a   : > { %1377 = vrot.lane.b32.xlu1 %v5294_v1, %s5060_s12 }
 0x86e   : > { %1385 = vrot.lane.b32.xlu1 %v4487_v57, %s6148_s13 }
 0x8da   : > { %v1269_v10 = vpop.xlane.xlu1 %1268 }
 0x8db   : > { %v1271_v11 = vsub.f32 %v1263_v6, %v1269_v10 }
 0x8dc   : > { %v1266_v12 = vpop.xlane.xlu0 %1265 }
 0x8dd   : > { %v1274_v16 = vmul.f32 1.442695, %v1271_v11  ;;  %v1270_v17 = vsub.f32 %v1262_v8, %v1266_v12  ;;  %v424_v11 = vld [vmem:[%s6145_s7 + $0xa0] sm:$0xff]  ;;  %v423_v12 = vld [vmem:[%s6145_s7 + $0x98] sm:$0xff] }
 0x8de   : > { %v1287_v28 = vpop.permute.xlu1 %1286  ;;  %4513 = vmatprep.subr.mxu0 %v424_v11 }
 0x8df   : > { %4785 = vpow2.f32 %v1274_v16  ;;  %v1272_v18 = vmul.f32 1.442695, %v1270_v17  ;;  %4514 = vmatpush3.msra.mxu0 %v424_v11  ;;  %v422_v16 = vld [vmem:[%s6145_s7 + $0x90] sm:$0xff]  ;;  %v421_v17 = vld [vmem:[%s6145_s7 + $0x88] sm:$0xff] }
 0x8e0   : > { %4515 = vmatprep.subr.mxu0 %v423_v12 }
 0x8e1   : > { %4787 = vpow2.f32 %v1272_v18  ;;  %4516 = vmatpush3.msra.mxu0 %v423_v12  ;;  %v432_v18 = vld [vmem:[%s6145_s7 + $0xe0] sm:$0xff] }
 0x8e2   : > { %v1376_v38 = vpop.permute.xlu1 %1375  ;;  %4517 = vmatprep.subr.mxu0 %v422_v16 }
 0x8e3   : > { %v1397_v42 = vsel %vm317_vm0, %v5292_v21, %v1376_v38  ;;  %v5367_v21 = vsub.s32 5, %v5138_v2  ;;  %4518 = vmatpush3.msra.mxu0 %v422_v16  ;;  %v1711_v16 = vld [vmem:[%s6145_s7 + $0x100] sm:$0xff] }
 0x8e4   : > { %4519 = vmatprep.subr.mxu0 %v421_v17 }
 0x8e5   : > { %v1490_v52 = vrot.slane %v5198_v46, %v5367_v21  ;;  %4520 = vmatpush3.msra.mxu0 %v421_v17  ;;  %v1710_v17 = vld [vmem:[%s6145_s7 + $0xf8] sm:$0xff] }
 0x8e6   : > { %v1378_v39 = vpop.permute.xlu1 %1377  ;;  %4543 = vmatprep.subr.mxu0 %v1711_v16 }
 0x8e7   : > { %v1398_v44 = vsel %vm317_vm0, %v5290_v20, %v1378_v39 }
 0x8ea   : > { %v1386_v40 = vpop.permute.xlu1 %1385 }
 0x8eb   : > { %v1400_v49 = vsel %vm651_vm3, %v1398_v44, %v1386_v40  ;;  %v5436_v44 = vld [vmem:[%s6144_s6 + $0x10] sm:$0xff] }
 0x8ec   : > { %v4786_v19 = vpop.eup %4785 }
 0x8ed   : > { %v1279_v63 = vsel %vm651_vm3, %v4786_v19, 0.0 }
 0x8ee   : > { %v4788_v25 = vpop.eup %4787  ;;  %1280 = vadd.xlane.f32.xlu0 %v1279_v63  ;;  %v430_v63 = vld [vmem:[%s6145_s7 + $0xd0] sm:$0xff] }
 0x8ef   : > { %v1276_v24 = vsel %vm651_vm3, %v4788_v25, 0.0 }
 0x8f2   : > { %1277 = vadd.xlane.f32.xlu0 %v1276_v24 }
 0x908   : > { %1288 = vrot.lane.b32.xlu0 %v5214_v61, %s5059_s11  ;;  %v420_v61 = vld [vmem:[%s6145_s7 + $0x80] sm:$0xff] }
 0x90c   : > { %1383 = vrot.lane.b32.xlu0 %v1160_v59, %s6148_s13 }
 0x977   : > { %v1281_v1 = vpop.xlane.xlu0 %1280 }
 0x978   : > { %4789 = vrcp.f32 %v1281_v1 }
 0x97b   : > { %v1278_v26 = vpop.xlane.xlu0 %1277 }
 0x97c   : > { %4791 = vrcp.f32 %v1278_v26 }
 0x97f   : > { %v1289_v27 = vpop.permute.xlu0 %1288 }
 0x980   : > { %4495 = vmatprep.subr.mxu1 %v1289_v27 }
 0x981   : > { %4496 = vmatpush3.msra.mxu1 %v1289_v27 }
 0x982   : > { %4497 = vmatprep.subr.mxu1 %v1287_v28 }
 0x983   : > { %4498 = vmatpush3.msra.mxu1 %v1287_v28  ;;  %v1384_v41 = vpop.permute.xlu0 %1383 }
 0x984   : > { %4502 = vmatprep.subr.mxu1 %v420_v61  ;;  %v1399_v45 = vsel %vm651_vm3, %v1397_v42, %v1384_v41  ;;  %v428_v41 = vld [vmem:[%s6145_s7 + $0xc0] sm:$0xff]  ;;  %v426_v42 = vld [vmem:[%s6145_s7 + $0xb0] sm:$0xff] }
 0x985   : > { %v4790_v29 = vpop.eup %4789 }
 0x986   : > { %v1285_v32 = vmul.f32 %v4790_v29, %v4786_v19  ;;  %v431_v19 = vld [vmem:[%s6145_s7 + $0xd8] sm:$0xff] }
 0x989   : > { %v4792_v30 = vpop.eup %4791 }
 0x98a   : > { %v1284_v31 = vmul.f32 %v4792_v30, %v4788_v25  ;;  %v429_v25 = vld [vmem:[%s6145_s7 + $0xc8] sm:$0xff]  ;;  %v5410_v30 = vsub.s32 6, %v5138_v2 }
 0x98c   : > { %4499 = vmatprep.mubr.msk.f32.mxu1 %vm651_vm3, %v1284_v31  ;;  %v5413_v31 = vsub.s32 7, %v5138_v2 }
 0x98d   : > { %4500 = vmatmul.mubr.msk.f32.vlgmr.msra.gmra.mxu1 %vm651_vm3, %v1285_v32  ;;  %v1522_v32 = vrot.slane %v5198_v46, %v5410_v30 }
 0x98e   : > { %4503 = vmatpush3.msra.mxu1 %v420_v61 }
 0x98f   : > { %4504 = vmatprep.subr.mxu1 %v419_v33 }
 0x990   : > { %4505 = vmatpush3.msra.mxu1 %v419_v33 }
 0x991   : > { %4506 = vmatprep.subr.mxu1 %v418_v34 }
 0x992   : > { %4507 = vmatpush3.msra.mxu1 %v418_v34  ;;  %v1528_v34 = vrot.slane %v5198_v46, %v5413_v31  ;;  %v427_v46 = vld [vmem:[%s6145_s7 + $0xb8] sm:$0xff] }
 0x993   : > { %4508 = vmatprep.subr.mxu1 %v417_v35 }
 0x994   : > { %4509 = vmatpush3.msra.mxu1 %v417_v35 }
 0x995   : > { %4524 = vmatprep.subr.mxu1 %v432_v18 }
 0xa4d   : > { %v4501_v36 = vpop.f32.mrf.mxu1 }
 0xa4e   : > { %1393 = vrot.lane.b32.xlu1 %v4501_v36, %s6150_s0 }
 0xa4f   : > { %v1364_v37 = vpop.f32.mrf.mxu1 }
 0xa50   : > { %1391 = vrot.lane.b32.xlu0 %v1364_v37, %s6150_s0 }
 0xac0   : > { %v1394_v43 = vpop.permute.xlu1 %1393 }
 0xac1   : > { %v1403_v51 = vsel %vm1401_vm4, %v1400_v49, %v1394_v43  ;;  %v425_v43 = vld [vmem:[%s6145_s7 + $0xa8] sm:$0xff] }
 0xac2   : > { %v1392_v48 = vpop.permute.xlu0 %1391 }
 0xac3   : > { %v1402_v50 = vsel %vm1401_vm4, %v1399_v45, %v1392_v48  ;;  %v1534_v45 = vrot.slane %v5436_v44, %v5149_v4 }
 0xac4   : > { %4510 = vmatprep.mubr.msk.f32.mxu1 %vm433_vm1, %v1402_v50 }
 0xac5   : > { %4511 = vmatmul.mubr.msk.f32.vlgmr.msra.gmra.mxu1 %vm433_vm1, %v1403_v51 }
 0xac6   : > { %4525 = vmatpush3.msra.mxu1 %v432_v18  ;;  %v1709_v18 = vld [vmem:[%s6145_s7 + $0xf0] sm:$0xff] }
 0xac7   : > { %4526 = vmatprep.subr.mxu1 %v431_v19 }
 0xac8   : > { %4527 = vmatpush3.msra.mxu1 %v431_v19  ;;  %v1708_v19 = vld [vmem:[%s6145_s7 + $0xe8] sm:$0xff] }
 0xac9   : > { %4528 = vmatprep.subr.mxu1 %v430_v63 }
 0xaca   : > { %4529 = vmatpush3.msra.mxu1 %v430_v63 }
 0xacb   : > { %4530 = vmatprep.subr.mxu1 %v429_v25 }
 0xacc   : > { %4531 = vmatpush3.msra.mxu1 %v429_v25 }
 0xacd   : > { %4532 = vmatprep.subr.mxu1 %v428_v41 }
 0xace   : > { %4533 = vmatpush3.msra.mxu1 %v428_v41 }
 0xacf   : > { %4534 = vmatprep.subr.mxu1 %v427_v46 }
 0xad0   : > { %4535 = vmatpush3.msra.mxu1 %v427_v46 }
 0xad1   : > { %4536 = vmatprep.subr.mxu1 %v426_v42 }
 0xad2   : > { %4537 = vmatpush3.msra.mxu1 %v426_v42 }
 0xad3   : > { %4538 = vmatprep.subr.mxu1 %v425_v43 }
 0xad4   : > { %4539 = vmatpush3.msra.mxu1 %v425_v43 }
 0xb85   : > { %v4512_v20 = vpop.f32.mrf.mxu1 }
 0xb86   : > { %v1486_v53 = vadd.f32 %v4512_v20, %v5173_v23 }
 0xb87   : > { %v1476_v54 = vpop.f32.mrf.mxu1 }
 0xb88   : > { %v5372_v55 = vadd.f32 %v1490_v52, %v1486_v53  ;;  %v1485_v56 = vadd.f32 %v1476_v54, %v5171_v22  ;;  %v1705_v53 = vrot.slane %v5436_v44, %v5152_v5 }
 0xb8a   : > { %v5375_v57 = vadd.f32 %v1490_v52, %v1485_v56  ;;  %v1496_v59 = vsel %vm433_vm1, %v5372_v55, 0.0 }
 0xb8b   : > { %1497 = vadd.xlane.f32.xlu1 %v1496_v59 }
 0xb8c   : > { %v1493_v60 = vsel %vm433_vm1, %v5375_v57, 0.0 }
 0xb8d   : > { %1494 = vadd.xlane.f32.xlu0 %v1493_v60 }
 0xc14   : > { %v1498_v62 = vpop.xlane.xlu1 %1497 }
 0xc15   : > { %v1500_v0 = vmul.f32 0.03125, %v1498_v62 }
 0xc16   : > { %v1495_v3 = vpop.xlane.xlu0 %1494 }
 0xc17   : > { %v1499_v6 = vmul.f32 0.03125, %v1495_v3  ;;  %v1502_v23 = vsub.f32 %v5372_v55, %v1500_v0 }
 0xc19   : > { %v1501_v7 = vsub.f32 %v5375_v57, %v1499_v6  ;;  %v1504_v9 = vmul.f32 %v1502_v23, %v1502_v23 }
 0xc1b   : > { %v1503_v8 = vmul.f32 %v1501_v7, %v1501_v7  ;;  %v1508_v10 = vsel %vm433_vm1, %v1504_v9, 0.0 }
 0xc1d   : > { %v1505_v22 = vsel %vm433_vm1, %v1503_v8, 0.0 }
 0xc1e   : > { %1506 = vadd.xlane.f32.xlu0 %v1505_v22 }
 0xc22   : > { %1509 = vadd.xlane.f32.xlu0 %v1508_v10 }
 0xca7   : > { %v1507_v24 = vpop.xlane.xlu0 %1506 }
 0xca8   : > { %v1511_v1 = vmul.f32 0.03125, %v1507_v24 }
 0xcaa   : > { %v1513_v26 = vadd.f32 1e-05, %v1511_v1 }
 0xcab   : > { %v1510_v27 = vpop.xlane.xlu0 %1509 }
 0xcac   : > { %4793 = vrsqrt.f32 %v1513_v26  ;;  %v1512_v28 = vmul.f32 0.03125, %v1510_v27 }
 0xcae   : > { %v1514_v29 = vadd.f32 1e-05, %v1512_v28 }
 0xcb0   : > { %4795 = vrsqrt.f32 %v1514_v29  ;;  %v1757_v29 = vrot.slane %v5436_v44, %v5162_v14 }
 0xcb9   : > { %v4794_v61 = vpop.eup %4793 }
 0xcba   : > { %v1517_v33 = vmul.f32 %v4794_v61, %v1501_v7 }
 0xcbc   : > { %v1523_v35 = vmul.f32 %v1522_v32, %v1517_v33 }
 0xcbd   : > { %v4796_v36 = vpop.eup %4795 }
 0xcbe   : > { %v1518_v37 = vmul.f32 %v4796_v36, %v1502_v23  ;;  %v1529_v38 = vadd.f32 %v1528_v34, %v1523_v35  ;;  %v1763_v35 = vrot.slane %v5436_v44, %v5201_v47 }
 0xcc0   : > { %v1524_v39 = vmul.f32 %v1522_v32, %v1518_v37  ;;  %4521 = vmatprep.mubr.msk.f32.mxu0 %vm433_vm1, %v1529_v38 }
 0xcc2   : > { %v1530_v40 = vadd.f32 %v1528_v34, %v1524_v39  ;;  %v1769_v39 = vrot.slane %v5436_v44, %v5210_v58 }
 0xcc4   : > { %4522 = vmatmul.mubr.msk.f32.vlgmr.msra.gmra.mxu0 %vm433_vm1, %v1530_v40 }
 0xcc5   : > { %4544 = vmatpush3.msra.mxu0 %v1711_v16 }
 0xcc6   : > { %4545 = vmatprep.subr.mxu0 %v1710_v17 }
 0xcc7   : > { %4546 = vmatpush3.msra.mxu0 %v1710_v17 }
 0xcc8   : > { %4547 = vmatprep.subr.mxu0 %v1709_v18 }
 0xcc9   : > { %4548 = vmatpush3.msra.mxu0 %v1709_v18 }
 0xcca   : > { %4549 = vmatprep.subr.mxu0 %v1708_v19 }
 0xccb   : > { %4550 = vmatpush3.msra.mxu0 %v1708_v19 }
 0xd84   : > { %v4523_v48 = vpop.f32.mrf.mxu0 }
 0xd85   : > { %v1613_v49 = vadd.f32 %v4523_v48, %v1534_v45 }
 0xd86   : > { %v1607_v50 = vpop.f32.mrf.mxu0 }
 0xd87   : > { %v1608_v51 = vadd.f32 %v1607_v50, %v1534_v45  ;;  %v1617_v20 = vmax.f32 %v1613_v49, 0.0 }
 0xd89   : > { %v1616_v52 = vmax.f32 %v1608_v51, 0.0 }
 0xd8b   : > { %4540 = vmatprep.mubr.msk.f32.mxu1 %vm1618_vm5, %v1616_v52 }
 0xd8c   : > { %4541 = vmatmul.mubr.msk.f32.vlgmr.msra.gmra.mxu1 %vm1618_vm5, %v1617_v20 }
 0xe4c   : > { %v4542_v54 = vpop.f32.mrf.mxu1 }
 0xe4d   : > { %v1701_v56 = vadd.f32 %v4542_v54, %v5372_v55 }
 0xe4e   : > { %v1691_v59 = vpop.f32.mrf.mxu1 }
 0xe4f   : > { %v5445_v60 = vadd.f32 %v1705_v53, %v1701_v56  ;;  %v1700_v62 = vadd.f32 %v1691_v59, %v5375_v57 }
 0xe51   : > { %v5448_v0 = vadd.f32 %v1705_v53, %v1700_v62  ;;  %v1731_v3 = vsel %vm433_vm1, %v5445_v60, 0.0 }
 0xe52   : > { %1732 = vadd.xlane.f32.xlu1 %v1731_v3 }
 0xe53   : > { %v1728_v6 = vsel %vm433_vm1, %v5448_v0, 0.0 }
 0xe54   : > { %1729 = vadd.xlane.f32.xlu0 %v1728_v6 }
 0xedb   : > { %v1733_v23 = vpop.xlane.xlu1 %1732 }
 0xedc   : > { %v1735_v7 = vmul.f32 0.03125, %v1733_v23 }
 0xedd   : > { %v1730_v8 = vpop.xlane.xlu0 %1729 }
 0xede   : > { %v1737_v55 = vsub.f32 %v5445_v60, %v1735_v7  ;;  %v1734_v22 = vmul.f32 0.03125, %v1730_v8 }
 0xee0   : > { %v1736_v9 = vsub.f32 %v5448_v0, %v1734_v22  ;;  %v1739_v10 = vmul.f32 %v1737_v55, %v1737_v55 }
 0xee2   : > { %v1743_v57 = vsel %vm433_vm1, %v1739_v10, 0.0  ;;  %v1738_v11 = vmul.f32 %v1736_v9, %v1736_v9 }
 0xee3   : > { %1744 = vadd.xlane.f32.xlu1 %v1743_v57 }
 0xee4   : > { %v1740_v12 = vsel %vm433_vm1, %v1738_v11, 0.0 }
 0xee5   : > { %1741 = vadd.xlane.f32.xlu0 %v1740_v12 }
 0xf6c   : > { %v1745_v63 = vpop.xlane.xlu1 %1744 }
 0xf6d   : > { %v1747_v25 = vmul.f32 0.03125, %v1745_v63 }
 0xf6e   : > { %v1742_v24 = vpop.xlane.xlu0 %1741 }
 0xf6f   : > { %v1749_v1 = vadd.f32 1e-05, %v1747_v25  ;;  %v1746_v26 = vmul.f32 0.03125, %v1742_v24 }
 0xf71   : > { %4797 = vrsqrt.f32 %v1749_v1  ;;  %v1748_v27 = vadd.f32 1e-05, %v1746_v26 }
 0xf73   : > { %4799 = vrsqrt.f32 %v1748_v27 }
 0xf7e   : > { %v4798_v28 = vpop.eup %4797 }
 0xf7f   : > { %v1753_v32 = vmul.f32 %v4798_v28, %v1737_v55 }
 0xf80   : > { %v4800_v61 = vpop.eup %4799 }
 0xf81   : > { %v1752_v33 = vmul.f32 %v4800_v61, %v1736_v9  ;;  %v1759_v34 = vmul.f32 %v1757_v29, %v1753_v32 }
 0xf83   : > { %v1758_v36 = vmul.f32 %v1757_v29, %v1752_v33  ;;  %v1765_v38 = vadd.f32 %v1763_v35, %v1759_v34 }
 0xf85   : > { %v1764_v37 = vadd.f32 %v1763_v35, %v1758_v36 }
 0xf87   : > { %4551 = vmatprep.mubr.msk.f32.mxu0 %vm433_vm1, %v1764_v37 }
 0xf88   : > { %4552 = vmatmul.mubr.msk.f32.vlgmr.msra.gmra.mxu0 %vm433_vm1, %v1765_v38 }
0x1048   : > { %v4553_v40 = vpop.f32.mrf.mxu0 }
0x1049   : > { %v5478_v41 = vadd.f32 %v4553_v40, %v1769_v39 }
0x104a   : > { %v1842_v46 = vpop.f32.mrf.mxu0 }
0x104b   : > { %v5480_v42 = vadd.f32 %v1842_v46, %v1769_v39  ;;  %1855 = vrot.lane.b32.xlu0 %v5478_v41, %s5048_s20 }
0x104d   : > { %1853 = vrot.lane.b32.xlu1 %v5480_v42, %s5048_s20  ;;  %4558 = vmatprep.mubr.msk.f32.mxu0 %vm317_vm0, %v5480_v42 }
0x104f   : > { %2053 = vrot.lane.b32.xlu0 %v5480_v42, %s5049_s21 }
0x1051   : > { %2059 = vrot.lane.b32.xlu1 %v5478_v41, %s5050_s22 }
0x1055   : > { %2057 = vrot.lane.b32.xlu1 %v5480_v42, %s5050_s22 }
0x1059   : > { %2055 = vrot.lane.b32.xlu1 %v5478_v41, %s5049_s21  ;;  %s6152_s21 = smov 16  }
0x10bd   : > { %v1856_v43 = vpop.permute.xlu0 %1855 }
0x10be   : > { %4554 = vmatprep.subr.msk.mxu0 %vm317_vm0, %v1856_v43 }
0x10bf   : > { %4555 = vmatpush3.xpose.msk.msra.mxu0 %vm317_vm0, %v1856_v43  ;;  %v1854_v45 = vpop.permute.xlu1 %1853 }
0x10c0   : > { %4556 = vmatprep.subr.msk.mxu0 %vm317_vm0, %v1854_v45 }
0x10c1   : > { %v2054_v49 = vpop.permute.xlu0 %2053 }
0x10c3   : > { %4557 = vmatpush3.xpose.msk.msra.mxu0 %vm317_vm0, %v1854_v45  ;;  %v2060_v48 = vpop.permute.xlu1 %2059 }
0x10c4   : > { %4568 = vmatprep.subr.msk.mxu0 %vm317_vm0, %v2060_v48 }
0x10c6   : > { %4559 = vmatmul.mubr.msk.f32.vlgmr.msra.gmra.mxu0 %vm317_vm0, %v5478_v41 }
0x10c7   : > { %v2058_v50 = vpop.permute.xlu1 %2057  ;;  %4569 = vmatpush3.xpose.msk.msra.mxu0 %vm317_vm0, %v2060_v48  ;;  %4572 = vmatprep.mubr.msk.f32.mxu0 %vm317_vm0, %v2054_v49 }
0x10c8   : > { %4570 = vmatprep.subr.msk.mxu0 %vm317_vm0, %v2058_v50 }
0x10cb   : > { %4571 = vmatpush3.xpose.msk.msra.mxu0 %vm317_vm0, %v2058_v50  ;;  %v2056_v51 = vpop.permute.xlu1 %2055 }
0x10ce   : > { %4573 = vmatmul.mubr.msk.f32.vlgmr.msra.gmra.mxu0 %vm317_vm0, %v2056_v51 }
0x1186   : > { %v4560_v52 = vpop.f32.mrf.mxu0 }
0x1187   : > { %v1941_v20 = vmul.f32 0.35355338, %v4560_v52 }
0x1188   : > { %v1931_v53 = vpop.f32.mrf.mxu0 }
0x1189   : > { %v1940_v54 = vmul.f32 0.35355338, %v1931_v53  ;;  %v1943_v56 = vadd.f32 %v1941_v20, %v5250_v15 }
0x118b   : > { %v1947_v59 = vsel %vm651_vm3, %v1943_v56, -inf  ;;  %v1942_v62 = vadd.f32 %v1940_v54, %v5250_v15 }
0x118c   : > { %1948 = vmax.xlane.f32.xlu1 %v1947_v59 }
0x118d   : > { %v1944_v3 = vsel %vm651_vm3, %v1942_v62, -inf }
0x118e   : > { %v4574_v6 = vpop.f32.mrf.mxu0  ;;  %1945 = vmax.xlane.f32.xlu0 %v1944_v3 }
0x118f   : > { %v2145_v7 = vmul.f32 0.35355338, %v4574_v6 }
0x1190   : > { %v2135_v23 = vpop.f32.mrf.mxu0 }
0x1191   : > { %v2144_v8 = vmul.f32 0.35355338, %v2135_v23  ;;  %v2147_v9 = vadd.f32 %v2145_v7, %v5250_v15 }
0x1193   : > { %v2146_v55 = vadd.f32 %v2144_v8, %v5250_v15  ;;  %v2151_v10 = vsel %vm651_vm3, %v2147_v9, -inf }
0x1195   : > { %v2148_v22 = vsel %vm651_vm3, %v2146_v55, -inf }
0x1196   : > { %2149 = vmax.xlane.f32.xlu0 %v2148_v22 }
0x119a   : > { %2152 = vmax.xlane.f32.xlu0 %v2151_v10 }
0x119d   : > { %1966 = vrot.lane.b32.xlu1 %v5480_v42, %s5052_s26 }
0x11a1   : > { %2172 = vrot.lane.b32.xlu1 %v5478_v41, %s5053_s27 }
0x11a5   : > { %2170 = vrot.lane.b32.xlu1 %v5480_v42, %s5053_s27 }
0x11b0   : > { %1968 = vrot.lane.b32.xlu0 %v5478_v41, %s5052_s26 }
0x1215   : > { %v1949_v57 = vpop.xlane.xlu1 %1948 }
0x1216   : > { %v1951_v11 = vsub.f32 %v1943_v56, %v1949_v57 }
0x1217   : > { %v1946_v12 = vpop.xlane.xlu0 %1945 }
0x1218   : > { %v1954_v16 = vmul.f32 1.442695, %v1951_v11  ;;  %v1950_v17 = vsub.f32 %v1942_v62, %v1946_v12 }
0x1219   : > { %v1967_v26 = vpop.permute.xlu1 %1966 }
0x121a   : > { %4801 = vpow2.f32 %v1954_v16  ;;  %v1952_v18 = vmul.f32 1.442695, %v1950_v17 }
0x121c   : > { %4803 = vpow2.f32 %v1952_v18 }
0x121d   : > { %v2173_v34 = vpop.permute.xlu1 %2172 }
0x121f   : > { %v2150_v19 = vpop.xlane.xlu0 %2149 }
0x1220   : > { %v2154_v63 = vsub.f32 %v2146_v55, %v2150_v19 }
0x1221   : > { %v2171_v39 = vpop.permute.xlu1 %2170 }
0x1222   : > { %v2156_v25 = vmul.f32 1.442695, %v2154_v63 }
0x1223   : > { %v2153_v24 = vpop.xlane.xlu0 %2152 }
0x1224   : > { %4805 = vpow2.f32 %v2156_v25  ;;  %v2155_v1 = vsub.f32 %v2147_v9, %v2153_v24 }
0x1226   : > { %v2158_v27 = vmul.f32 1.442695, %v2155_v1 }
0x1227   : > { %v4802_v28 = vpop.eup %4801  ;;  %v1969_v29 = vpop.permute.xlu0 %1968 }
0x1228   : > { %4807 = vpow2.f32 %v2158_v27  ;;  %4561 = vmatprep.subr.mxu1 %v1969_v29  ;;  %v1959_v32 = vsel %vm651_vm3, %v4802_v28, 0.0 }
0x1229   : > { %v4804_v61 = vpop.eup %4803  ;;  %1960 = vadd.xlane.f32.xlu1 %v1959_v32  ;;  %4562 = vmatpush3.msra.mxu1 %v1969_v29 }
0x122a   : > { %4563 = vmatprep.subr.mxu1 %v1967_v26  ;;  %v1956_v33 = vsel %vm651_vm3, %v4804_v61, 0.0 }
0x122b   : > { %1957 = vadd.xlane.f32.xlu0 %v1956_v33  ;;  %4564 = vmatpush3.msra.mxu1 %v1967_v26 }
0x122c   : > { %4575 = vmatprep.subr.mxu1 %v2173_v34 }
0x1231   : > { %v4806_v35 = vpop.eup %4805 }
0x1232   : > { %v2160_v36 = vsel %vm651_vm3, %v4806_v35, 0.0 }
0x1233   : > { %2161 = vadd.xlane.f32.xlu0 %v2160_v36 }
0x1235   : > { %v4808_v37 = vpop.eup %4807 }
0x1236   : > { %v2163_v38 = vsel %vm651_vm3, %v4808_v37, 0.0 }
0x1237   : > { %2164 = vadd.xlane.f32.xlu1 %v2163_v38 }
0x1248   : > { %2261 = vrot.lane.b32.xlu1 %v5480_v42, %s5054_s28 }
0x1249   : > { %2263 = vrot.lane.b32.xlu0 %v5478_v41, %s5054_s28 }
0x124c   : > { %2259 = vrot.lane.b32.xlu1 %v5478_v41, %s5055_s29 }
0x124d   : > { %2257 = vrot.lane.b32.xlu0 %v5480_v42, %s5055_s29 }
0x12b2   : > { %v1961_v40 = vpop.xlane.xlu1 %1960 }
0x12b3   : > { %4809 = vrcp.f32 %v1961_v40 }
0x12b4   : > { %v1958_v46 = vpop.xlane.xlu0 %1957 }
0x12b5   : > { %4811 = vrcp.f32 %v1958_v46 }
0x12bc   : > { %v2162_v43 = vpop.xlane.xlu0 %2161 }
0x12bd   : > { %4813 = vrcp.f32 %v2162_v43 }
0x12c0   : > { %v2165_v45 = vpop.xlane.xlu1 %2164  ;;  %v4810_v48 = vpop.eup %4809 }
0x12c1   : > { %4815 = vrcp.f32 %v2165_v45  ;;  %v1965_v51 = vmul.f32 %v4810_v48, %v4802_v28  ;;  %v2264_v52 = vpop.permute.xlu0 %2263 }
0x12c2   : > { %v4812_v49 = vpop.eup %4811 }
0x12c3   : > { %v1964_v50 = vmul.f32 %v4812_v49, %v4804_v61 }
0x12c4   : > { %v2262_v62 = vpop.permute.xlu1 %2261 }
0x12c5   : > { %4565 = vmatprep.mubr.msk.f32.mxu1 %vm651_vm3, %v1964_v50  ;;  %v2258_v59 = vpop.permute.xlu0 %2257 }
0x12c6   : > { %4566 = vmatmul.mubr.msk.f32.vlgmr.msra.gmra.mxu1 %vm651_vm3, %v1965_v51 }
0x12c7   : > { %4576 = vmatpush3.msra.mxu1 %v2173_v34 }
0x12c8   : > { %4577 = vmatprep.subr.mxu1 %v2171_v39  ;;  %v2260_v3 = vpop.permute.xlu1 %2259 }
0x12c9   : > { %4578 = vmatpush3.msra.mxu1 %v2171_v39 }
0x12ca   : > { %v4814_v20 = vpop.eup %4813  ;;  %4582 = vmatprep.subr.msk.mxu1 %vm317_vm0, %v2264_v52 }
0x12cb   : > { %v2168_v53 = vmul.f32 %v4814_v20, %v4806_v35 }
0x12cd   : > { %4579 = vmatprep.mubr.msk.f32.mxu1 %vm651_vm3, %v2168_v53 }
0x12ce   : > { %v4816_v54 = vpop.eup %4815 }
0x12cf   : > { %v2169_v56 = vmul.f32 %v4816_v54, %v4808_v37 }
0x12d1   : > { %4580 = vmatmul.mubr.msk.f32.vlgmr.msra.gmra.mxu1 %vm651_vm3, %v2169_v56 }
0x12d2   : > { %4583 = vmatpush3.xpose.msk.msra.mxu1 %vm317_vm0, %v2264_v52  ;;  %4586 = vmatprep.mubr.msk.f32.mxu1 %vm317_vm0, %v2258_v59 }
0x12d3   : > { %4584 = vmatprep.subr.msk.mxu1 %vm317_vm0, %v2262_v62 }
0x12d6   : > { %4585 = vmatpush3.xpose.msk.msra.mxu1 %vm317_vm0, %v2262_v62 }
0x12d9   : > { %4587 = vmatmul.mubr.msk.f32.vlgmr.msra.gmra.mxu1 %vm317_vm0, %v2260_v3 }
0x1386   : > { %v5546_v6 = vpop.f32.mrf.mxu1 }
0x1388   : > { %v5548_v23 = vpop.f32.mrf.mxu1 }
0x1391   : > { %v5550_v7 = vpop.f32.mrf.mxu1 }
0x1393   : > { %v5552_v8 = vpop.f32.mrf.mxu1 }
0x1399   : > { %v4588_v55 = vpop.f32.mrf.mxu1 }
0x139a   : > { %v2349_v22 = vmul.f32 0.35355338, %v4588_v55 }
0x139b   : > { %v2339_v9 = vpop.f32.mrf.mxu1 }
0x139c   : > { %v2348_v10 = vmul.f32 0.35355338, %v2339_v9  ;;  %v2351_v57 = vadd.f32 %v2349_v22, %v5250_v15 }
0x139e   : > { %v2355_v11 = vsel %vm651_vm3, %v2351_v57, -inf  ;;  %v2350_v12 = vadd.f32 %v2348_v10, %v5250_v15 }
0x139f   : > { %2356 = vmax.xlane.f32.xlu1 %v2355_v11 }
0x13a0   : > { %v2352_v16 = vsel %vm651_vm3, %v2350_v12, -inf }
0x13a1   : > { %2353 = vmax.xlane.f32.xlu0 %v2352_v16 }
0x13b0   : > { %2374 = vrot.lane.b32.xlu1 %v5480_v42, %s5056_s30 }
0x13b4   : > { %2467 = vrot.lane.b32.xlu1 %v5478_v41, %s5057_s9 }
0x13b8   : > { %2465 = vrot.lane.b32.xlu1 %v5480_v42, %s5057_s9  ;;  %s5066_s9 = smov 1  }
0x13bc   : > { %2463 = vrot.lane.b32.xlu1 %v5478_v41, %s5058_s10 }
0x1428   : > { %v2357_v17 = vpop.xlane.xlu1 %2356 }
0x1429   : > { %v2359_v18 = vsub.f32 %v2351_v57, %v2357_v17 }
0x142a   : > { %v2354_v19 = vpop.xlane.xlu0 %2353 }
0x142b   : > { %v2362_v63 = vmul.f32 1.442695, %v2359_v18  ;;  %v2358_v25 = vsub.f32 %v2350_v12, %v2354_v19  ;;  %v1714_v19 = vld [vmem:[%s6145_s7 + $0x118] sm:$0xff] }
0x142c   : > { %v2375_v61 = vpop.permute.xlu1 %2374 }
0x142d   : > { %4817 = vpow2.f32 %v2362_v63  ;;  %v2360_v24 = vmul.f32 1.442695, %v2358_v25  ;;  %v1713_v63 = vld [vmem:[%s6145_s7 + $0x110] sm:$0xff]  ;;  %v1712_v25 = vld [vmem:[%s6145_s7 + $0x108] sm:$0xff] }
0x142f   : > { %4819 = vpow2.f32 %v2360_v24 }
0x1430   : > { %v2468_v34 = vpop.permute.xlu1 %2467 }
0x1434   : > { %v2466_v40 = vpop.permute.xlu1 %2465 }
0x1438   : > { %v2464_v46 = vpop.permute.xlu1 %2463 }
0x143a   : > { %v4818_v1 = vpop.eup %4817 }
0x143b   : > { %v2367_v26 = vsel %vm651_vm3, %v4818_v1, 0.0 }
0x143c   : > { %v4820_v27 = vpop.eup %4819  ;;  %2368 = vadd.xlane.f32.xlu0 %v2367_v26 }
0x143d   : > { %v2364_v28 = vsel %vm651_vm3, %v4820_v27, 0.0 }
0x1440   : > { %2365 = vadd.xlane.f32.xlu0 %v2364_v28 }
0x1456   : > { %2376 = vrot.lane.b32.xlu0 %v5478_v41, %s5056_s30  ;;  %s5065_s30 = smov 127  }
0x145a   : > { %2461 = vrot.lane.b32.xlu0 %v5480_v42, %s5058_s10  ;;  %s5063_s10 = smov 32  }
0x14c5   : > { %v2369_v29 = vpop.xlane.xlu0 %2368 }
0x14c6   : > { %4821 = vrcp.f32 %v2369_v29 }
0x14c9   : > { %v2366_v32 = vpop.xlane.xlu0 %2365 }
0x14ca   : > { %4823 = vrcp.f32 %v2366_v32 }
0x14cd   : > { %v2377_v33 = vpop.permute.xlu0 %2376 }
0x14ce   : > { %4589 = vmatprep.subr.mxu0 %v2377_v33 }
0x14cf   : > { %4590 = vmatpush3.msra.mxu0 %v2377_v33 }
0x14d0   : > { %4591 = vmatprep.subr.mxu0 %v2375_v61 }
0x14d1   : > { %4592 = vmatpush3.msra.mxu0 %v2375_v61  ;;  %v2462_v39 = vpop.permute.xlu0 %2461 }
0x14d2   : > { %4596 = vmatprep.subr.msk.mxu0 %vm317_vm0, %v2468_v34 }
0x14d3   : > { %v4822_v35 = vpop.eup %4821 }
0x14d4   : > { %v2373_v38 = vmul.f32 %v4822_v35, %v4818_v1 }
0x14d7   : > { %v4824_v36 = vpop.eup %4823 }
0x14d8   : > { %v2372_v37 = vmul.f32 %v4824_v36, %v4820_v27 }
0x14da   : > { %4593 = vmatprep.mubr.msk.f32.mxu0 %vm651_vm3, %v2372_v37 }
0x14db   : > { %4594 = vmatmul.mubr.msk.f32.vlgmr.msra.gmra.mxu0 %vm651_vm3, %v2373_v38 }
0x14dc   : > { %4597 = vmatpush3.xpose.msk.msra.mxu0 %vm317_vm0, %v2468_v34  ;;  %4600 = vmatprep.mubr.msk.f32.mxu0 %vm317_vm0, %v2462_v39 }
0x14dd   : > { %4598 = vmatprep.subr.msk.mxu0 %vm317_vm0, %v2466_v40 }
0x14e0   : > { %4599 = vmatpush3.xpose.msk.msra.mxu0 %vm317_vm0, %v2466_v40 }
0x14e3   : > { %4601 = vmatmul.mubr.msk.f32.vlgmr.msra.gmra.mxu0 %vm317_vm0, %v2464_v46 }
0x159b   : > { %v4595_v43 = vpop.f32.mrf.mxu0 }
0x159d   : > { %v2452_v45 = vpop.f32.mrf.mxu0 }
0x15a3   : > { %v4602_v48 = vpop.f32.mrf.mxu0 }
0x15a4   : > { %v2553_v49 = vmul.f32 0.35355338, %v4602_v48 }
0x15a5   : > { %v2543_v50 = vpop.f32.mrf.mxu0 }
0x15a6   : > { %v2552_v51 = vmul.f32 0.35355338, %v2543_v50  ;;  %v2555_v52 = vadd.f32 %v2553_v49, %v5250_v15 }
0x15a8   : > { %v2559_v20 = vsel %vm651_vm3, %v2555_v52, -inf  ;;  %v2554_v53 = vadd.f32 %v2552_v51, %v5250_v15 }
0x15a9   : > { %2560 = vmax.xlane.f32.xlu1 %v2559_v20 }
0x15aa   : > { %v2556_v54 = vsel %vm651_vm3, %v2554_v53, -inf }
0x15ab   : > { %2557 = vmax.xlane.f32.xlu0 %v2556_v54 }
0x15ba   : > { %2578 = vrot.lane.b32.xlu1 %v5480_v42, %s5059_s11 }
0x15be   : > { %2667 = vrot.lane.b32.xlu1 %v5552_v8, %s5060_s12 }
0x15c2   : > { %2669 = vrot.lane.b32.xlu1 %v5550_v7, %s5060_s12 }
0x15c6   : > { %2677 = vrot.lane.b32.xlu1 %v4595_v43, %s6152_s21 }
0x1632   : > { %v2561_v56 = vpop.xlane.xlu1 %2560 }
0x1633   : > { %v2563_v59 = vsub.f32 %v2555_v52, %v2561_v56 }
0x1634   : > { %v2558_v62 = vpop.xlane.xlu0 %2557 }
0x1635   : > { %v2566_v3 = vmul.f32 1.442695, %v2563_v59  ;;  %v2562_v15 = vsub.f32 %v2554_v53, %v2558_v62  ;;  %v1719_v62 = vld [vmem:[%s6145_s7 + $0x140] sm:$0xff] }
0x1636   : > { %v2579_v11 = vpop.permute.xlu1 %2578  ;;  %4621 = vmatprep.subr.mxu0 %v1719_v62 }
0x1637   : > { %4825 = vpow2.f32 %v2566_v3  ;;  %v2564_v55 = vmul.f32 1.442695, %v2562_v15  ;;  %v1718_v3 = vld [vmem:[%s6145_s7 + $0x138] sm:$0xff]  ;;  %4622 = vmatpush3.msra.mxu0 %v1719_v62  ;;  %v1717_v15 = vld [vmem:[%s6145_s7 + $0x130] sm:$0xff] }
0x1638   : > { %4623 = vmatprep.subr.mxu0 %v1718_v3 }
0x1639   : > { %4827 = vpow2.f32 %v2564_v55  ;;  %4624 = vmatpush3.msra.mxu0 %v1718_v3  ;;  %v1716_v55 = vld [vmem:[%s6145_s7 + $0x128] sm:$0xff]  ;;  %v3039_v3 = vld [vmem:[%s6145_s7 + $0x20] sm:$0xff] }
0x163a   : > { %v2668_v26 = vpop.permute.xlu1 %2667  ;;  %4625 = vmatprep.subr.mxu0 %v1717_v15 }
0x163b   : > { %v2689_v32 = vsel %vm317_vm0, %v5548_v23, %v2668_v26  ;;  %v2781_v23 = vrot.slane %v5436_v44, %v5367_v21  ;;  %4626 = vmatpush3.msra.mxu0 %v1717_v15  ;;  %v3038_v15 = vld [vmem:[%s6145_s7 + $0x18] sm:$0xff] }
0x163c   : > { %4627 = vmatprep.subr.mxu0 %v1716_v55 }
0x163d   : > { %4628 = vmatpush3.msra.mxu0 %v1716_v55  ;;  %v3037_v55 = vld [vmem:[%s6145_s7 + $0x10] sm:$0xff] }
0x163e   : > { %v2670_v27 = vpop.permute.xlu1 %2669  ;;  %4651 = vmatprep.subr.mxu0 %v3039_v3 }
0x163f   : > { %v2690_v33 = vsel %vm317_vm0, %v5546_v6, %v2670_v27 }
0x1642   : > { %v2678_v28 = vpop.permute.xlu1 %2677 }
0x1643   : > { %v2692_v36 = vsel %vm651_vm3, %v2690_v33, %v2678_v28  ;;  %v1723_v28 = vld [vmem:[%s6145_s7 + $0x160] sm:$0xff] }
0x1644   : > { %v4826_v22 = vpop.eup %4825 }
0x1645   : > { %v2571_v9 = vsel %vm651_vm3, %v4826_v22, 0.0 }
0x1646   : > { %v4828_v42 = vpop.eup %4827  ;;  %2572 = vadd.xlane.f32.xlu0 %v2571_v9  ;;  %v1726_v9 = vld [vmem:[%s6145_s7 + $0x178] sm:$0xff] }
0x1647   : > { %v2568_v8 = vsel %vm651_vm3, %v4828_v42, 0.0 }
0x164a   : > { %2569 = vadd.xlane.f32.xlu0 %v2568_v8  ;;  %v1724_v8 = vld [vmem:[%s6145_s7 + $0x168] sm:$0xff] }
0x1660   : > { %2580 = vrot.lane.b32.xlu0 %v5478_v41, %s5059_s11  ;;  %v1715_v41 = vld [vmem:[%s6145_s7 + $0x120] sm:$0xff]  ;;  %s6153_s11 = smov 24  }
0x1664   : > { %2675 = vrot.lane.b32.xlu0 %v2452_v45, %s6152_s21 }
0x16cf   : > { %v2573_v7 = vpop.xlane.xlu0 %2572 }
0x16d0   : > { %4829 = vrcp.f32 %v2573_v7 }
0x16d3   : > { %v2570_v10 = vpop.xlane.xlu0 %2569 }
0x16d4   : > { %4831 = vrcp.f32 %v2570_v10 }
0x16d7   : > { %v2581_v57 = vpop.permute.xlu0 %2580 }
0x16d8   : > { %4603 = vmatprep.subr.mxu1 %v2581_v57 }
0x16d9   : > { %4604 = vmatpush3.msra.mxu1 %v2581_v57 }
0x16da   : > { %4605 = vmatprep.subr.mxu1 %v2579_v11 }
0x16db   : > { %4606 = vmatpush3.msra.mxu1 %v2579_v11  ;;  %v2676_v29 = vpop.permute.xlu0 %2675 }
0x16dc   : > { %4610 = vmatprep.subr.mxu1 %v1715_v41  ;;  %v2691_v34 = vsel %vm651_vm3, %v2689_v32, %v2676_v29  ;;  %v1721_v29 = vld [vmem:[%s6145_s7 + $0x150] sm:$0xff]  ;;  %v1720_v32 = vld [vmem:[%s6145_s7 + $0x148] sm:$0xff] }
0x16dd   : > { %v4830_v12 = vpop.eup %4829 }
0x16de   : > { %v2577_v18 = vmul.f32 %v4830_v12, %v4826_v22  ;;  %v1727_v22 = vld [vmem:[%s6145_s7 + $0x180] sm:$0xff] }
0x16e1   : > { %v4832_v16 = vpop.eup %4831 }
0x16e2   : > { %v2576_v17 = vmul.f32 %v4832_v16, %v4828_v42  ;;  %v1725_v42 = vld [vmem:[%s6145_s7 + $0x170] sm:$0xff] }
0x16e4   : > { %4607 = vmatprep.mubr.msk.f32.mxu1 %vm651_vm3, %v2576_v17  ;;  %v2813_v17 = vrot.slane %v5436_v44, %v5410_v30 }
0x16e5   : > { %4608 = vmatmul.mubr.msk.f32.vlgmr.msra.gmra.mxu1 %vm651_vm3, %v2577_v18 }
0x16e6   : > { %4611 = vmatpush3.msra.mxu1 %v1715_v41 }
0x16e7   : > { %4612 = vmatprep.subr.mxu1 %v1714_v19 }
0x16e8   : > { %4613 = vmatpush3.msra.mxu1 %v1714_v19  ;;  %v2819_v19 = vrot.slane %v5436_v44, %v5413_v31  ;;  %v1722_v44 = vld [vmem:[%s6145_s7 + $0x158] sm:$0xff] }
0x16e9   : > { %4614 = vmatprep.subr.mxu1 %v1713_v63 }
0x16ea   : > { %4615 = vmatpush3.msra.mxu1 %v1713_v63 }
0x16eb   : > { %4616 = vmatprep.subr.mxu1 %v1712_v25 }
0x16ec   : > { %4617 = vmatpush3.msra.mxu1 %v1712_v25 }
0x16ed   : > { %4632 = vmatprep.subr.mxu1 %v1727_v22 }
0x17a5   : > { %v4609_v24 = vpop.f32.mrf.mxu1 }
0x17a6   : > { %2685 = vrot.lane.b32.xlu1 %v4609_v24, %s6153_s11 }
0x17a7   : > { %v2656_v1 = vpop.f32.mrf.mxu1 }
0x17a8   : > { %2683 = vrot.lane.b32.xlu0 %v2656_v1, %s6153_s11  ;;  %s4172_s11 = sshll.u32 %s5135_s17, 3 }
0x17a9   : > { %s286_s16 = scalar_lea.vmem %s6142_s4, %s4172_s11  ;;  %s290_s29 = scalar_lea.vmem %s6143_s5, %s4172_s11 }
0x1818   : > { %v2686_v61 = vpop.permute.xlu1 %2685 }
0x1819   : > { %v2694_v38 = vsel %vm1401_vm4, %v2692_v36, %v2686_v61  ;;  %v297_v61 = vld [vmem:[%s6144_s6 + $0x18] sm:$0xff] }
0x181a   : > { %v2684_v35 = vpop.permute.xlu0 %2683  ;;  %v2825_v33 = vrot.slane %v297_v61, %v5149_v4 }
0x181b   : > { %v2693_v37 = vsel %vm1401_vm4, %v2691_v34, %v2684_v35 }
0x181c   : > { %4618 = vmatprep.mubr.msk.f32.mxu1 %vm433_vm1, %v2693_v37 }
0x181d   : > { %4619 = vmatmul.mubr.msk.f32.vlgmr.msra.gmra.mxu1 %vm433_vm1, %v2694_v38 }
0x181e   : > { %4633 = vmatpush3.msra.mxu1 %v1727_v22  ;;  %v5705_v22 = vld [vmem:[%s6144_s6] sm:$0xff] }
0x181f   : > { %4634 = vmatprep.subr.mxu1 %v1726_v9 }
0x1820   : > { %4635 = vmatpush3.msra.mxu1 %v1726_v9  ;;  %v3134_v9 = vrot.slane %v5705_v22, %v5413_v31 }
0x1821   : > { %4636 = vmatprep.subr.mxu1 %v1725_v42 }
0x1822   : > { %4637 = vmatpush3.msra.mxu1 %v1725_v42  ;;  %v3036_v42 = vld [vmem:[%s6145_s7 + $0x8] sm:$0xff] }
0x1823   : > { %4638 = vmatprep.subr.mxu1 %v1724_v8 }
0x1824   : > { %4639 = vmatpush3.msra.mxu1 %v1724_v8 }
0x1825   : > { %4640 = vmatprep.subr.mxu1 %v1723_v28 }
0x1826   : > { %4641 = vmatpush3.msra.mxu1 %v1723_v28 }
0x1827   : > { %4642 = vmatprep.subr.mxu1 %v1722_v44 }
0x1828   : > { %4643 = vmatpush3.msra.mxu1 %v1722_v44  ;;  %v3366_v44 = vld [vmem:[%s6145_s7 + $0x40] sm:$0xff] }
0x1829   : > { %4644 = vmatprep.subr.mxu1 %v1721_v29 }
0x182a   : > { %4645 = vmatpush3.msra.mxu1 %v1721_v29  ;;  %v3365_v29 = vld [vmem:[%s6145_s7 + $0x38] sm:$0xff] }
0x182b   : > { %4646 = vmatprep.subr.mxu1 %v1720_v32 }
0x182c   : > { %4647 = vmatpush3.msra.mxu1 %v1720_v32  ;;  %v3364_v32 = vld [vmem:[%s6145_s7 + $0x30] sm:$0xff] }
0x182d   : > { %4694 = vmatprep.subr.mxu1 %v3366_v44 }
0x18dd   : > { %v4620_v39 = vpop.f32.mrf.mxu1 }
0x18de   : > { %v2777_v40 = vadd.f32 %v4620_v39, %v5445_v60  ;;  %v2995_v39 = vrot.slane %v297_v61, %v5152_v5  ;;  %v3363_v61 = vld [vmem:[%s6145_s7 + $0x28] sm:$0xff] }
0x18df   : > { %v2767_v6 = vpop.f32.mrf.mxu1 }
0x18e0   : > { %v5625_v46 = vadd.f32 %v2781_v23, %v2777_v40  ;;  %v2776_v43 = vadd.f32 %v2767_v6, %v5448_v0 }
0x18e2   : > { %v5628_v45 = vadd.f32 %v2781_v23, %v2776_v43  ;;  %v2787_v48 = vsel %vm433_vm1, %v5625_v46, 0.0 }
0x18e3   : > { %2788 = vadd.xlane.f32.xlu1 %v2787_v48 }
0x18e4   : > { %v2784_v49 = vsel %vm433_vm1, %v5628_v45, 0.0 }
0x18e5   : > { %2785 = vadd.xlane.f32.xlu0 %v2784_v49 }
0x196c   : > { %v2789_v50 = vpop.xlane.xlu1 %2788 }
0x196d   : > { %v2791_v51 = vmul.f32 0.03125, %v2789_v50 }
0x196e   : > { %v2786_v52 = vpop.xlane.xlu0 %2785 }
0x196f   : > { %v2790_v20 = vmul.f32 0.03125, %v2786_v52  ;;  %v2793_v60 = vsub.f32 %v5625_v46, %v2791_v51 }
0x1971   : > { %v2792_v53 = vsub.f32 %v5628_v45, %v2790_v20  ;;  %v2795_v56 = vmul.f32 %v2793_v60, %v2793_v60 }
0x1973   : > { %v2794_v54 = vmul.f32 %v2792_v53, %v2792_v53  ;;  %v2799_v59 = vsel %vm433_vm1, %v2795_v56, 0.0 }
0x1975   : > { %v2796_v0 = vsel %vm433_vm1, %v2794_v54, 0.0 }
0x1976   : > { %2797 = vadd.xlane.f32.xlu0 %v2796_v0 }
0x197a   : > { %2800 = vadd.xlane.f32.xlu0 %v2799_v59 }
0x19ff   : > { %v2798_v7 = vpop.xlane.xlu0 %2797 }
0x1a00   : > { %v2802_v10 = vmul.f32 0.03125, %v2798_v7 }
0x1a02   : > { %v2804_v57 = vadd.f32 1e-05, %v2802_v10 }
0x1a03   : > { %v2801_v11 = vpop.xlane.xlu0 %2800 }
0x1a04   : > { %4833 = vrsqrt.f32 %v2804_v57  ;;  %v2803_v12 = vmul.f32 0.03125, %v2801_v11  ;;  %v3125_v11 = vld [vmem:[%s286_s16] sm:$0xff] }
0x1a06   : > { %v2805_v16 = vadd.f32 1e-05, %v2803_v12 }
0x1a08   : > { %4835 = vrsqrt.f32 %v2805_v16 }
0x1a11   : > { %v4834_v18 = vpop.eup %4833 }
0x1a12   : > { %v2808_v41 = vmul.f32 %v4834_v18, %v2792_v53 }
0x1a14   : > { %v2814_v63 = vmul.f32 %v2813_v17, %v2808_v41  ;;  %v3027_v41 = vrot.slane %v5705_v22, %v5201_v47 }
0x1a15   : > { %v4836_v25 = vpop.eup %4835 }
0x1a16   : > { %v2809_v24 = vmul.f32 %v4836_v25, %v2793_v60  ;;  %v2820_v1 = vadd.f32 %v2819_v19, %v2814_v63 }
0x1a18   : > { %v2815_v26 = vmul.f32 %v2813_v17, %v2809_v24  ;;  %4629 = vmatprep.mubr.msk.f32.mxu0 %vm433_vm1, %v2820_v1  ;;  %v3033_v1 = vrot.slane %v5705_v22, %v5210_v58 }
0x1a1a   : > { %v2821_v27 = vadd.f32 %v2819_v19, %v2815_v26 }
0x1a1c   : > { %4630 = vmatmul.mubr.msk.f32.vlgmr.msra.gmra.mxu0 %vm433_vm1, %v2821_v27 }
0x1a1d   : > { %4652 = vmatpush3.msra.mxu0 %v3039_v3 }
0x1a1e   : > { %4653 = vmatprep.subr.mxu0 %v3038_v15 }
0x1a1f   : > { %4654 = vmatpush3.msra.mxu0 %v3038_v15 }
0x1a20   : > { %4655 = vmatprep.subr.mxu0 %v3037_v55 }
0x1a21   : > { %4656 = vmatpush3.msra.mxu0 %v3037_v55 }
0x1a22   : > { %4657 = vmatprep.subr.mxu0 %v3036_v42 }
0x1a23   : > { %4658 = vmatpush3.msra.mxu0 %v3036_v42 }
0x1a24   : > { %4662 = vmatprep.subr.mxu0 %v3366_v44 }
0x1adc   : > { %v4631_v34 = vpop.f32.mrf.mxu0 }
0x1add   : > { %v2904_v35 = vadd.f32 %v4631_v34, %v2825_v33 }
0x1ade   : > { %v2898_v36 = vpop.f32.mrf.mxu0 }
0x1adf   : > { %v2899_v37 = vadd.f32 %v2898_v36, %v2825_v33  ;;  %v2908_v23 = vmax.f32 %v2904_v35, 0.0  ;;  %v5064_v33 = vmov 1966171168   ;;  %v3129_v36 = vrot.slane %v5705_v22, %v5410_v30 }
0x1ae0   : > { %v3155_v34 = vunpack.c.l.s4 %v5064_v33 }
0x1ae1   : > { %v2907_v38 = vmax.f32 %v2899_v37, 0.0  ;;  %v3043_v37 = vrot.slane %v5705_v22, %v5367_v21 }
0x1ae2   : > { %v3156_v35 = vunpack.c.0.s8 %v3155_v34 }
0x1ae3   : > { %4648 = vmatprep.mubr.msk.f32.mxu1 %vm1618_vm5, %v2907_v38 }
0x1ae4   : > { %4649 = vmatmul.mubr.msk.f32.vlgmr.msra.gmra.mxu1 %vm1618_vm5, %v2908_v23  ;;  %v3159_v38 = vsub.s32 %v3156_v35, %v5138_v2  ;;  %v3130_v23 = vmul.f32 %v3129_v36, %v3125_v11 }
0x1ae5   : > { %4698 = vmatpush3.msra.mxu1 %v3366_v44 }
0x1ae6   : > { %4695 = vmatprep.subr.mxu1 %v3365_v29 }
0x1ae7   : > { %4699 = vmatpush3.msra.mxu1 %v3365_v29 }
0x1ae8   : > { %4696 = vmatprep.subr.mxu1 %v3364_v32 }
0x1ae9   : > { %4700 = vmatpush3.msra.mxu1 %v3364_v32 }
0x1aea   : > { %4697 = vmatprep.subr.mxu1 %v3363_v61 }
0x1aeb   : > { %4701 = vmatpush3.msra.mxu1 %v3363_v61 }
0x1ba4   : > { %v4650_v40 = vpop.f32.mrf.mxu1 }
0x1ba5   : > { %v2991_v6 = vadd.f32 %v4650_v40, %v5625_v46 }
0x1ba6   : > { %v2981_v43 = vpop.f32.mrf.mxu1 }
0x1ba7   : > { %v2997_v48 = vadd.f32 %v2995_v39, %v2991_v6  ;;  %v2990_v49 = vadd.f32 %v2981_v43, %v5628_v45 }
0x1ba9   : > { %v2996_v50 = vadd.f32 %v2995_v39, %v2990_v49  ;;  %v3001_v51 = vsel %vm433_vm1, %v2997_v48, 0.0 }
0x1baa   : > { %3002 = vadd.xlane.f32.xlu1 %v3001_v51 }
0x1bab   : > { %v2998_v52 = vsel %vm433_vm1, %v2996_v50, 0.0 }
0x1bac   : > { %2999 = vadd.xlane.f32.xlu0 %v2998_v52 }
0x1c33   : > { %v3003_v20 = vpop.xlane.xlu1 %3002 }
0x1c34   : > { %v3005_v60 = vmul.f32 0.03125, %v3003_v20 }
0x1c35   : > { %v3000_v53 = vpop.xlane.xlu0 %2999 }
0x1c36   : > { %v3007_v54 = vsub.f32 %v2997_v48, %v3005_v60  ;;  %v3004_v0 = vmul.f32 0.03125, %v3000_v53  ;;  %v5745_v48 = vld [vmem:[%s6144_s6 + $0x8] sm:$0xff] }
0x1c37   : > { %v3148_v49 = vrot.slane %v5745_v48, %v5149_v4 }
0x1c38   : > { %v3006_v56 = vsub.f32 %v2996_v50, %v3004_v0  ;;  %v3009_v59 = vmul.f32 %v3007_v54, %v3007_v54 }
0x1c3a   : > { %v3013_v46 = vsel %vm433_vm1, %v3009_v59, 0.0  ;;  %v3008_v62 = vmul.f32 %v3006_v56, %v3006_v56 }
0x1c3b   : > { %3014 = vadd.xlane.f32.xlu1 %v3013_v46 }
0x1c3c   : > { %v3010_v45 = vsel %vm433_vm1, %v3008_v62, 0.0 }
0x1c3d   : > { %3011 = vadd.xlane.f32.xlu0 %v3010_v45 }
0x1c53   : > { %3136 = vrot.lane.b32.xlu0 %v3134_v9, %s5063_s10  ;;  %s6086_s10 = smov (!%p4263_p2), 1  }
0x1cc4   : > { %v3015_v8 = vpop.xlane.xlu1 %3014 }
0x1cc5   : > { %v3017_v7 = vmul.f32 0.03125, %v3015_v8 }
0x1cc6   : > { %v3012_v31 = vpop.xlane.xlu0 %3011 }
0x1cc7   : > { %v3019_v10 = vadd.f32 1e-05, %v3017_v7  ;;  %v3016_v57 = vmul.f32 0.03125, %v3012_v31 }
0x1cc9   : > { %4837 = vrsqrt.f32 %v3019_v10  ;;  %v3018_v12 = vadd.f32 1e-05, %v3016_v57 }
0x1cca   : > { %v3137_v16 = vpop.permute.xlu0 %3136 }
0x1ccb   : > { %4839 = vrsqrt.f32 %v3018_v12  ;;  %v3139_v17 = vmul.f32 %v3137_v16, %v3125_v11 }
0x1ccd   : > { %3141 = vrot.lane.b32.xlu1 %v3139_v17, %s5048_s20 }
0x1cd6   : > { %v4838_v18 = vpop.eup %4837 }
0x1cd7   : > { %v3023_v19 = vmul.f32 %v4838_v18, %v3007_v54 }
0x1cd8   : > { %v4840_v63 = vpop.eup %4839 }
0x1cd9   : > { %v3022_v25 = vmul.f32 %v4840_v63, %v3006_v56  ;;  %v3029_v24 = vmul.f32 %v3027_v41, %v3023_v19 }
0x1cdb   : > { %v3028_v26 = vmul.f32 %v3027_v41, %v3022_v25  ;;  %v3035_v28 = vadd.f32 %v3033_v1, %v3029_v24 }
0x1cdd   : > { %v3034_v27 = vadd.f32 %v3033_v1, %v3028_v26 }
0x1cdf   : > { %4659 = vmatprep.mubr.msk.f32.mxu0 %vm433_vm1, %v3034_v27 }
0x1ce0   : > { %4660 = vmatmul.mubr.msk.f32.vlgmr.msra.gmra.mxu0 %vm433_vm1, %v3035_v28 }
0x1ce1   : > { %4663 = vmatpush3.msra.mxu0 %v3366_v44 }
0x1ce2   : > { %4664 = vmatprep.subr.mxu0 %v3365_v29 }
0x1ce3   : > { %4665 = vmatpush3.msra.mxu0 %v3365_v29 }
0x1ce4   : > { %4666 = vmatprep.subr.mxu0 %v3364_v32 }
0x1ce5   : > { %4667 = vmatpush3.msra.mxu0 %v3364_v32 }
0x1ce6   : > { %4668 = vmatprep.subr.mxu0 %v3363_v61 }
0x1ce7   : > { %4669 = vmatpush3.msra.mxu0 %v3363_v61 }
0x1d3f   : > { %v3142_v40 = vpop.permute.xlu1 %3141 }
0x1d40   : > { %v3144_v52 = vadd.f32 %v3142_v40, %v3130_v23 }
0x1d42   : > { %v3149_v46 = vadd.f32 %v3148_v49, %v3144_v52 }
0x1d44   : > { %v3150_v7 = vmax.f32 %v3149_v46, 0.0 }
0x1da0   : > { %v4661_v39 = vpop.f32.mrf.mxu0 }
0x1da1   : > { %v3122_v6 = vadd.f32 %v4661_v39, %v3043_v37 }
0x1da2   : > { %v3116_v43 = vpop.f32.mrf.mxu0 }
0x1da3   : > { %v3202_v50 = vcombine.high %v3122_v6, %v3122_v6  ;;  %v3209_v30 = vrot.slane %v3122_v6, %v3159_v38  ;;  %v3117_v51 = vadd.f32 %v3116_v43, %v3043_v37 }
0x1da5   : > { %v3216_v21 = vrot.slane %v3202_v50, %v3159_v38  ;;  %v3217_v20 = vcombine.high %v3209_v30, %v3209_v30  ;;  %v5749_v60 = vrot.slane %v3209_v30, %v3159_v38  ;;  %v3153_v53 = vcombine.high %v3117_v51, %v3117_v51 }
0x1da6   : > { %v3160_v54 = vrot.slane %v3117_v51, %v3159_v38 }
0x1da7   : > { %v3218_v0 = vcombine.high %v3216_v21, %v3216_v21  ;;  %v5751_v56 = vrot.slane %v3217_v20, %v3159_v38  ;;  %v3247_v59 = vcombine.high %v5749_v60, %v5749_v60  ;;  %v3232_v62 = vrot.slane %v3216_v21, %v3159_v38 }
0x1da8   : > { %v3167_v45 = vrot.slane %v3153_v53, %v3159_v38  ;;  %v3168_v3 = vcombine.high %v3160_v54, %v3160_v54  ;;  %v3176_v15 = vrot.slane %v3160_v54, %v3159_v38  ;;  %v3286_v49 = vrot.slane %v5749_v60, %v5149_v4 }
0x1da9   : > { %v3246_v55 = vrot.slane %v3218_v0, %v3159_v38  ;;  %v3249_v22 = vcombine.high %v5751_v56, %v5751_v56  ;;  %v3294_v9 = vrot.slane %v3247_v59, %v5149_v4  ;;  %v3248_v31 = vcombine.high %v3232_v62, %v3232_v62 }
0x1daa   : > { %v3169_v42 = vcombine.high %v3167_v45, %v3167_v45  ;;  %v3183_v8 = vrot.slane %v3167_v45, %v3159_v38  ;;  %v3190_v57 = vrot.slane %v3168_v3, %v3159_v38  ;;  %v3198_v11 = vcombine.high %v3176_v15, %v3176_v15 }
0x1dab   : > { %v3298_v10 = vrot.slane %v3249_v22, %v5149_v4  ;;  %v3250_v12 = vcombine.high %v3246_v55, %v3246_v55  ;;  %v3302_v16 = vrot.slane %v3232_v62, %v5149_v4  ;;  %v3254_v17 = vrot.slane %v3176_v15, %v5149_v4 }
0x1dac   : > { %v3341_v18 = vadd.f32 %v3294_v9, %v3150_v7  ;;  %v3197_v41 = vrot.slane %v3169_v42, %v3159_v38  ;;  %v3200_v19 = vcombine.high %v3190_v57, %v3190_v57  ;;  %v3258_v63 = vrot.slane %v3190_v57, %v5149_v4 }
0x1dad   : > { %v3262_v25 = vrot.slane %v3198_v11, %v5149_v4  ;;  %v3306_v24 = vrot.slane %v3246_v55, %v5149_v4  ;;  %v3199_v1 = vcombine.high %v3183_v8, %v3183_v8  ;;  %v3331_v26 = vadd.f32 %v3254_v17, %v3150_v7 }
0x1dae   : > { %4841 = vtanh.f32 %v3341_v18  ;;  %v3266_v27 = vrot.slane %v3200_v19, %v5149_v4  ;;  %v3270_v28 = vrot.slane %v3183_v8, %v5149_v4  ;;  %v3332_v44 = vadd.f32 %v3258_v63, %v3150_v7 }
0x1daf   : > { %v3342_v29 = vadd.f32 %v3298_v10, %v3150_v7  ;;  %v3310_v32 = vrot.slane %v3248_v31, %v5149_v4  ;;  %4843 = vtanh.f32 %v3331_v26  ;;  %v3333_v61 = vadd.f32 %v3262_v25, %v3150_v7 }
0x1db0   : > { %v3343_v33 = vadd.f32 %v3302_v16, %v3150_v7  ;;  %v3201_v34 = vcombine.high %v3197_v41, %v3197_v41  ;;  %v3274_v35 = vrot.slane %v3197_v41, %v5149_v4  ;;  %4845 = vtanh.f32 %v3332_v44 }
0x1db1   : > { %v3334_v36 = vadd.f32 %v3266_v27, %v3150_v7  ;;  %v3314_v37 = vrot.slane %v3250_v12, %v5149_v4  ;;  %4847 = vtanh.f32 %v3342_v29  ;;  %v3344_v38 = vadd.f32 %v3306_v24, %v3150_v7 }
0x1db2   : > { %v3278_v23 = vrot.slane %v3199_v1, %v5149_v4  ;;  %4849 = vtanh.f32 %v3333_v61  ;;  %v3335_v39 = vadd.f32 %v3270_v28, %v3150_v7  ;;  %v3345_v40 = vadd.f32 %v3310_v32, %v3150_v7 }
0x1db3   : > { %4851 = vtanh.f32 %v3343_v33  ;;  %v3282_v6 = vrot.slane %v3201_v34, %v5149_v4  ;;  %v3336_v43 = vadd.f32 %v3274_v35, %v3150_v7  ;;  %v3346_v50 = vadd.f32 %v3314_v37, %v3150_v7 }
0x1db4   : > { %4853 = vtanh.f32 %v3334_v36  ;;  %v3337_v30 = vadd.f32 %v3278_v23, %v3150_v7  ;;  %v3290_v51 = vrot.slane %v5751_v56, %v5149_v4  ;;  %v3339_v21 = vadd.f32 %v3286_v49, %v3150_v7  ;;  %v5819_v36 = vld [vmem:[%s290_s29] sm:$0xff] }
0x1db5   : > { %4855 = vtanh.f32 %v3344_v38  ;;  %v3338_v52 = vadd.f32 %v3282_v6, %v3150_v7  ;;  %v5793_v8 = vrot.slane %v5745_v48, %v5152_v5 }
0x1db6   : > { %4857 = vtanh.f32 %v3335_v39  ;;  %v3340_v54 = vadd.f32 %v3290_v51, %v3150_v7 }
0x1db7   : > { %4859 = vtanh.f32 %v3345_v40  ;;  %v5826_v40 = vsel %vm3810_vm8, 0.0, %v5051_v13 }
0x1db8   : > { %4861 = vtanh.f32 %v3336_v43 }
0x1db9   : > { %4863 = vtanh.f32 %v3346_v50 }
0x1dba   : > { %4865 = vtanh.f32 %v3337_v30 }
0x1dbb   : > { %v4842_v20 = vpop.eup %4841  ;;  %4867 = vtanh.f32 %v3338_v52 }
0x1dbc   : > { %4685 = vmatprep.mubr.msk.f32.mxu1 %vm433_vm1, %v4842_v20  ;;  %v4844_v53 = vpop.eup %4843  ;;  %4869 = vtanh.f32 %v3339_v21 }
0x1dbd   : > { %v4846_v60 = vpop.eup %4845  ;;  %4670 = vmatprep.mubr.msk.f32.mxu0 %vm433_vm1, %v4844_v53  ;;  %4871 = vtanh.f32 %v3340_v54 }
0x1dbe   : > { %v4848_v0 = vpop.eup %4847  ;;  %4671 = vmatmul.mubr.msk.f32.vlgmr.msra.gmra.mxu0 %vm433_vm1, %v4846_v60 }
0x1dbf   : > { %v4850_v59 = vpop.eup %4849  ;;  %4686 = vmatmul.mubr.msk.f32.vlgmr.msra.gmra.mxu1 %vm433_vm1, %v4848_v0 }
0x1dc0   : > { %v4852_v4 = vpop.eup %4851  ;;  %4673 = vmatprep.mubr.msk.f32.mxu0 %vm433_vm1, %v4850_v59 }
0x1dc1   : > { %v4854_v56 = vpop.eup %4853  ;;  %4688 = vmatprep.mubr.msk.f32.mxu1 %vm433_vm1, %v4852_v4 }
0x1dc2   : > { %v4856_v46 = vpop.eup %4855  ;;  %4674 = vmatmul.mubr.msk.f32.gmra.mxu0 %vm433_vm1, %v4854_v56 }
0x1dc3   : > { %v4858_v62 = vpop.eup %4857  ;;  %4689 = vmatmul.mubr.msk.f32.gmra.mxu1 %vm433_vm1, %v4856_v46 }
0x1dc4   : > { %v4860_v45 = vpop.eup %4859  ;;  %4676 = vmatprep.mubr.msk.f32.mxu0 %vm433_vm1, %v4858_v62 }
0x1dc5   : > { %v4862_v3 = vpop.eup %4861  ;;  %4691 = vmatprep.mubr.msk.f32.mxu1 %vm433_vm1, %v4860_v45 }
0x1dc6   : > { %v4864_v15 = vpop.eup %4863  ;;  %4677 = vmatmul.mubr.msk.f32.gmra.mxu0 %vm433_vm1, %v4862_v3 }
0x1dc7   : > { %v4866_v55 = vpop.eup %4865  ;;  %4692 = vmatmul.mubr.msk.f32.gmra.mxu1 %vm433_vm1, %v4864_v15 }
0x1dc8   : > { %4679 = vmatprep.mubr.msk.f32.mxu0 %vm433_vm1, %v4866_v55  ;;  %v4868_v22 = vpop.eup %4867 }
0x1dc9   : > { %v4870_v9 = vpop.eup %4869 }
0x1dca   : > { %4680 = vmatmul.mubr.msk.f32.gmra.mxu0 %vm433_vm1, %v4868_v22  ;;  %v4872_v42 = vpop.eup %4871 }
0x1dcb   : > { %4682 = vmatprep.mubr.msk.f32.mxu0 %vm433_vm1, %v4870_v9 }
0x1dce   : > { %4683 = vmatmul.mubr.msk.f32.gmra.mxu0 %vm433_vm1, %v4872_v42 }
0x1e7e   : > { %v4672_v7 = vpop.f32.mrf.mxu0 }
0x1e7f   : > { %v5796_v31 = vadd.f32 %v4672_v7, %v5793_v8  ;;  %v4687_v10 = vpop.f32.mrf.mxu1 }
0x1e80   : > { %v3485_v57 = vpop.f32.mrf.mxu0  ;;  %v5839_v21 = vadd.f32 %v4687_v10, %v5793_v8 }
0x1e81   : > { %v3486_v11 = vadd.f32 %v3485_v57, %v5793_v8  ;;  %v3535_v12 = vpop.f32.mrf.mxu1 }
0x1e82   : > { %v5800_v16 = vadd.f32 %v3535_v12, %v5793_v8  ;;  %v4675_v17 = vpop.f32.mrf.mxu0 }
0x1e83   : > { %v4690_v18 = vpop.f32.mrf.mxu1  ;;  %3564 = vmax.xlane.f32.xlu1 %v3486_v11  ;;  %v3501_v50 = vadd.f32 %v4675_v17, %v5793_v8 }
0x1e84   : > { %v3495_v41 = vpop.f32.mrf.mxu0  ;;  %v5843_v20 = vadd.f32 %v4690_v18, %v5793_v8 }
0x1e85   : > { %v5803_v19 = vadd.f32 %v3495_v41, %v5793_v8  ;;  %v3545_v48 = vpop.f32.mrf.mxu1 }
0x1e86   : > { %v5806_v63 = vadd.f32 %v3545_v48, %v5793_v8  ;;  %v4678_v25 = vpop.f32.mrf.mxu0 }
0x1e87   : > { %v3511_v30 = vadd.f32 %v4678_v25, %v5793_v8  ;;  %v4693_v53 = vpop.f32.mrf.mxu1 }
0x1e88   : > { %v3505_v24 = vpop.f32.mrf.mxu0  ;;  %v5847_v54 = vadd.f32 %v4693_v53, %v5793_v8 }
0x1e89   : > { %v5809_v1 = vadd.f32 %v3505_v24, %v5793_v8  ;;  %v3555_v46 = vpop.f32.mrf.mxu1 }
0x1e8a   : > { %v4681_v26 = vpop.f32.mrf.mxu0  ;;  %v5862_v62 = vadd.f32 %v3555_v46, %v5793_v8 }
0x1e8b   : > { %v3521_v51 = vadd.f32 %v4681_v26, %v5793_v8 }
0x1e8c   : > { %v3515_v27 = vpop.f32.mrf.mxu0 }
0x1e8d   : > { %v5812_v28 = vadd.f32 %v3515_v27, %v5793_v8 }
0x1e8e   : > { %v4684_v52 = vpop.f32.mrf.mxu0 }
0x1e8f   : > { %v5835_v13 = vadd.f32 %v4684_v52, %v5793_v8 }
0x1e90   : > { %v3525_v4 = vpop.f32.mrf.mxu0 }
0x1e91   : > { %v3526_v56 = vadd.f32 %v3525_v4, %v5793_v8 }
0x1f0c   : > { %v3565_v44 = vpop.xlane.xlu1 %3564 }
0x1f0d   : > { %v3596_v29 = vsub.f32 %v3486_v11, %v3565_v44 }
0x1f0f   : > { %v3612_v32 = vmul.f32 1.442695, %v3596_v29 }
0x1f11   : > { %4873 = vpow2.f32 %v3612_v32 }
0x1f1e   : > { %v4874_v61 = vpop.eup %4873 }
0x1f1f   : > { %3644 = vadd.xlane.f32.xlu0 %v4874_v61 }
0x1fa8   : > { %v3645_v33 = vpop.xlane.xlu0 %3644 }
0x1fa9   : > { %4875 = vlog2.f32 %v3645_v33 }
0x1fb6   : > { %v4876_v34 = vpop.eup %4875 }
0x1fb7   : > { %v3677_v35 = vmul.f32 0.6931472, %v4876_v34 }
0x1fb9   : > { %v3708_v37 = vsub.f32 %v3596_v29, %v3677_v35 }
0x1fbb   : > { %v3725_v38 = vmul.f32 %v5819_v36, %v3708_v37 }
0x1fbd   : > { %3741 = vadd.xlane.f32.xlu0 %v3725_v38 }
0x2046   : > { %v3742_v23 = vpop.xlane.xlu0 %3741 }
0x2047   : > { %v3774_v39 = vsel %vm3773_vm6, %v3708_v37, %v3742_v23 }
0x2048   : > { %3791 = vst.msk [vmem:[#allocation2] sm:$0xff] %vm3790_vm7, %v3774_v39 }
0x204f   : > { %v3809_v6 = vld [vmem:[#allocation2] sm:$0xff] }
0x2050   : > { %v3812_v43 = vadd.f32 %v5826_v40, %v3809_v6 }
0x2052   : > { %v3814_v49 = vrot.slane %v3812_v43, 7 }
0x2054   : > { %3815 = vrot.lane.b32.xlu1 %v3814_v49, %s5065_s30 }
0x2078   : > { %3566 = vmax.xlane.f32.xlu1 %v5796_v31 }
0x207c   : > { %3570 = vmax.xlane.f32.xlu1 %v3501_v50 }
0x2080   : > { %3574 = vmax.xlane.f32.xlu1 %v3511_v30 }
0x2084   : > { %3578 = vmax.xlane.f32.xlu1 %v3521_v51 }
0x2088   : > { %3582 = vmax.xlane.f32.xlu1 %v5835_v13 }
0x208c   : > { %3586 = vmax.xlane.f32.xlu1 %v5839_v21 }
0x2090   : > { %3590 = vmax.xlane.f32.xlu1 %v5843_v20 }
0x2094   : > { %3594 = vmax.xlane.f32.xlu1 %v5847_v54 }
0x20a5   : > { %3846 = vrot.lane.b32.xlu1 %v3809_v6, %s5065_s30 }
0x20c6   : > { %v3816_v60 = vpop.permute.xlu1 %3815 }
0x20c7   : > { %v5852_v0 = vmax.f32 %v5826_v40, %v3816_v60 }
0x20c9   : > { %v3823_v59 = vrot.slane %v5852_v0, 1 }
0x20cb   : > { %3824 = vrot.lane.b32.xlu0 %v3823_v59, %s5066_s9 }
0x20ea   : > { %3568 = vmax.xlane.f32.xlu0 %v5803_v19 }
0x20ee   : > { %3572 = vmax.xlane.f32.xlu0 %v5809_v1 }
0x20f2   : > { %3576 = vmax.xlane.f32.xlu0 %v5812_v28 }
0x20f6   : > { %3580 = vmax.xlane.f32.xlu0 %v3526_v56 }
0x20fa   : > { %3584 = vmax.xlane.f32.xlu0 %v5800_v16 }
0x20fe   : > { %3588 = vmax.xlane.f32.xlu0 %v5806_v63 }
0x2101   : > { %v3567_v45 = vpop.xlane.xlu1 %3566 }
0x2102   : > { %v5865_v3 = vsub.f32 %v5796_v31, %v3567_v45  ;;  %3592 = vmax.xlane.f32.xlu0 %v5862_v62 }
0x2104   : > { %v3614_v15 = vmul.f32 1.442695, %v5865_v3 }
0x2105   : > { %v3571_v8 = vpop.xlane.xlu1 %3570 }
0x2106   : > { %4877 = vpow2.f32 %v3614_v15  ;;  %v5870_v31 = vsub.f32 %v3501_v50, %v3571_v8 }
0x2108   : > { %v3618_v41 = vmul.f32 1.442695, %v5870_v31 }
0x2109   : > { %v3575_v57 = vpop.xlane.xlu1 %3574 }
0x210a   : > { %v5877_v48 = vsub.f32 %v3511_v30, %v3575_v57 }
0x210c   : > { %v3622_v44 = vmul.f32 1.442695, %v5877_v48 }
0x210d   : > { %v3579_v11 = vpop.xlane.xlu1 %3578 }
0x210e   : > { %v5884_v29 = vsub.f32 %v3521_v51, %v3579_v11 }
0x2110   : > { %v3626_v34 = vmul.f32 1.442695, %v5884_v29 }
0x2111   : > { %v3583_v25 = vpop.xlane.xlu1 %3582 }
0x2113   : > { %v4878_v55 = vpop.eup %4877 }
0x2114   : > { %3646 = vadd.xlane.f32.xlu1 %v4878_v55 }
0x2115   : > { %v3587_v61 = vpop.xlane.xlu1 %3586 }
0x2119   : > { %v3591_v39 = vpop.xlane.xlu1 %3590 }
0x211a   : > { %v5907_v51 = vsub.f32 %v5843_v20, %v3591_v39 }
0x211c   : > { %v3638_v59 = vmul.f32 1.442695, %v5907_v51 }
0x211d   : > { %v3595_v60 = vpop.xlane.xlu1 %3594 }
0x211e   : > { %v5915_v20 = vsub.f32 %v5847_v54, %v3595_v60 }
0x2120   : > { %v3642_v55 = vmul.f32 1.442695, %v5915_v20 }
0x213d   : > { %v3825_v22 = vpop.permute.xlu0 %3824 }
0x213e   : > { %v3827_v9 = vsub.f32 %v3812_v43, %v3825_v22 }
0x2140   : > { %v3828_v42 = vmul.f32 1.442695, %v3827_v9 }
0x2142   : > { %4879 = vpow2.f32 %v3828_v42 }
0x214f   : > { %v4880_v7 = vpop.eup %4879 }
0x2150   : > { %v3831_v10 = vrot.slane %v4880_v7, 7  ;;  %v5922_v7 = vpop.permute.xlu1 %3846 }
0x2152   : > { %3832 = vrot.lane.b32.xlu0 %v3831_v10, %s5065_s30 }
0x2173   : > { %v3569_v12 = vpop.xlane.xlu0 %3568 }
0x2174   : > { %v5873_v17 = vsub.f32 %v5803_v19, %v3569_v12 }
0x2176   : > { %v3616_v18 = vmul.f32 1.442695, %v5873_v17 }
0x2177   : > { %v3573_v24 = vpop.xlane.xlu0 %3572 }
0x2178   : > { %4881 = vpow2.f32 %v3616_v18  ;;  %v5880_v26 = vsub.f32 %v5809_v1, %v3573_v24  ;;  %v5892_v1 = vsub.f32 %v5835_v13, %v3583_v25  ;;  %v3819_v25 = vsub.f32 %v5826_v40, %v5852_v0 }
0x2179   : > { %4883 = vpow2.f32 %v3618_v41 }
0x217a   : > { %v3620_v27 = vmul.f32 1.442695, %v5880_v26  ;;  %v3630_v23 = vmul.f32 1.442695, %v5892_v1 }
0x217b   : > { %v3577_v19 = vpop.xlane.xlu0 %3576 }
0x217c   : > { %4885 = vpow2.f32 %v3620_v27  ;;  %v5887_v32 = vsub.f32 %v5812_v28, %v3577_v19  ;;  %v5899_v28 = vsub.f32 %v5839_v21, %v3587_v61  ;;  %v3820_v27 = vmul.f32 1.442695, %v3819_v25 }
0x217d   : > { %4887 = vpow2.f32 %v3622_v44 }
0x217e   : > { %v3624_v33 = vmul.f32 1.442695, %v5887_v32  ;;  %v3634_v30 = vmul.f32 1.442695, %v5899_v28 }
0x217f   : > { %v3581_v35 = vpop.xlane.xlu0 %3580 }
0x2180   : > { %4889 = vpow2.f32 %v3624_v33  ;;  %v5894_v37 = vsub.f32 %v3526_v56, %v3581_v35 }
0x2181   : > { %4891 = vpow2.f32 %v3626_v34 }
0x2182   : > { %v3628_v38 = vmul.f32 1.442695, %v5894_v37 }
0x2183   : > { %v3585_v6 = vpop.xlane.xlu0 %3584 }
0x2184   : > { %4893 = vpow2.f32 %v3628_v38  ;;  %v5902_v43 = vsub.f32 %v5800_v16, %v3585_v6 }
0x2185   : > { %v4882_v49 = vpop.eup %4881  ;;  %4895 = vpow2.f32 %v3630_v23 }
0x2186   : > { %v3632_v50 = vmul.f32 1.442695, %v5902_v43  ;;  %3648 = vadd.xlane.f32.xlu0 %v4882_v49  ;;  %v4884_v13 = vpop.eup %4883 }
0x2187   : > { %v3589_v52 = vpop.xlane.xlu0 %3588 }
0x2188   : > { %4897 = vpow2.f32 %v3632_v50  ;;  %v5910_v21 = vsub.f32 %v5806_v63, %v3589_v52 }
0x2189   : > { %v4886_v53 = vpop.eup %4885  ;;  %4899 = vpow2.f32 %v3634_v30 }
0x218a   : > { %v3636_v16 = vmul.f32 1.442695, %v5910_v21  ;;  %3652 = vadd.xlane.f32.xlu1 %v4886_v53  ;;  %3650 = vadd.xlane.f32.xlu0 %v4884_v13  ;;  %v4888_v56 = vpop.eup %4887 }
0x218b   : > { %v3593_v4 = vpop.xlane.xlu0 %3592 }
0x218c   : > { %4901 = vpow2.f32 %v3636_v16  ;;  %v5918_v46 = vsub.f32 %v5862_v62, %v3593_v4 }
0x218d   : > { %v4890_v63 = vpop.eup %4889  ;;  %4903 = vpow2.f32 %v3638_v59 }
0x218e   : > { %v3640_v45 = vmul.f32 1.442695, %v5918_v46  ;;  %3656 = vadd.xlane.f32.xlu1 %v4890_v63  ;;  %3654 = vadd.xlane.f32.xlu0 %v4888_v56  ;;  %v4892_v15 = vpop.eup %4891 }
0x2190   : > { %4905 = vpow2.f32 %v3640_v45 }
0x2191   : > { %v4894_v22 = vpop.eup %4893  ;;  %4907 = vpow2.f32 %v3642_v55 }
0x2192   : > { %3660 = vadd.xlane.f32.xlu1 %v4894_v22  ;;  %3658 = vadd.xlane.f32.xlu0 %v4892_v15  ;;  %v4896_v9 = vpop.eup %4895 }
0x2195   : > { %v4898_v54 = vpop.eup %4897 }
0x2196   : > { %3664 = vadd.xlane.f32.xlu1 %v4898_v54  ;;  %3662 = vadd.xlane.f32.xlu0 %v4896_v9  ;;  %v4900_v62 = vpop.eup %4899 }
0x2199   : > { %v4902_v42 = vpop.eup %4901 }
0x219a   : > { %3668 = vadd.xlane.f32.xlu1 %v4902_v42  ;;  %3666 = vadd.xlane.f32.xlu0 %v4900_v62  ;;  %v4904_v10 = vpop.eup %4903 }
0x219d   : > { %v4906_v8 = vpop.eup %4905  ;;  %v3647_v57 = vpop.xlane.xlu1 %3646 }
0x219e   : > { %4909 = vlog2.f32 %v3647_v57  ;;  %3672 = vadd.xlane.f32.xlu1 %v4906_v8  ;;  %3670 = vadd.xlane.f32.xlu0 %v4904_v10  ;;  %v4908_v11 = vpop.eup %4907 }
0x219f   : > { %4911 = vpow2.f32 %v3820_v27 }
0x21a2   : > { %3674 = vadd.xlane.f32.xlu0 %v4908_v11 }
0x21ab   : > { %v4910_v12 = vpop.eup %4909 }
0x21ac   : > { %v3679_v18 = vmul.f32 0.6931472, %v4910_v12  ;;  %v4912_v44 = vpop.eup %4911 }
0x21ae   : > { %v5925_v41 = vsub.f32 %v5865_v3, %v3679_v18 }
0x21b0   : > { %v3726_v24 = vmul.f32 %v5819_v36, %v5925_v41 }
0x21b2   : > { %3743 = vadd.xlane.f32.xlu1 %v3726_v24 }
0x21c4   : > { %v3833_v19 = vpop.permute.xlu0 %3832 }
0x21c5   : > { %v3835_v61 = vadd.f32 %v4912_v44, %v3833_v19 }
0x21c7   : > { %4913 = vlog2.f32 %v3835_v61 }
0x21d4   : > { %v4914_v33 = vpop.eup %4913 }
0x21d5   : > { %v3837_v34 = vmul.f32 0.6931472, %v4914_v33 }
0x21d7   : > { %v3838_v35 = vadd.f32 %v3837_v34, %v5852_v0 }
0x21d9   : > { %v3849_v3 = vadd.f32 %v5922_v7, %v3838_v35  ;;  %v3843_v59 = vrot.slane %v3838_v35, %v5152_v5 }
0x21db   : > { %v3851_v38 = vrot.slane %v3849_v3, 7  ;;  %v3844_v45 = vsel %vm3839_vm9, %v3843_v59, %v5826_v40 }
0x21dd   : > { %v3853_v23 = vmax.f32 %v5826_v40, %v3851_v38 }
0x21df   : > { %v3854_v39 = vsub.f32 %v5826_v40, %v3853_v23  ;;  %v3858_v6 = vrot.slane %v3853_v23, 1 }
0x21e1   : > { %v3860_v49 = vsub.f32 %v3849_v3, %v3858_v6  ;;  %v3855_v50 = vmul.f32 1.442695, %v3854_v39 }
0x21e3   : > { %v3861_v30 = vmul.f32 1.442695, %v3860_v49 }
0x21e5   : > { %4915 = vpow2.f32 %v3861_v30 }
0x21e6   : > { %4917 = vpow2.f32 %v3855_v50 }
0x21f2   : > { %v4916_v52 = vpop.eup %4915 }
0x21f3   : > { %v3864_v13 = vrot.slane %v4916_v52, 7  ;;  %v4918_v53 = vpop.eup %4917 }
0x21f5   : > { %v3866_v60 = vadd.f32 %v4918_v53, %v3864_v13 }
0x21f7   : > { %4919 = vlog2.f32 %v3866_v60 }
0x2204   : > { %v4920_v16 = vpop.eup %4919 }
0x2205   : > { %v3868_v0 = vmul.f32 0.6931472, %v4920_v16 }
0x2207   : > { %v3869_v4 = vadd.f32 %v3868_v0, %v3853_v23 }
0x2209   : > { %v3874_v56 = vrot.slane %v3869_v4, %v5162_v14  ;;  %v3876_v63 = vadd.f32 %v3869_v4, %v5922_v7 }
0x220b   : > { %v5945_v15 = vsel %vm3870_vm10, %v3874_v56, %v3844_v45  ;;  %v3878_v55 = vrot.slane %v3876_v63, 7 }
0x220d   : > { %v5948_v22 = vmax.f32 %v5826_v40, %v3878_v55 }
0x220f   : > { %v3881_v9 = vsub.f32 %v5826_v40, %v5948_v22  ;;  %v3885_v54 = vrot.slane %v5948_v22, 1  ;;  %v3649_v62 = vpop.xlane.xlu0 %3648 }
0x2210   : > { %4921 = vlog2.f32 %v3649_v62 }
0x2211   : > { %v3887_v42 = vsub.f32 %v3876_v63, %v3885_v54  ;;  %v3882_v10 = vmul.f32 1.442695, %v3881_v9 }
0x2213   : > { %v3888_v8 = vmul.f32 1.442695, %v3887_v42  ;;  %v3651_v57 = vpop.xlane.xlu0 %3650  ;;  %v3653_v11 = vpop.xlane.xlu1 %3652 }
0x2214   : > { %4923 = vlog2.f32 %v3651_v57 }
0x2215   : > { %4925 = vpow2.f32 %v3888_v8 }
0x2216   : > { %4927 = vlog2.f32 %v3653_v11 }
0x2217   : > { %4929 = vpow2.f32 %v3882_v10  ;;  %v3655_v12 = vpop.xlane.xlu0 %3654  ;;  %v3657_v18 = vpop.xlane.xlu1 %3656 }
0x2218   : > { %4931 = vlog2.f32 %v3655_v12 }
0x2219   : > { %4933 = vlog2.f32 %v3657_v18 }
0x221b   : > { %v3659_v25 = vpop.xlane.xlu0 %3658  ;;  %v3661_v24 = vpop.xlane.xlu1 %3660 }
0x221c   : > { %4935 = vlog2.f32 %v3659_v25 }
0x221d   : > { %v4922_v27 = vpop.eup %4921  ;;  %4937 = vlog2.f32 %v3661_v24 }
0x221e   : > { %v3681_v44 = vmul.f32 0.6931472, %v4922_v27 }
0x221f   : > { %v3663_v19 = vpop.xlane.xlu0 %3662  ;;  %v3665_v61 = vpop.xlane.xlu1 %3664 }
0x2220   : > { %4939 = vlog2.f32 %v3663_v19  ;;  %v5954_v33 = vsub.f32 %v5873_v17, %v3681_v44 }
0x2221   : > { %v4924_v34 = vpop.eup %4923  ;;  %4941 = vlog2.f32 %v3665_v61 }
0x2222   : > { %v4926_v35 = vpop.eup %4925  ;;  %v3683_v3 = vmul.f32 0.6931472, %v4924_v34  ;;  %v3727_v38 = vmul.f32 %v5819_v36, %v5954_v33 }
0x2223   : > { %v4928_v23 = vpop.eup %4927  ;;  %v3891_v39 = vrot.slane %v4926_v35, 7  ;;  %v3667_v6 = vpop.xlane.xlu0 %3666 }
0x2224   : > { %v3669_v49 = vpop.xlane.xlu1 %3668  ;;  %v4930_v50 = vpop.eup %4929  ;;  %v3685_v30 = vmul.f32 0.6931472, %v4928_v23  ;;  %4943 = vlog2.f32 %v3667_v6  ;;  %3745 = vadd.xlane.f32.xlu0 %v3727_v38  ;;  %v5959_v52 = vsub.f32 %v5870_v31, %v3683_v3 }
0x2225   : > { %v4932_v17 = vpop.eup %4931  ;;  %v3893_v13 = vadd.f32 %v4930_v50, %v3891_v39  ;;  %4945 = vlog2.f32 %v3669_v49 }
0x2226   : > { %v4934_v53 = vpop.eup %4933  ;;  %v3687_v60 = vmul.f32 0.6931472, %v4932_v17  ;;  %v3728_v16 = vmul.f32 %v5819_v36, %v5959_v52  ;;  %v5964_v0 = vsub.f32 %v5880_v26, %v3685_v30 }
0x2227   : > { %4947 = vlog2.f32 %v3893_v13  ;;  %v3689_v59 = vmul.f32 0.6931472, %v4934_v53  ;;  %v3671_v4 = vpop.xlane.xlu0 %3670 }
0x2228   : > { %v3673_v56 = vpop.xlane.xlu1 %3672  ;;  %4949 = vlog2.f32 %v3671_v4  ;;  %3747 = vadd.xlane.f32.xlu1 %v3728_v16  ;;  %v3729_v31 = vmul.f32 %v5819_v36, %v5964_v0  ;;  %v5969_v63 = vsub.f32 %v5877_v48, %v3687_v60 }
0x2229   : > { %v4936_v45 = vpop.eup %4935  ;;  %4951 = vlog2.f32 %v3673_v56  ;;  %v5972_v55 = vsub.f32 %v5887_v32, %v3689_v59 }
0x222a   : > { %v4938_v9 = vpop.eup %4937  ;;  %v3691_v26 = vmul.f32 0.6931472, %v4936_v45  ;;  %3749 = vadd.xlane.f32.xlu0 %v3729_v31  ;;  %v3730_v54 = vmul.f32 %v5819_v36, %v5969_v63 }
0x222b   : > { %v3693_v62 = vmul.f32 0.6931472, %v4938_v9  ;;  %v3675_v42 = vpop.xlane.xlu0 %3674  ;;  %v3731_v10 = vmul.f32 %v5819_v36, %v5972_v55 }
0x222c   : > { %4953 = vlog2.f32 %v3675_v42  ;;  %3751 = vadd.xlane.f32.xlu1 %v3730_v54  ;;  %v5979_v48 = vsub.f32 %v5884_v29, %v3691_v26 }
0x222d   : > { %v4940_v8 = vpop.eup %4939  ;;  %v5982_v32 = vsub.f32 %v5894_v37, %v3693_v62 }
0x222e   : > { %v4942_v57 = vpop.eup %4941  ;;  %v3695_v11 = vmul.f32 0.6931472, %v4940_v8  ;;  %3753 = vadd.xlane.f32.xlu0 %v3731_v10  ;;  %v3732_v12 = vmul.f32 %v5819_v36, %v5979_v48 }
0x222f   : > { %v3697_v18 = vmul.f32 0.6931472, %v4942_v57  ;;  %v3733_v25 = vmul.f32 %v5819_v36, %v5982_v32 }
0x2230   : > { %3755 = vadd.xlane.f32.xlu1 %v3732_v12  ;;  %v5989_v24 = vsub.f32 %v5892_v1, %v3695_v11 }
0x2231   : > { %v4944_v29 = vpop.eup %4943  ;;  %v5992_v27 = vsub.f32 %v5902_v43, %v3697_v18 }
0x2232   : > { %v4946_v37 = vpop.eup %4945  ;;  %v3699_v44 = vmul.f32 0.6931472, %v4944_v29  ;;  %3757 = vadd.xlane.f32.xlu0 %v3733_v25  ;;  %v3734_v19 = vmul.f32 %v5819_v36, %v5989_v24 }
0x2233   : > { %v3701_v61 = vmul.f32 0.6931472, %v4946_v37  ;;  %v3735_v34 = vmul.f32 %v5819_v36, %v5992_v27 }
0x2234   : > { %v4948_v35 = vpop.eup %4947  ;;  %3759 = vadd.xlane.f32.xlu1 %v3734_v19  ;;  %v5999_v3 = vsub.f32 %v5899_v28, %v3699_v44 }
0x2235   : > { %v4950_v1 = vpop.eup %4949  ;;  %v3895_v38 = vmul.f32 0.6931472, %v4948_v35  ;;  %v6002_v43 = vsub.f32 %v5910_v21, %v3701_v61 }
0x2236   : > { %v4952_v23 = vpop.eup %4951  ;;  %v3703_v39 = vmul.f32 0.6931472, %v4950_v1  ;;  %3761 = vadd.xlane.f32.xlu0 %v3735_v34  ;;  %v3736_v6 = vmul.f32 %v5819_v36, %v5999_v3 }
0x2237   : > { %v3896_v49 = vadd.f32 %v3895_v38, %v5948_v22  ;;  %v3705_v50 = vmul.f32 0.6931472, %v4952_v23  ;;  %v3737_v30 = vmul.f32 %v5819_v36, %v6002_v43 }
0x2238   : > { %3763 = vadd.xlane.f32.xlu1 %v3736_v6  ;;  %v6010_v28 = vsub.f32 %v5907_v51, %v3703_v39 }
0x2239   : > { %v4954_v17 = vpop.eup %4953  ;;  %v3903_v21 = vadd.f32 %v3896_v49, %v5922_v7  ;;  %v6014_v13 = vsub.f32 %v5918_v46, %v3705_v50  ;;  %v3901_v8 = vrot.slane %v3896_v49, %v5201_v47 }
0x223a   : > { %v3707_v53 = vmul.f32 0.6931472, %v4954_v17  ;;  %3765 = vadd.xlane.f32.xlu0 %v3737_v30  ;;  %v3738_v60 = vmul.f32 %v5819_v36, %v6010_v28 }
0x223b   : > { %v3905_v22 = vrot.slane %v3903_v21, 7  ;;  %v3744_v16 = vpop.xlane.xlu1 %3743  ;;  %v3739_v59 = vmul.f32 %v5819_v36, %v6014_v13  ;;  %v3902_v57 = vsel %vm3897_vm11, %v3901_v8, %v5945_v15 }
0x223c   : > { %v3775_v51 = vsel %vm3773_vm6, %v5925_v41, %v3744_v16  ;;  %3767 = vadd.xlane.f32.xlu1 %v3738_v60  ;;  %v6023_v4 = vsub.f32 %v5915_v20, %v3707_v53 }
0x223d   : > { %v3907_v46 = vmax.f32 %v5826_v40, %v3905_v22  ;;  %3792 = vst.msk [vmem:[#allocation2 + $0x8] sm:$0xff] %vm3790_vm7, %v3775_v51 }
0x223e   : > { %3769 = vadd.xlane.f32.xlu0 %v3739_v59  ;;  %v3740_v7 = vmul.f32 %v5819_v36, %v6023_v4 }
0x223f   : > { %v3908_v56 = vsub.f32 %v5826_v40, %v3907_v46  ;;  %v3912_v31 = vrot.slane %v3907_v46, 1 }
0x2240   : > { %3771 = vadd.xlane.f32.xlu1 %v3740_v7 }
0x2241   : > { %v3914_v45 = vsub.f32 %v3903_v21, %v3912_v31  ;;  %v3909_v9 = vmul.f32 1.442695, %v3908_v56 }
0x2243   : > { %v3915_v26 = vmul.f32 1.442695, %v3914_v45 }
0x2245   : > { %4955 = vpow2.f32 %v3915_v26 }
0x2246   : > { %4957 = vpow2.f32 %v3909_v9 }
0x2252   : > { %v4956_v41 = vpop.eup %4955 }
0x2253   : > { %v3918_v20 = vrot.slane %v4956_v41, 7  ;;  %v4958_v54 = vpop.eup %4957 }
0x2255   : > { %v3920_v62 = vadd.f32 %v4958_v54, %v3918_v20 }
0x2257   : > { %4959 = vlog2.f32 %v3920_v62 }
0x2264   : > { %v4960_v42 = vpop.eup %4959 }
0x2265   : > { %v3922_v10 = vmul.f32 0.6931472, %v4960_v42 }
0x2267   : > { %v3923_v36 = vadd.f32 %v3922_v10, %v3907_v46 }
0x2269   : > { %v3928_v40 = vrot.slane %v3923_v36, %v5210_v58 }
0x226b   : > { %v3929_v11 = vsel %vm3924_vm12, %v3928_v40, %v3902_v57  }
0x22ad   : > { %v3746_v12 = vpop.xlane.xlu0 %3745 }
0x22ae   : > { %v3776_v18 = vsel %vm3773_vm6, %v5954_v33, %v3746_v12 }
0x22af   : > { %3793 = vst.msk [vmem:[#allocation2 + $0x10] sm:$0xff] %vm3790_vm7, %v3776_v18 }
0x22b1   : > { %v3748_v25 = vpop.xlane.xlu1 %3747 }
0x22b2   : > { %v3777_v29 = vsel %vm3773_vm6, %v5959_v52, %v3748_v25 }
0x22b3   : > { %v3750_v37 = vpop.xlane.xlu0 %3749  ;;  %3794 = vst.msk [vmem:[#allocation2 + $0x18] sm:$0xff] %vm3790_vm7, %v3777_v29 }
0x22b4   : > { %v3778_v44 = vsel %vm3773_vm6, %v5964_v0, %v3750_v37 }
0x22b5   : > { %3795 = vst.msk [vmem:[#allocation2 + $0x20] sm:$0xff] %vm3790_vm7, %v3778_v44  ;;  %v3752_v15 = vpop.xlane.xlu1 %3751 }
0x22b6   : > { %v3779_v19 = vsel %vm3773_vm6, %v5969_v63, %v3752_v15 }
0x22b7   : > { %v3754_v61 = vpop.xlane.xlu0 %3753  ;;  %3796 = vst.msk [vmem:[#allocation2 + $0x28] sm:$0xff] %vm3790_vm7, %v3779_v19 }
0x22b8   : > { %v3780_v33 = vsel %vm3773_vm6, %v5972_v55, %v3754_v61 }
0x22b9   : > { %3797 = vst.msk [vmem:[#allocation2 + $0x30] sm:$0xff] %vm3790_vm7, %v3780_v33  ;;  %v3756_v52 = vpop.xlane.xlu1 %3755 }
0x22ba   : > { %v3781_v34 = vsel %vm3773_vm6, %v5979_v48, %v3756_v52 }
0x22bb   : > { %v3758_v35 = vpop.xlane.xlu0 %3757  ;;  %3798 = vst.msk [vmem:[#allocation2 + $0x38] sm:$0xff] %vm3790_vm7, %v3781_v34 }
0x22bc   : > { %v3782_v0 = vsel %vm3773_vm6, %v5982_v32, %v3758_v35 }
0x22bd   : > { %3799 = vst.msk [vmem:[#allocation2 + $0x40] sm:$0xff] %vm3790_vm7, %v3782_v0  ;;  %v3760_v63 = vpop.xlane.xlu1 %3759 }
0x22be   : > { %v3783_v1 = vsel %vm3773_vm6, %v5989_v24, %v3760_v63 }
0x22bf   : > { %v3762_v38 = vpop.xlane.xlu0 %3761  ;;  %3800 = vst.msk [vmem:[#allocation2 + $0x48] sm:$0xff] %vm3790_vm7, %v3783_v1 }
0x22c0   : > { %v3784_v55 = vsel %vm3773_vm6, %v5992_v27, %v3762_v38 }
0x22c1   : > { %3801 = vst.msk [vmem:[#allocation2 + $0x50] sm:$0xff] %vm3790_vm7, %v3784_v55  ;;  %v3764_v48 = vpop.xlane.xlu1 %3763 }
0x22c2   : > { %v3785_v23 = vsel %vm3773_vm6, %v5999_v3, %v3764_v48 }
0x22c3   : > { %v3766_v39 = vpop.xlane.xlu0 %3765  ;;  %3802 = vst.msk [vmem:[#allocation2 + $0x58] sm:$0xff] %vm3790_vm7, %v3785_v23 }
0x22c4   : > { %v3786_v32 = vsel %vm3773_vm6, %v6002_v43, %v3766_v39  ;;  %v6154_v43 = vmov %v3929_v11 }
0x22c5   : > { %3803 = vst.msk [vmem:[#allocation2 + $0x60] sm:$0xff] %vm3790_vm7, %v3786_v32  ;;  %v3768_v24 = vpop.xlane.xlu1 %3767 }
0x22c6   : > { %v3787_v6 = vsel %vm3773_vm6, %v6010_v28, %v3768_v24 }
0x22c7   : > { %v3770_v49 = vpop.xlane.xlu0 %3769  ;;  %3804 = vst.msk [vmem:[#allocation2 + $0x68] sm:$0xff] %vm3790_vm7, %v3787_v6  ;;  %4128 = sbr.rel (%p4263_p2) target bundleno = 9226 (0x240a), region = 84 }
0x22c8   : > { %v3788_v27 = vsel %vm3773_vm6, %v6014_v13, %v3770_v49 }
0x22c9   : > { %3805 = vst.msk [vmem:[#allocation2 + $0x70] sm:$0xff] %vm3790_vm7, %v3788_v27  ;;  %v3772_v3 = vpop.xlane.xlu1 %3771 }
0x22ca   : > { %v3789_v50 = vsel %vm3773_vm6, %v6023_v4, %v3772_v3 }
0x22cb   : > { %3806 = vst.msk [vmem:[#allocation2 + $0x78] sm:$0xff] %vm3790_vm7, %v3789_v50 }
0x22cc LB: >> { %s4266_s11 = sshll.u32 %s5040_s10, 3  ;;  %s5067_s15 = smov 127   ;;  %s5040_s10 = sphi %s6086_s10, %s3933_s10   ;;  %v5036_v11 = vphi %v3929_v11, %v6155_v11  }
0x22cd   : >> { %s3942_s12 = scalar_lea.vmem [#allocation2], %s4266_s11  ;;  %s4264_s16 = sadd.s32 4294967295, %s5040_s10 }
0x22ce   : >> { %s4265_s18 = sshll.u32 %s4264_s16, 3  ;;  %s3933_s10 = sadd.s32 1, %s5040_s10  }
0x22cf   : >> { %s3939_s20 = scalar_lea.vmem [#allocation2], %s4265_s18  ;;  %p3932_p3 = scmp.ge.s32.totalorder %s3933_s10, %s6159_s25 }
0x22d2   : >> { %v3943_v30 = vld [vmem:[%s3942_s12] sm:$0xff] }
0x22d3   : >> { %3946 = vrot.lane.b32.xlu0 %v3943_v30, %s5067_s15  ;;  %v3940_v28 = vld [vmem:[%s3939_s20] sm:$0xff] }
0x22d4   : >> { %v6094_v17 = vadd.f32 %v5036_v11, %v3940_v28 }
0x2345   : >> { %v3947_v21 = vpop.permute.xlu0 %3946 }
0x2346   : >> { %v3949_v13 = vadd.f32 %v3947_v21, %v6094_v17 }
0x2348   : >> { %v3951_v53 = vrot.slane %v3949_v13, 7 }
0x234a   : >> { %v3953_v60 = vmax.f32 %v6094_v17, %v3951_v53 }
0x234c   : >> { %v3954_v22 = vsub.f32 %v6094_v17, %v3953_v60  ;;  %v3958_v16 = vrot.slane %v3953_v60, 1 }
0x234e   : >> { %v3960_v59 = vsub.f32 %v3949_v13, %v3958_v16  ;;  %v3955_v51 = vmul.f32 1.442695, %v3954_v22 }
0x2350   : >> { %v3961_v4 = vmul.f32 1.442695, %v3960_v59 }
0x2352   : >> { %4963 = vpow2.f32 %v3961_v4 }
0x2353   : >> { %4965 = vpow2.f32 %v3955_v51 }
0x235f   : >> { %v4964_v46 = vpop.eup %4963 }
0x2360   : >> { %v3964_v7 = vrot.slane %v4964_v46, 7  ;;  %v4966_v56 = vpop.eup %4965 }
0x2362   : >> { %v3966_v31 = vadd.f32 %v4966_v56, %v3964_v7 }
0x2364   : >> { %4967 = vlog2.f32 %v3966_v31 }
0x2371   : >> { %v4968_v45 = vpop.eup %4967 }
0x2372   : >> { %v3968_v9 = vmul.f32 0.6931472, %v4968_v45 }
0x2374   : >> { %v3969_v26 = vadd.f32 %v3968_v9, %v3953_v60 }
0x2376   : >> { %v3975_v41 = vadd.f32 %v3969_v26, %v3947_v21  ;;  %v3973_v29 = vrot.slane %v3969_v26, %v5152_v5 }
0x2378   : >> { %v3977_v20 = vrot.slane %v3975_v41, 7  ;;  %v3974_v19 = vsel %vm3839_vm9, %v3973_v29, %v6094_v17 }
0x237a   : >> { %v3979_v54 = vmax.f32 %v6094_v17, %v3977_v20 }
0x237c   : >> { %v3980_v62 = vsub.f32 %v6094_v17, %v3979_v54  ;;  %v3984_v42 = vrot.slane %v3979_v54, 1 }
0x237e   : >> { %v3986_v10 = vsub.f32 %v3975_v41, %v3984_v42  ;;  %v3981_v8 = vmul.f32 1.442695, %v3980_v62 }
0x2380   : >> { %v3987_v36 = vmul.f32 1.442695, %v3986_v10 }
0x2382   : >> { %4969 = vpow2.f32 %v3987_v36 }
0x2383   : >> { %4971 = vpow2.f32 %v3981_v8 }
0x238f   : >> { %v4970_v40 = vpop.eup %4969 }
0x2390   : >> { %v3990_v57 = vrot.slane %v4970_v40, 7  ;;  %v4972_v11 = vpop.eup %4971 }
0x2392   : >> { %v3992_v12 = vadd.f32 %v4972_v11, %v3990_v57 }
0x2394   : >> { %4973 = vlog2.f32 %v3992_v12 }
0x23a1   : >> { %v4974_v18 = vpop.eup %4973 }
0x23a2   : >> { %v3994_v25 = vmul.f32 0.6931472, %v4974_v18 }
0x23a4   : >> { %v3995_v37 = vadd.f32 %v3994_v25, %v3979_v54 }
0x23a6   : >> { %v3999_v44 = vrot.slane %v3995_v37, %v5162_v14  ;;  %v4001_v15 = vadd.f32 %v3995_v37, %v3947_v21 }
0x23a8   : >> { %v4000_v61 = vsel %vm3870_vm10, %v3999_v44, %v3974_v19  ;;  %v4003_v33 = vrot.slane %v4001_v15, 7 }
0x23aa   : >> { %v4005_v52 = vmax.f32 %v6094_v17, %v4003_v33 }
0x23ac   : >> { %v4006_v34 = vsub.f32 %v6094_v17, %v4005_v52  ;;  %v4010_v35 = vrot.slane %v4005_v52, 1 }
0x23ae   : >> { %v4012_v0 = vsub.f32 %v4001_v15, %v4010_v35  ;;  %v4007_v63 = vmul.f32 1.442695, %v4006_v34 }
0x23b0   : >> { %v4013_v1 = vmul.f32 1.442695, %v4012_v0 }
0x23b2   : >> { %4975 = vpow2.f32 %v4013_v1 }
0x23b3   : >> { %4977 = vpow2.f32 %v4007_v63 }
0x23bf   : >> { %v4976_v38 = vpop.eup %4975 }
0x23c0   : >> { %v4016_v55 = vrot.slane %v4976_v38, 7  ;;  %v4978_v48 = vpop.eup %4977 }
0x23c2   : >> { %v4018_v23 = vadd.f32 %v4978_v48, %v4016_v55 }
0x23c4   : >> { %4979 = vlog2.f32 %v4018_v23 }
0x23d1   : >> { %v4980_v39 = vpop.eup %4979 }
0x23d2   : >> { %v4020_v32 = vmul.f32 0.6931472, %v4980_v39 }
0x23d4   : >> { %v4021_v24 = vadd.f32 %v4020_v32, %v4005_v52 }
0x23d6   : >> { %v4027_v6 = vadd.f32 %v4021_v24, %v3947_v21  ;;  %v4025_v21 = vrot.slane %v4021_v24, %v5201_v47 }
0x23d8   : >> { %v4029_v49 = vrot.slane %v4027_v6, 7 }
0x23da   : >> { %v4031_v27 = vmax.f32 %v6094_v17, %v4029_v49 }
0x23dc   : >> { %v4032_v3 = vsub.f32 %v6094_v17, %v4031_v27  ;;  %v4036_v50 = vrot.slane %v4031_v27, 1  ;;  %v4026_v17 = vsel %vm3897_vm11, %v4025_v21, %v4000_v61 }
0x23de   : >> { %v4038_v43 = vsub.f32 %v4027_v6, %v4036_v50  ;;  %v4033_v30 = vmul.f32 1.442695, %v4032_v3 }
0x23e0   : >> { %v4039_v28 = vmul.f32 1.442695, %v4038_v43 }
0x23e2   : >> { %4981 = vpow2.f32 %v4039_v28 }
0x23e3   : >> { %4983 = vpow2.f32 %v4033_v30 }
0x23ef   : >> { %v4982_v13 = vpop.eup %4981 }
0x23f0   : >> { %v4042_v53 = vrot.slane %v4982_v13, 7  ;;  %v4984_v60 = vpop.eup %4983 }
0x23f2   : >> { %v4044_v22 = vadd.f32 %v4984_v60, %v4042_v53 }
0x23f4   : >> { %4985 = vlog2.f32 %v4044_v22 }
0x2401   : >> { %v4986_v16 = vpop.eup %4985 }
0x2402   : >> { %v4046_v59 = vmul.f32 0.6931472, %v4986_v16 }
0x2404   : >> { %v4047_v51 = vadd.f32 %v4046_v59, %v4031_v27 }
0x2405   : > { %3935 = sbr.rel (!%p3932_p3) target bundleno = 8908 (0x22cc), region = 90 }
0x2406   : >> { %v4051_v4 = vrot.slane %v4047_v51, %v5210_v58 }
0x2408   : >> { %v4052_v46 = vsel %vm3924_vm12, %v4051_v4, %v4026_v17  }
0x2409   : >> { %v6155_v11 = vmov %v4052_v46  ;;  %v6156_v43 = vmov (%p3932_p3), %v4052_v46 }
0x240a PF: > { %s4267_s19 = sadd.s32 4294967295, %s6159_s25  ;;  %s4058_s0 = sld [smem:[#allocation5 + %s5126_s14]]  ;;  %v5068_v7 = vmov 0   ;;  %v5044_v43 = vphi %v6154_v43, %v6156_v43  }
0x240b   : > { %4987 = vset.pattern.permute.xlu0 %v5068_v7  ;;  %s4268_s24 = sshll.u32 %s4267_s19, 3  ;;  %s6157_s13 = scalar_lea.vmem %s6146_s8, %s5135_s17 }
0x240c   : > { %s4055_s23 = scalar_lea.vmem [#allocation2], %s4268_s24 }
0x2410   : > { %p4059_p4 = scmp.gt.s32.totalorder %s4058_s0, 0  ;;  %p4269_p5 = scmp.lt.s32.totalorder %s4058_s0, 4  ;;  %v4056_v56 = vld [vmem:[%s4055_s23] sm:$0xff] }
0x2411   : > { %v4057_v31 = vadd.f32 %v5044_v43, %v4056_v56 }
0x2412   : > { %s6161_s0 = smov (!%p4059_p4, %s4058_s0), 0 }
0x2413   : > { %s6163_s0 = smov (!%p4269_p5, %s6161_s0), 4 }
0x2414   : > { %v4063_v5 = vstv %s6163_s0 }
0x2415   : > { %vm4064_vm13 = vcmp.eq.s32.totalorder %v5138_v2, %v4063_v5 }
0x2416   : > { %v4065_v14 = vsel %vm4064_vm13, %v4057_v31, 0.0 }
0x2417   : > { %v4066_v47 = vsel %vm3773_vm6, %v4065_v14, 0.0 }
0x2418   : > { %v4067_v58 = vrot.slane %v4066_v47, 4 }
0x241a   : > { %v4068_v45 = vadd.f32 %v4067_v58, %v4066_v47 }
0x241c   : > { %v4069_v9 = vrot.slane %v4068_v45, 2 }
0x241e   : > { %v4070_v26 = vadd.f32 %v4069_v9, %v4068_v45 }
0x2420   : > { %v4071_v41 = vrot.slane %v4070_v26, 1 }
0x2422   : > { %v4072_v20 = vadd.f32 %v4071_v41, %v4070_v26 }
0x2424   : > { %4075 = vperm.xlu0 %4987, %v4072_v20  }
0x249f   : > { %v4076_v54 = vpop.permute.xlu0 %4075 }
0x24a0   : > { %v4078_v62 = vsub.f32 0.0, %v4076_v54 }
0x24a2   : > { %4079 = vst [vmem:[%s6157_s13] sm:$0x1] %v4078_v62 }
0x24a3 PF: > { %s28_s1 = sadd.s32 1, %s5032_s1  }
0x24a4   : > { %p25_p6 = scmp.ge.s32.totalorder %s28_s1, 4  }
0x24a6   :  { %27 = sbr.rel (!%p25_p6) target bundleno = 26 (0x1a), region = 101 }

</bundles_post_ra>
